<compile_context>
chip_gen: v6e
topology: v6e:2x2x1
jax: 0.10.0
libtpu: 0.0.40
codegen_flags: <defaults>
</compile_context>

<pallas_src>
import functools

import jax
import jax.numpy as jnp
from jax import lax
from jax.experimental import pallas as pl
from jax.experimental.pallas import tpu as pltpu

BN_EPS = 1e-5
LANE = 128
LPAD = 8          # left zero band in the padded-image scratch (interior starts sublane-aligned)


def _round_up(x, m):
    return (x + m - 1) // m * m


def _pick_tile_h(ho):
    """Output rows per grid step: prefer 8-32 rows with >=2 tiles per image (pipelining /
    megacore row split); avoid th==2 (100% conv1-halo recompute) and th==Ho (single step).
    Non-dividing th is allowed: the grid uses cdiv and the last tile is partial."""
    if ho <= 8:
        return ho
    for cand in (32, 16, 8):
        if ho % cand == 0 and ho // cand >= 2:
            return cand
    return 8 if ho <= 32 else 16


def _single_buffered(shape, index_map):
    """Block whose index never changes along the inner grid axis: one VMEM buffer."""
    if hasattr(pl, "Buffered"):
        try:
            return pl.BlockSpec(shape, index_map, pipeline_mode=pl.Buffered(1))
        except TypeError:  # BlockSpec without pipeline_mode support
            pass
    return pl.BlockSpec(shape, index_map)


# ----------------------------- fused Pallas kernel -------------------------


def _fused_residual_kernel(*refs, stride, th, H, W, ho, wo, has_skip_conv):
    if has_skip_conv:
        (x_ref, w1_ref, b1_ref, w2_ref, b2_ref, ws_ref, bs_ref,
         o_ref, xpad_ref, r1_ref) = refs
    else:
        (x_ref, w1_ref, b1_ref, w2_ref, b2_ref, o_ref, xpad_ref, r1_ref) = refs

    r = pl.program_id(1)
    last_r = pl.num_programs(1) - 1
    cin = x_ref.shape[3]
    cout = o_ref.shape[3]
    rows1 = th + 2                      # conv1 rows incl. one halo row each side (conv2 input)
    TP = stride + 1                     # top zero band (rows) of the padded-image scratch
    LP = LPAD
    hp, wp = xpad_ref.shape[0], xpad_ref.shape[1]
    wp2 = r1_ref.shape[1]

    # ---- once per image: zero only the halo border, copy the image interior (aligned) ----
    @pl.when(r == 0)
    def _():
        xdt = xpad_ref.dtype
        xpad_ref[0:TP, :, :] = jnp.zeros((TP, wp, cin), xdt)
        xpad_ref[TP + H:hp, :, :] = jnp.zeros((hp - TP - H, wp, cin), xdt)
        xpad_ref[:, 0:LP, :] = jnp.zeros((hp, LP, cin), xdt)
        xpad_ref[:, LP + W:wp, :] = jnp.zeros((hp, wp - LP - W, cin), xdt)
        xpad_ref[TP:TP + H, LP:LP + W, :] = x_ref[0]
        rdt = r1_ref.dtype
        r1_ref[:, 0:LP, :] = jnp.zeros((rows1, LP, cout), rdt)
        r1_ref[:, LP + wo:wp2, :] = jnp.zeros((rows1, wp2 - LP - wo, cout), rdt)

    row0 = stride * th * r              # first xpad row touched by this tile's conv1

    # ---- conv1 (3x3, stride) + folded-BN bias + ReLU: 9 accumulated bf16 MXU dots ----
    acc1 = None
    for t in range(9):
        dy, dx = divmod(t, 3)
        if stride == 1:
            tap = xpad_ref[pl.ds(row0 + dy, rows1), pl.ds(LP - 1 + dx, wo), :]
        else:
            tap = xpad_ref[pl.ds(row0 + dy, rows1, stride),
                           pl.ds(LP - 1 + dx, wo, stride), :]
        d = jnp.dot(tap.reshape(rows1 * wo, cin).astype(jnp.bfloat16), w1_ref[t],
                    preferred_element_type=jnp.float32)
        acc1 = d if acc1 is None else acc1 + d
    y1 = jnp.maximum(acc1 + b1_ref[...], 0.0)                       # (rows1*wo, cout) f32
    r1_ref[:, LP:LP + wo, :] = y1.reshape(rows1, wo, cout).astype(r1_ref.dtype)

    # Halo rows outside the image are conv2's zero padding; only edge tiles pay for it.
    @pl.when(r == 0)
    def _():
        r1_ref[0, :, :] = jnp.zeros((wp2, cout), r1_ref.dtype)      # virtual relu1 row -1

    @pl.when(r == last_r)
    def _():
        v = r * th - 1 + lax.broadcasted_iota(jnp.int32, (rows1, 1, 1), 0)
        r1_ref[...] = jnp.where(v < ho, r1_ref[...], jnp.zeros((), r1_ref.dtype))

    # ---- conv2 (3x3, stride 1) + folded-BN bias: 9 accumulated bf16 MXU dots ----
    acc2 = None
    for t in range(9):
        dy, dx = divmod(t, 3)
        tap = r1_ref[pl.ds(dy, th), pl.ds(LP - 1 + dx, wo), :]      # already bf16
        d = jnp.dot(tap.reshape(th * wo, cout), w2_ref[t],
                    preferred_element_type=jnp.float32)
        acc2 = d if acc2 is None else acc2 + d
    y2 = acc2 + b2_ref[...]

    # ---- skip branch: 1x1 conv + folded BN, or exact f32 identity ----
    if stride == 1:
        xs = xpad_ref[pl.ds(TP + row0, th), pl.ds(LP, wo), :]
    else:
        xs = xpad_ref[pl.ds(TP + row0, th, stride), pl.ds(LP, wo, stride), :]
    xs = xs.reshape(th * wo, cin)
    if has_skip_conv:
        sk = jnp.dot(xs.astype(jnp.bfloat16), ws_ref[...],
                     preferred_element_type=jnp.float32) + bs_ref[...]
    else:
        sk = xs                                                     # identity kept in f32

    # ---- add + final ReLU ----
    out = jnp.maximum(y2 + sk, 0.0)
    o_ref[0] = out.reshape(th, wo, cout).astype(o_ref.dtype)


# ----------------------------- parameter preparation -----------------------


def prepare_params(p, *, stride=1):
    """Fold BN (inference) INTO the conv weights, repack to (9, cin, cout) bf16 and pad
    channels to full 128-lane tiles.  Runs once per layer."""
    out_dim, inp_dim = p["w1"].shape[0], p["w1"].shape[1]
    cin, cout = _round_up(inp_dim, LANE), _round_up(out_dim, LANE)

    def fold(g, b, m, v):
        s = g / jnp.sqrt(v + BN_EPS)
        return s, b - m * s

    def pack3x3(w, s, ci, co):                      # torch (O, I, 3, 3) -> (9, ci, co) bf16
        wt = jnp.transpose(w * s[:, None, None, None], (2, 3, 1, 0))   # (3, 3, I, O)
        wt = jnp.pad(wt, ((0, 0), (0, 0), (0, ci - wt.shape[2]), (0, co - wt.shape[3])))
        return wt.reshape(9, ci, co).astype(jnp.bfloat16)

    def vec(v, c):
        return jnp.pad(v, (0, c - v.shape[0])).reshape(1, c).astype(jnp.float32)

    s1, b1 = fold(p["g1"], p["b1"], p["m1"], p["v1"])
    s2, b2 = fold(p["g2"], p["b2"], p["m2"], p["v2"])
    prep = {"w1": pack3x3(p["w1"], s1, cin, cout), "b1": vec(b1, cout),
            "w2": pack3x3(p["w2"], s2, cout, cout), "b2": vec(b2, cout)}
    meta = {"inp_dim": inp_dim, "out_dim": out_dim, "cin": cin, "cout": cout,
            "stride": stride, "skip_conv": (stride != 1) or (inp_dim != out_dim)}
    if meta["skip_conv"]:
        ss, bs = fold(p["gs"], p["bs"], p["ms"], p["vs"])
        ws = (p["ws"][:, :, 0, 0] * ss[:, None]).T                     # (I, O), scale folded
        ws = jnp.pad(ws, ((0, cin - inp_dim), (0, cout - out_dim))).astype(jnp.bfloat16)
        prep["ws"], prep["bs"] = ws, vec(bs, cout)
    return prep, meta


# ----------------------------- fused forward pass --------------------------


def residual_forward_nhwc(x, prep, meta):
    """x: (N, H, W, cin) float32, channels already zero-padded to meta['cin'] lanes.
    Returns (N, Ho, Wo, cout) float32 in padded NHWC (chain-friendly layout)."""
    stride, cin, cout = meta["stride"], meta["cin"], meta["cout"]
    N, H, W, _ = x.shape
    Ho = (H - 1) // stride + 1
    Wo = (W - 1) // stride + 1
    th = _pick_tile_h(Ho)
    rt = -(-Ho // th)                                   # cdiv; last tile may be partial

    TP = stride + 1
    hp = TP + stride * rt * th + 2                      # covers conv1 halo of the last tile
    wp = LPAD + W + 1
    wp2 = LPAD + Wo + 1

    kernel = functools.partial(_fused_residual_kernel, stride=stride, th=th,
                               H=H, W=W, ho=Ho, wo=Wo,
                               has_skip_conv=meta["skip_conv"])

    def inv_spec(a):                                    # grid-invariant weight / bias
        return _single_buffered(a.shape, lambda n, r, _nd=a.ndim: (0,) * _nd)

    in_specs = [_single_buffered((1, H, W, cin), lambda n, r: (n, 0, 0, 0))]   # x: per image
    args = [x, prep["w1"], prep["b1"], prep["w2"], prep["b2"]]
    if meta["skip_conv"]:
        args += [prep["ws"], prep["bs"]]
    in_specs += [inv_spec(a) for a in args[1:]]

    # VMEM budget from actual buffer sizes + headroom for compiler temporaries.
    wbytes = sum(int(a.size) * a.dtype.itemsize for a in args[1:])
    est = (2 * H * W * cin * 4            # x block
           + hp * wp * cin * 4            # padded-image scratch (f32)
           + (th + 2) * wp2 * cout * 2    # relu1 scratch (bf16)
           + 2 * th * Wo * cout * 4       # output block (double-buffered)
           + wbytes)
    vmem_limit = int(min(max(2 * est, 32 << 20), 96 << 20))

    return pl.pallas_call(
        kernel,
        out_shape=jax.ShapeDtypeStruct((N, Ho, Wo, cout), jnp.float32),
        grid=(N, rt),
        in_specs=in_specs,
        out_specs=pl.BlockSpec((1, th, Wo, cout), lambda n, r: (n, r, 0, 0)),
        scratch_shapes=[pltpu.VMEM((hp, wp, cin), jnp.float32),           # zero-padded image
                        pltpu.VMEM((th + 2, wp2, cout), jnp.bfloat16)],   # relu1 + halos
        compiler_params=pltpu.CompilerParams(
            dimension_semantics=("parallel", "arbitrary"),
            vmem_limit_bytes=vmem_limit),
    )(*args)


def residual_forward(x_nchw, prep, meta):
    # TODO(synk): when chaining layers keep activations in padded NHWC between calls instead
    # of paying this NCHW<->NHWC transpose + channel pad/crop per layer.
    N, C, H, W = x_nchw.shape
    x = jnp.transpose(x_nchw, (0, 2, 3, 1)).astype(jnp.float32)
    x = jnp.pad(x, ((0, 0), (0, 0), (0, 0), (0, meta["cin"] - C)))
    out = residual_forward_nhwc(x, prep, meta)
    return jnp.transpose(out[..., :meta["out_dim"]], (0, 3, 1, 2))


# ----------------------------- pure-JAX reference --------------------------


def _ref_conv(x, w, stride, pad):
    return lax.conv_general_dilated(
        x, w, (stride, stride), [(pad, pad), (pad, pad)],
        dimension_numbers=("NCHW", "OIHW", "NCHW"))


def _ref_bn(x, g, b, m, v):
    g, b, m, v = (t[None, :, None, None] for t in (g, b, m, v))
    return (x - m) / jnp.sqrt(v + BN_EPS) * g + b


def ref_residual(x, p, *, stride=1):
    inp_dim, out_dim = x.shape[1], p["w1"].shape[0]
    r1 = jnp.maximum(_ref_bn(_ref_conv(x, p["w1"], stride, 1),
                             p["g1"], p["b1"], p["m1"], p["v1"]), 0.0)
    bn2 = _ref_bn(_ref_conv(r1, p["w2"], 1, 1), p["g2"], p["b2"], p["m2"], p["v2"])
    if stride != 1 or inp_dim != out_dim:
        skip = _ref_bn(_ref_conv(x, p["ws"], stride, 0),
                       p["gs"], p["bs"], p["ms"], p["vs"])
    else:
        skip = x
    return jnp.maximum(bn2 + skip, 0.0)


# ----------------------------- main ----------------------------------------


def make_params(key, inp_dim, out_dim):
    ks = jax.random.split(key, 15)

    def bn(k0, k1, k2, k3, c):
        return (jax.random.normal(k0, (c,), jnp.float32) * 0.1 + 1.0,
                jax.random.normal(k1, (c,), jnp.float32) * 0.1,
                jax.random.normal(k2, (c,), jnp.float32) * 0.1,
                jax.random.uniform(k3, (c,), jnp.float32, 0.5, 1.5))

    p = {"w1": jax.random.normal(ks[0], (out_dim, inp_dim, 3, 3), jnp.float32) * 0.1}
    p["g1"], p["b1"], p["m1"], p["v1"] = bn(ks[1], ks[2], ks[3], ks[4], out_dim)
    p["w2"] = jax.random.normal(ks[5], (out_dim, out_dim, 3, 3), jnp.float32) * 0.1
    p["g2"], p["b2"], p["m2"], p["v2"] = bn(ks[6], ks[7], ks[8], ks[9], out_dim)
    p["ws"] = jax.random.normal(ks[10], (out_dim, inp_dim, 1, 1), jnp.float32) * 0.1
    p["gs"], p["bs"], p["ms"], p["vs"] = bn(ks[11], ks[12], ks[13], ks[14], out_dim)
    return p


def _check(name, x, p, stride):
    prep, meta = prepare_params(p, stride=stride)
    out = jax.block_until_ready(residual_forward(x, prep, meta))
    ref = ref_residual(x, p, stride=stride)
    assert out.shape == ref.shape, (name, out.shape, ref.shape)
    err = float(jnp.max(jnp.abs(out - ref)))
    # bf16 MXU operands with f32 accumulation -> a few 1e-3 absolute error at these scales.
    assert bool(jnp.allclose(out, ref, rtol=3e-2, atol=3e-2)), \
        f"mismatch in {name}: max abs err {err}"


if __name__ == "__main__":
    key = jax.random.PRNGKey(0)
    k1, k2, k3, k4, k5, k6 = jax.random.split(key, 6)
    N = 2

    # A: projection skip (inp_dim != out_dim), stride 1.
    _check("proj/stride1", jax.random.normal(k1, (N, 4, 16, 16), jnp.float32),
           make_params(k2, 4, 8), 1)
    # B: identity skip (inp_dim == out_dim), stride 1.
    _check("identity/stride1", jax.random.normal(k3, (N, 8, 16, 16), jnp.float32),
           make_params(k4, 8, 8), 1)
    # C: downsampling block (stride 2, projection skip).
    _check("proj/stride2", jax.random.normal(k5, (N, 4, 16, 16), jnp.float32),
           make_params(k2, 4, 8), 2)
    # D: Ho not divisible by the row tile (partial last tile path).
    _check("identity/H14", jax.random.normal(k6, (N, 8, 14, 16), jnp.float32),
           make_params(k4, 8, 8), 1)

    print("KERNEL_OK")
</pallas_src>

<mosaic_0001>
module attributes {stable_mosaic.version = 11 : i64} {
  func.func @_fused_residual_kernel(%arg0: i32, %arg1: i32, %arg2: memref<1x16x16x128xf32, #tpu.memory_space<vmem>>, %arg3: memref<9x128x128xbf16, #tpu.memory_space<vmem>>, %arg4: memref<1x128xf32, #tpu.memory_space<vmem>>, %arg5: memref<9x128x128xbf16, #tpu.memory_space<vmem>>, %arg6: memref<1x128xf32, #tpu.memory_space<vmem>>, %arg7: memref<128x128xbf16, #tpu.memory_space<vmem>>, %arg8: memref<1x128xf32, #tpu.memory_space<vmem>>, %arg9: memref<1x8x16x128xf32, #tpu.memory_space<vmem>>, %arg10: memref<20x25x128xf32, #tpu.memory_space<vmem>>, %arg11: memref<10x25x128xbf16, #tpu.memory_space<vmem>>) attributes {dimension_semantics = [#tpu.dimension_semantics<parallel>, #tpu.dimension_semantics<arbitrary>], iteration_bounds = array<i64: 2, 2>, scalar_prefetch = 0 : i64, scratch_operands = 2 : i64, tpu.core_type = #tpu.core_type<tc>, window_params = [{pipeline_mode = #tpu.pipeline_mode<synchronous>, transform_indices = @transform_0, window_bounds = array<i64: 1, 16, 16, 128>}, {pipeline_mode = #tpu.pipeline_mode<synchronous>, transform_indices = @transform_1, window_bounds = array<i64: 9, 128, 128>}, {pipeline_mode = #tpu.pipeline_mode<synchronous>, transform_indices = @transform_2, window_bounds = array<i64: 1, 128>}, {pipeline_mode = #tpu.pipeline_mode<synchronous>, transform_indices = @transform_3, window_bounds = array<i64: 9, 128, 128>}, {pipeline_mode = #tpu.pipeline_mode<synchronous>, transform_indices = @transform_4, window_bounds = array<i64: 1, 128>}, {pipeline_mode = #tpu.pipeline_mode<synchronous>, transform_indices = @transform_5, window_bounds = array<i64: 128, 128>}, {pipeline_mode = #tpu.pipeline_mode<synchronous>, transform_indices = @transform_6, window_bounds = array<i64: 1, 128>}, {transform_indices = @transform_7, window_bounds = array<i64: 1, 8, 16, 128>}]} {
    %c0_i32 = arith.constant 0 : i32
    %0 = arith.cmpi eq, %arg1, %c0_i32 : i32
    %1 = arith.extui %0 : i1 to i32
    %c0_i32_0 = arith.constant 0 : i32
    %2 = arith.cmpi ne, %1, %c0_i32_0 : i32
    scf.if %2 {
      %cst_139 = arith.constant 0.000000e+00 : f32
      %171 = vector.broadcast %cst_139 : f32 to vector<2x25x128xf32>
      %c0_140 = arith.constant 0 : index
      %c0_141 = arith.constant 0 : index
      %c0_142 = arith.constant 0 : index
      %172 = vector.load %arg10[%c0_140, %c0_141, %c0_142] : memref<20x25x128xf32, #tpu.memory_space<vmem>>, vector<2x25x128xf32>
      tpu.vector_store %arg10[%c0_140, %c0_141, %c0_142], %171 {strides = array<i32>} : memref<20x25x128xf32, #tpu.memory_space<vmem>>, vector<2x25x128xf32>,
      %cst_143 = arith.constant 0.000000e+00 : f32
      %173 = vector.broadcast %cst_143 : f32 to vector<2x25x128xf32>
      %c18 = arith.constant 18 : index
      %c0_144 = arith.constant 0 : index
      %c0_145 = arith.constant 0 : index
      %174 = vector.load %arg10[%c18, %c0_144, %c0_145] : memref<20x25x128xf32, #tpu.memory_space<vmem>>, vector<2x25x128xf32>
      tpu.vector_store %arg10[%c18, %c0_144, %c0_145], %173 {strides = array<i32>} : memref<20x25x128xf32, #tpu.memory_space<vmem>>, vector<2x25x128xf32>,
      %cst_146 = arith.constant 0.000000e+00 : f32
      %175 = vector.broadcast %cst_146 : f32 to vector<20x8x128xf32>
      %c0_147 = arith.constant 0 : index
      %c0_148 = arith.constant 0 : index
      %c0_149 = arith.constant 0 : index
      %176 = vector.load %arg10[%c0_147, %c0_148, %c0_149] : memref<20x25x128xf32, #tpu.memory_space<vmem>>, vector<20x8x128xf32>
      tpu.vector_store %arg10[%c0_147, %c0_148, %c0_149], %175 {strides = array<i32>} : memref<20x25x128xf32, #tpu.memory_space<vmem>>, vector<20x8x128xf32>,
      %cst_150 = arith.constant 0.000000e+00 : f32
      %177 = vector.broadcast %cst_150 : f32 to vector<20x1x128xf32>
      %c0_151 = arith.constant 0 : index
      %c24 = arith.constant 24 : index
      %c0_152 = arith.constant 0 : index
      %178 = vector.load %arg10[%c0_151, %c24, %c0_152] : memref<20x25x128xf32, #tpu.memory_space<vmem>>, vector<20x1x128xf32>
      tpu.vector_store %arg10[%c0_151, %c24, %c0_152], %177 {strides = array<i32>} : memref<20x25x128xf32, #tpu.memory_space<vmem>>, vector<20x1x128xf32>,
      %c0_153 = arith.constant 0 : index
      %c0_154 = arith.constant 0 : index
      %c0_155 = arith.constant 0 : index
      %c0_156 = arith.constant 0 : index
      %179 = vector.load %arg2[%c0_153, %c0_154, %c0_155, %c0_156] : memref<1x16x16x128xf32, #tpu.memory_space<vmem>>, vector<1x16x16x128xf32>
      %180 = vector.shape_cast %179 : vector<1x16x16x128xf32> to vector<16x16x128xf32>
      %c2_157 = arith.constant 2 : index
      %c8_158 = arith.constant 8 : index
      %c0_159 = arith.constant 0 : index
      %181 = vector.load %arg10[%c2_157, %c8_158, %c0_159] : memref<20x25x128xf32, #tpu.memory_space<vmem>>, vector<16x16x128xf32>
      tpu.vector_store %arg10[%c2_157, %c8_158, %c0_159], %180 {strides = array<i32>} : memref<20x25x128xf32, #tpu.memory_space<vmem>>, vector<16x16x128xf32>,
      %cst_160 = arith.constant 0.000000e+00 : bf16
      %182 = vector.broadcast %cst_160 : bf16 to vector<10x8x128xbf16>
      %c0_161 = arith.constant 0 : index
      %c0_162 = arith.constant 0 : index
      %c0_163 = arith.constant 0 : index
      %183 = vector.load %arg11[%c0_161, %c0_162, %c0_163] : memref<10x25x128xbf16, #tpu.memory_space<vmem>>, vector<10x8x128xbf16>
      tpu.vector_store %arg11[%c0_161, %c0_162, %c0_163], %182 {strides = array<i32>} : memref<10x25x128xbf16, #tpu.memory_space<vmem>>, vector<10x8x128xbf16>,
      %cst_164 = arith.constant 0.000000e+00 : bf16
      %184 = vector.broadcast %cst_164 : bf16 to vector<10x1x128xbf16>
      %c0_165 = arith.constant 0 : index
      %c24_166 = arith.constant 24 : index
      %c0_167 = arith.constant 0 : index
      %185 = vector.load %arg11[%c0_165, %c24_166, %c0_167] : memref<10x25x128xbf16, #tpu.memory_space<vmem>>, vector<10x1x128xbf16>
      tpu.vector_store %arg11[%c0_165, %c24_166, %c0_167], %184 {strides = array<i32>} : memref<10x25x128xbf16, #tpu.memory_space<vmem>>, vector<10x1x128xbf16>,
    } else {
    }
    %c8_i32 = arith.constant 8 : i32
    %3 = arith.muli %c8_i32, %arg1 : i32
    %c0_i32_1 = arith.constant 0 : i32
    %4 = arith.addi %3, %c0_i32_1 : i32
    %5 = arith.index_cast %4 : i32 to index
    %c7 = arith.constant 7 : index
    %c0 = arith.constant 0 : index
    %6 = vector.load %arg10[%5, %c7, %c0] : memref<20x25x128xf32, #tpu.memory_space<vmem>>, vector<10x16x128xf32>
    %7 = vector.shape_cast %6 : vector<10x16x128xf32> to vector<160x128xf32>
    %8 = arith.truncf %7 : vector<160x128xf32> to vector<160x128xbf16>
    %c0_2 = arith.constant 0 : index
    %c0_3 = arith.constant 0 : index
    %c0_4 = arith.constant 0 : index
    %9 = vector.load %arg3[%c0_2, %c0_3, %c0_4] : memref<9x128x128xbf16, #tpu.memory_space<vmem>>, vector<1x128x128xbf16>
    %10 = vector.shape_cast %9 : vector<1x128x128xbf16> to vector<128x128xbf16>
    %cst = arith.constant dense<0.000000e+00> : vector<160x128xf32>
    %11 = tpu.matmul %8, %10, %cst {dimension_numbers = #tpu.dot_dimension_numbers<[1], [0], [0], [1], [0, 0, 1, 1], [], []>} : vector<160x128xbf16>, vector<128x128xbf16>, vector<160x128xf32> -> vector<160x128xf32>
    %c0_i32_5 = arith.constant 0 : i32
    %12 = arith.addi %3, %c0_i32_5 : i32
    %13 = arith.index_cast %12 : i32 to index
    %c8 = arith.constant 8 : index
    %c0_6 = arith.constant 0 : index
    %14 = vector.load %arg10[%13, %c8, %c0_6] : memref<20x25x128xf32, #tpu.memory_space<vmem>>, vector<10x16x128xf32>
    %15 = vector.shape_cast %14 : vector<10x16x128xf32> to vector<160x128xf32>
    %16 = arith.truncf %15 : vector<160x128xf32> to vector<160x128xbf16>
    %c1 = arith.constant 1 : index
    %c0_7 = arith.constant 0 : index
    %c0_8 = arith.constant 0 : index
    %17 = vector.load %arg3[%c1, %c0_7, %c0_8] : memref<9x128x128xbf16, #tpu.memory_space<vmem>>, vector<1x128x128xbf16>
    %18 = vector.shape_cast %17 : vector<1x128x128xbf16> to vector<128x128xbf16>
    %cst_9 = arith.constant dense<0.000000e+00> : vector<160x128xf32>
    %19 = tpu.matmul %16, %18, %cst_9 {dimension_numbers = #tpu.dot_dimension_numbers<[1], [0], [0], [1], [0, 0, 1, 1], [], []>} : vector<160x128xbf16>, vector<128x128xbf16>, vector<160x128xf32> -> vector<160x128xf32>
    %20 = arith.addf %11, %19 : vector<160x128xf32>
    %c0_i32_10 = arith.constant 0 : i32
    %21 = arith.addi %3, %c0_i32_10 : i32
    %22 = arith.index_cast %21 : i32 to index
    %c9 = arith.constant 9 : index
    %c0_11 = arith.constant 0 : index
    %23 = vector.load %arg10[%22, %c9, %c0_11] : memref<20x25x128xf32, #tpu.memory_space<vmem>>, vector<10x16x128xf32>
    %24 = vector.shape_cast %23 : vector<10x16x128xf32> to vector<160x128xf32>
    %25 = arith.truncf %24 : vector<160x128xf32> to vector<160x128xbf16>
    %c2 = arith.constant 2 : index
    %c0_12 = arith.constant 0 : index
    %c0_13 = arith.constant 0 : index
    %26 = vector.load %arg3[%c2, %c0_12, %c0_13] : memref<9x128x128xbf16, #tpu.memory_space<vmem>>, vector<1x128x128xbf16>
    %27 = vector.shape_cast %26 : vector<1x128x128xbf16> to vector<128x128xbf16>
    %cst_14 = arith.constant dense<0.000000e+00> : vector<160x128xf32>
    %28 = tpu.matmul %25, %27, %cst_14 {dimension_numbers = #tpu.dot_dimension_numbers<[1], [0], [0], [1], [0, 0, 1, 1], [], []>} : vector<160x128xbf16>, vector<128x128xbf16>, vector<160x128xf32> -> vector<160x128xf32>
    %29 = arith.addf %20, %28 : vector<160x128xf32>
    %c1_i32 = arith.constant 1 : i32
    %30 = arith.addi %3, %c1_i32 : i32
    %31 = arith.index_cast %30 : i32 to index
    %c7_15 = arith.constant 7 : index
    %c0_16 = arith.constant 0 : index
    %32 = vector.load %arg10[%31, %c7_15, %c0_16] : memref<20x25x128xf32, #tpu.memory_space<vmem>>, vector<10x16x128xf32>
    %33 = vector.shape_cast %32 : vector<10x16x128xf32> to vector<160x128xf32>
    %34 = arith.truncf %33 : vector<160x128xf32> to vector<160x128xbf16>
    %c3 = arith.constant 3 : index
    %c0_17 = arith.constant 0 : index
    %c0_18 = arith.constant 0 : index
    %35 = vector.load %arg3[%c3, %c0_17, %c0_18] : memref<9x128x128xbf16, #tpu.memory_space<vmem>>, vector<1x128x128xbf16>
    %36 = vector.shape_cast %35 : vector<1x128x128xbf16> to vector<128x128xbf16>
    %cst_19 = arith.constant dense<0.000000e+00> : vector<160x128xf32>
    %37 = tpu.matmul %34, %36, %cst_19 {dimension_numbers = #tpu.dot_dimension_numbers<[1], [0], [0], [1], [0, 0, 1, 1], [], []>} : vector<160x128xbf16>, vector<128x128xbf16>, vector<160x128xf32> -> vector<160x128xf32>
    %38 = arith.addf %29, %37 : vector<160x128xf32>
    %c1_i32_20 = arith.constant 1 : i32
    %39 = arith.addi %3, %c1_i32_20 : i32
    %40 = arith.index_cast %39 : i32 to index
    %c8_21 = arith.constant 8 : index
    %c0_22 = arith.constant 0 : index
    %41 = vector.load %arg10[%40, %c8_21, %c0_22] : memref<20x25x128xf32, #tpu.memory_space<vmem>>, vector<10x16x128xf32>
    %42 = vector.shape_cast %41 : vector<10x16x128xf32> to vector<160x128xf32>
    %43 = arith.truncf %42 : vector<160x128xf32> to vector<160x128xbf16>
    %c4 = arith.constant 4 : index
    %c0_23 = arith.constant 0 : index
    %c0_24 = arith.constant 0 : index
    %44 = vector.load %arg3[%c4, %c0_23, %c0_24] : memref<9x128x128xbf16, #tpu.memory_space<vmem>>, vector<1x128x128xbf16>
    %45 = vector.shape_cast %44 : vector<1x128x128xbf16> to vector<128x128xbf16>
    %cst_25 = arith.constant dense<0.000000e+00> : vector<160x128xf32>
    %46 = tpu.matmul %43, %45, %cst_25 {dimension_numbers = #tpu.dot_dimension_numbers<[1], [0], [0], [1], [0, 0, 1, 1], [], []>} : vector<160x128xbf16>, vector<128x128xbf16>, vector<160x128xf32> -> vector<160x128xf32>
    %47 = arith.addf %38, %46 : vector<160x128xf32>
    %c1_i32_26 = arith.constant 1 : i32
    %48 = arith.addi %3, %c1_i32_26 : i32
    %49 = arith.index_cast %48 : i32 to index
    %c9_27 = arith.constant 9 : index
    %c0_28 = arith.constant 0 : index
    %50 = vector.load %arg10[%49, %c9_27, %c0_28] : memref<20x25x128xf32, #tpu.memory_space<vmem>>, vector<10x16x128xf32>
    %51 = vector.shape_cast %50 : vector<10x16x128xf32> to vector<160x128xf32>
    %52 = arith.truncf %51 : vector<160x128xf32> to vector<160x128xbf16>
    %c5 = arith.constant 5 : index
    %c0_29 = arith.constant 0 : index
    %c0_30 = arith.constant 0 : index
    %53 = vector.load %arg3[%c5, %c0_29, %c0_30] : memref<9x128x128xbf16, #tpu.memory_space<vmem>>, vector<1x128x128xbf16>
    %54 = vector.shape_cast %53 : vector<1x128x128xbf16> to vector<128x128xbf16>
    %cst_31 = arith.constant dense<0.000000e+00> : vector<160x128xf32>
    %55 = tpu.matmul %52, %54, %cst_31 {dimension_numbers = #tpu.dot_dimension_numbers<[1], [0], [0], [1], [0, 0, 1, 1], [], []>} : vector<160x128xbf16>, vector<128x128xbf16>, vector<160x128xf32> -> vector<160x128xf32>
    %56 = arith.addf %47, %55 : vector<160x128xf32>
    %c2_i32 = arith.constant 2 : i32
    %57 = arith.addi %3, %c2_i32 : i32
    %58 = arith.index_cast %57 : i32 to index
    %c7_32 = arith.constant 7 : index
    %c0_33 = arith.constant 0 : index
    %59 = vector.load %arg10[%58, %c7_32, %c0_33] : memref<20x25x128xf32, #tpu.memory_space<vmem>>, vector<10x16x128xf32>
    %60 = vector.shape_cast %59 : vector<10x16x128xf32> to vector<160x128xf32>
    %61 = arith.truncf %60 : vector<160x128xf32> to vector<160x128xbf16>
    %c6 = arith.constant 6 : index
    %c0_34 = arith.constant 0 : index
    %c0_35 = arith.constant 0 : index
    %62 = vector.load %arg3[%c6, %c0_34, %c0_35] : memref<9x128x128xbf16, #tpu.memory_space<vmem>>, vector<1x128x128xbf16>
    %63 = vector.shape_cast %62 : vector<1x128x128xbf16> to vector<128x128xbf16>
    %cst_36 = arith.constant dense<0.000000e+00> : vector<160x128xf32>
    %64 = tpu.matmul %61, %63, %cst_36 {dimension_numbers = #tpu.dot_dimension_numbers<[1], [0], [0], [1], [0, 0, 1, 1], [], []>} : vector<160x128xbf16>, vector<128x128xbf16>, vector<160x128xf32> -> vector<160x128xf32>
    %65 = arith.addf %56, %64 : vector<160x128xf32>
    %c2_i32_37 = arith.constant 2 : i32
    %66 = arith.addi %3, %c2_i32_37 : i32
    %67 = arith.index_cast %66 : i32 to index
    %c8_38 = arith.constant 8 : index
    %c0_39 = arith.constant 0 : index
    %68 = vector.load %arg10[%67, %c8_38, %c0_39] : memref<20x25x128xf32, #tpu.memory_space<vmem>>, vector<10x16x128xf32>
    %69 = vector.shape_cast %68 : vector<10x16x128xf32> to vector<160x128xf32>
    %70 = arith.truncf %69 : vector<160x128xf32> to vector<160x128xbf16>
    %c7_40 = arith.constant 7 : index
    %c0_41 = arith.constant 0 : index
    %c0_42 = arith.constant 0 : index
    %71 = vector.load %arg3[%c7_40, %c0_41, %c0_42] : memref<9x128x128xbf16, #tpu.memory_space<vmem>>, vector<1x128x128xbf16>
    %72 = vector.shape_cast %71 : vector<1x128x128xbf16> to vector<128x128xbf16>
    %cst_43 = arith.constant dense<0.000000e+00> : vector<160x128xf32>
    %73 = tpu.matmul %70, %72, %cst_43 {dimension_numbers = #tpu.dot_dimension_numbers<[1], [0], [0], [1], [0, 0, 1, 1], [], []>} : vector<160x128xbf16>, vector<128x128xbf16>, vector<160x128xf32> -> vector<160x128xf32>
    %74 = arith.addf %65, %73 : vector<160x128xf32>
    %c2_i32_44 = arith.constant 2 : i32
    %75 = arith.addi %3, %c2_i32_44 : i32
    %76 = arith.index_cast %75 : i32 to index
    %c9_45 = arith.constant 9 : index
    %c0_46 = arith.constant 0 : index
    %77 = vector.load %arg10[%76, %c9_45, %c0_46] : memref<20x25x128xf32, #tpu.memory_space<vmem>>, vector<10x16x128xf32>
    %78 = vector.shape_cast %77 : vector<10x16x128xf32> to vector<160x128xf32>
    %79 = arith.truncf %78 : vector<160x128xf32> to vector<160x128xbf16>
    %c8_47 = arith.constant 8 : index
    %c0_48 = arith.constant 0 : index
    %c0_49 = arith.constant 0 : index
    %80 = vector.load %arg3[%c8_47, %c0_48, %c0_49] : memref<9x128x128xbf16, #tpu.memory_space<vmem>>, vector<1x128x128xbf16>
    %81 = vector.shape_cast %80 : vector<1x128x128xbf16> to vector<128x128xbf16>
    %cst_50 = arith.constant dense<0.000000e+00> : vector<160x128xf32>
    %82 = tpu.matmul %79, %81, %cst_50 {dimension_numbers = #tpu.dot_dimension_numbers<[1], [0], [0], [1], [0, 0, 1, 1], [], []>} : vector<160x128xbf16>, vector<128x128xbf16>, vector<160x128xf32> -> vector<160x128xf32>
    %83 = arith.addf %74, %82 : vector<160x128xf32>
    %c0_51 = arith.constant 0 : index
    %c0_52 = arith.constant 0 : index
    %84 = vector.load %arg4[%c0_51, %c0_52] : memref<1x128xf32, #tpu.memory_space<vmem>>, vector<1x128xf32>
    %85 = vector.broadcast %84 : vector<1x128xf32> to vector<160x128xf32>
    %86 = arith.addf %83, %85 : vector<160x128xf32>
    %cst_53 = arith.constant 0.000000e+00 : f32
    %87 = vector.broadcast %cst_53 : f32 to vector<160x128xf32>
    %88 = arith.maximumf %86, %87 : vector<160x128xf32>
    %89 = vector.shape_cast %88 : vector<160x128xf32> to vector<10x16x128xf32>
    %90 = arith.truncf %89 : vector<10x16x128xf32> to vector<10x16x128xbf16>
    %c0_54 = arith.constant 0 : index
    %c8_55 = arith.constant 8 : index
    %c0_56 = arith.constant 0 : index
    %91 = vector.load %arg11[%c0_54, %c8_55, %c0_56] : memref<10x25x128xbf16, #tpu.memory_space<vmem>>, vector<10x16x128xbf16>
    tpu.vector_store %arg11[%c0_54, %c8_55, %c0_56], %90 {strides = array<i32>} : memref<10x25x128xbf16, #tpu.memory_space<vmem>>, vector<10x16x128xbf16>,
    %c0_i32_57 = arith.constant 0 : i32
    %92 = arith.cmpi eq, %arg1, %c0_i32_57 : i32
    %93 = arith.extui %92 : i1 to i32
    %c0_i32_58 = arith.constant 0 : i32
    %94 = arith.cmpi ne, %93, %c0_i32_58 : i32
    scf.if %94 {
      %cst_139 = arith.constant 0.000000e+00 : bf16
      %171 = vector.broadcast %cst_139 : bf16 to vector<25x128xbf16>
      %c0_140 = arith.constant 0 : index
      %c0_141 = arith.constant 0 : index
      %c0_142 = arith.constant 0 : index
      %172 = vector.load %arg11[%c0_140, %c0_141, %c0_142] : memref<10x25x128xbf16, #tpu.memory_space<vmem>>, vector<1x25x128xbf16>
      %173 = vector.shape_cast %172 : vector<1x25x128xbf16> to vector<25x128xbf16>
      %174 = vector.shape_cast %171 : vector<25x128xbf16> to vector<1x25x128xbf16>
      tpu.vector_store %arg11[%c0_140, %c0_141, %c0_142], %174 {strides = array<i32>} : memref<10x25x128xbf16, #tpu.memory_space<vmem>>, vector<1x25x128xbf16>,
    } else {
    }
    %c1_i32_59 = arith.constant 1 : i32
    %95 = arith.cmpi eq, %arg1, %c1_i32_59 : i32
    %96 = arith.extui %95 : i1 to i32
    %c0_i32_60 = arith.constant 0 : i32
    %97 = arith.cmpi ne, %96, %c0_i32_60 : i32
    scf.if %97 {
      %c8_i32_139 = arith.constant 8 : i32
      %171 = arith.muli %arg1, %c8_i32_139 : i32
      %c1_i32_140 = arith.constant 1 : i32
      %172 = arith.subi %171, %c1_i32_140 : i32
      %173 = tpu.iota {dimensions = array<i32: 0>} : vector<10x1x1xi32>
      %174 = vector.broadcast %172 : i32 to vector<10x1x1xi32>
      %175 = arith.addi %174, %173 : vector<10x1x1xi32>
      %c16_i32 = arith.constant 16 : i32
      %176 = vector.broadcast %c16_i32 : i32 to vector<10x1x1xi32>
      %177 = arith.cmpi slt, %175, %176 : vector<10x1x1xi32>
      %c0_141 = arith.constant 0 : index
      %c0_142 = arith.constant 0 : index
      %c0_143 = arith.constant 0 : index
      %178 = vector.load %arg11[%c0_141, %c0_142, %c0_143] : memref<10x25x128xbf16, #tpu.memory_space<vmem>>, vector<10x25x128xbf16>
      %cst_144 = arith.constant 0.000000e+00 : bf16
      %179 = vector.shape_cast %177 : vector<10x1x1xi1> to vector<10x1x1xi1>
      %180 = vector.broadcast %179 : vector<10x1x1xi1> to vector<10x25x128xi1>
      %181 = vector.broadcast %cst_144 : bf16 to vector<10x25x128xbf16>
      %182 = arith.select %180, %178, %181 : vector<10x25x128xi1>, vector<10x25x128xbf16>
      %c0_145 = arith.constant 0 : index
      %c0_146 = arith.constant 0 : index
      %c0_147 = arith.constant 0 : index
      %183 = vector.load %arg11[%c0_145, %c0_146, %c0_147] : memref<10x25x128xbf16, #tpu.memory_space<vmem>>, vector<10x25x128xbf16>
      tpu.vector_store %arg11[%c0_145, %c0_146, %c0_147], %182 {strides = array<i32>} : memref<10x25x128xbf16, #tpu.memory_space<vmem>>, vector<10x25x128xbf16>,
    } else {
    }
    %c0_61 = arith.constant 0 : index
    %c7_62 = arith.constant 7 : index
    %c0_63 = arith.constant 0 : index
    %98 = vector.load %arg11[%c0_61, %c7_62, %c0_63] : memref<10x25x128xbf16, #tpu.memory_space<vmem>>, vector<8x16x128xbf16>
    %99 = vector.shape_cast %98 : vector<8x16x128xbf16> to vector<128x128xbf16>
    %c0_64 = arith.constant 0 : index
    %c0_65 = arith.constant 0 : index
    %c0_66 = arith.constant 0 : index
    %100 = vector.load %arg5[%c0_64, %c0_65, %c0_66] : memref<9x128x128xbf16, #tpu.memory_space<vmem>>, vector<1x128x128xbf16>
    %101 = vector.shape_cast %100 : vector<1x128x128xbf16> to vector<128x128xbf16>
    %cst_67 = arith.constant dense<0.000000e+00> : vector<128x128xf32>
    %102 = tpu.matmul %99, %101, %cst_67 {dimension_numbers = #tpu.dot_dimension_numbers<[1], [0], [0], [1], [0, 0, 1, 1], [], []>} : vector<128x128xbf16>, vector<128x128xbf16>, vector<128x128xf32> -> vector<128x128xf32>
    %c0_68 = arith.constant 0 : index
    %c8_69 = arith.constant 8 : index
    %c0_70 = arith.constant 0 : index
    %103 = vector.load %arg11[%c0_68, %c8_69, %c0_70] : memref<10x25x128xbf16, #tpu.memory_space<vmem>>, vector<8x16x128xbf16>
    %104 = vector.shape_cast %103 : vector<8x16x128xbf16> to vector<128x128xbf16>
    %c1_71 = arith.constant 1 : index
    %c0_72 = arith.constant 0 : index
    %c0_73 = arith.constant 0 : index
    %105 = vector.load %arg5[%c1_71, %c0_72, %c0_73] : memref<9x128x128xbf16, #tpu.memory_space<vmem>>, vector<1x128x128xbf16>
    %106 = vector.shape_cast %105 : vector<1x128x128xbf16> to vector<128x128xbf16>
    %cst_74 = arith.constant dense<0.000000e+00> : vector<128x128xf32>
    %107 = tpu.matmul %104, %106, %cst_74 {dimension_numbers = #tpu.dot_dimension_numbers<[1], [0], [0], [1], [0, 0, 1, 1], [], []>} : vector<128x128xbf16>, vector<128x128xbf16>, vector<128x128xf32> -> vector<128x128xf32>
    %108 = arith.addf %102, %107 : vector<128x128xf32>
    %c0_75 = arith.constant 0 : index
    %c9_76 = arith.constant 9 : index
    %c0_77 = arith.constant 0 : index
    %109 = vector.load %arg11[%c0_75, %c9_76, %c0_77] : memref<10x25x128xbf16, #tpu.memory_space<vmem>>, vector<8x16x128xbf16>
    %110 = vector.shape_cast %109 : vector<8x16x128xbf16> to vector<128x128xbf16>
    %c2_78 = arith.constant 2 : index
    %c0_79 = arith.constant 0 : index
    %c0_80 = arith.constant 0 : index
    %111 = vector.load %arg5[%c2_78, %c0_79, %c0_80] : memref<9x128x128xbf16, #tpu.memory_space<vmem>>, vector<1x128x128xbf16>
    %112 = vector.shape_cast %111 : vector<1x128x128xbf16> to vector<128x128xbf16>
    %cst_81 = arith.constant dense<0.000000e+00> : vector<128x128xf32>
    %113 = tpu.matmul %110, %112, %cst_81 {dimension_numbers = #tpu.dot_dimension_numbers<[1], [0], [0], [1], [0, 0, 1, 1], [], []>} : vector<128x128xbf16>, vector<128x128xbf16>, vector<128x128xf32> -> vector<128x128xf32>
    %114 = arith.addf %108, %113 : vector<128x128xf32>
    %c1_82 = arith.constant 1 : index
    %c7_83 = arith.constant 7 : index
    %c0_84 = arith.constant 0 : index
    %115 = vector.load %arg11[%c1_82, %c7_83, %c0_84] : memref<10x25x128xbf16, #tpu.memory_space<vmem>>, vector<8x16x128xbf16>
    %116 = vector.shape_cast %115 : vector<8x16x128xbf16> to vector<128x128xbf16>
    %c3_85 = arith.constant 3 : index
    %c0_86 = arith.constant 0 : index
    %c0_87 = arith.constant 0 : index
    %117 = vector.load %arg5[%c3_85, %c0_86, %c0_87] : memref<9x128x128xbf16, #tpu.memory_space<vmem>>, vector<1x128x128xbf16>
    %118 = vector.shape_cast %117 : vector<1x128x128xbf16> to vector<128x128xbf16>
    %cst_88 = arith.constant dense<0.000000e+00> : vector<128x128xf32>
    %119 = tpu.matmul %116, %118, %cst_88 {dimension_numbers = #tpu.dot_dimension_numbers<[1], [0], [0], [1], [0, 0, 1, 1], [], []>} : vector<128x128xbf16>, vector<128x128xbf16>, vector<128x128xf32> -> vector<128x128xf32>
    %120 = arith.addf %114, %119 : vector<128x128xf32>
    %c1_89 = arith.constant 1 : index
    %c8_90 = arith.constant 8 : index
    %c0_91 = arith.constant 0 : index
    %121 = vector.load %arg11[%c1_89, %c8_90, %c0_91] : memref<10x25x128xbf16, #tpu.memory_space<vmem>>, vector<8x16x128xbf16>
    %122 = vector.shape_cast %121 : vector<8x16x128xbf16> to vector<128x128xbf16>
    %c4_92 = arith.constant 4 : index
    %c0_93 = arith.constant 0 : index
    %c0_94 = arith.constant 0 : index
    %123 = vector.load %arg5[%c4_92, %c0_93, %c0_94] : memref<9x128x128xbf16, #tpu.memory_space<vmem>>, vector<1x128x128xbf16>
    %124 = vector.shape_cast %123 : vector<1x128x128xbf16> to vector<128x128xbf16>
    %cst_95 = arith.constant dense<0.000000e+00> : vector<128x128xf32>
    %125 = tpu.matmul %122, %124, %cst_95 {dimension_numbers = #tpu.dot_dimension_numbers<[1], [0], [0], [1], [0, 0, 1, 1], [], []>} : vector<128x128xbf16>, vector<128x128xbf16>, vector<128x128xf32> -> vector<128x128xf32>
    %126 = arith.addf %120, %125 : vector<128x128xf32>
    %c1_96 = arith.constant 1 : index
    %c9_97 = arith.constant 9 : index
    %c0_98 = arith.constant 0 : index
    %127 = vector.load %arg11[%c1_96, %c9_97, %c0_98] : memref<10x25x128xbf16, #tpu.memory_space<vmem>>, vector<8x16x128xbf16>
    %128 = vector.shape_cast %127 : vector<8x16x128xbf16> to vector<128x128xbf16>
    %c5_99 = arith.constant 5 : index
    %c0_100 = arith.constant 0 : index
    %c0_101 = arith.constant 0 : index
    %129 = vector.load %arg5[%c5_99, %c0_100, %c0_101] : memref<9x128x128xbf16, #tpu.memory_space<vmem>>, vector<1x128x128xbf16>
    %130 = vector.shape_cast %129 : vector<1x128x128xbf16> to vector<128x128xbf16>
    %cst_102 = arith.constant dense<0.000000e+00> : vector<128x128xf32>
    %131 = tpu.matmul %128, %130, %cst_102 {dimension_numbers = #tpu.dot_dimension_numbers<[1], [0], [0], [1], [0, 0, 1, 1], [], []>} : vector<128x128xbf16>, vector<128x128xbf16>, vector<128x128xf32> -> vector<128x128xf32>
    %132 = arith.addf %126, %131 : vector<128x128xf32>
    %c2_103 = arith.constant 2 : index
    %c7_104 = arith.constant 7 : index
    %c0_105 = arith.constant 0 : index
    %133 = vector.load %arg11[%c2_103, %c7_104, %c0_105] : memref<10x25x128xbf16, #tpu.memory_space<vmem>>, vector<8x16x128xbf16>
    %134 = vector.shape_cast %133 : vector<8x16x128xbf16> to vector<128x128xbf16>
    %c6_106 = arith.constant 6 : index
    %c0_107 = arith.constant 0 : index
    %c0_108 = arith.constant 0 : index
    %135 = vector.load %arg5[%c6_106, %c0_107, %c0_108] : memref<9x128x128xbf16, #tpu.memory_space<vmem>>, vector<1x128x128xbf16>
    %136 = vector.shape_cast %135 : vector<1x128x128xbf16> to vector<128x128xbf16>
    %cst_109 = arith.constant dense<0.000000e+00> : vector<128x128xf32>
    %137 = tpu.matmul %134, %136, %cst_109 {dimension_numbers = #tpu.dot_dimension_numbers<[1], [0], [0], [1], [0, 0, 1, 1], [], []>} : vector<128x128xbf16>, vector<128x128xbf16>, vector<128x128xf32> -> vector<128x128xf32>
    %138 = arith.addf %132, %137 : vector<128x128xf32>
    %c2_110 = arith.constant 2 : index
    %c8_111 = arith.constant 8 : index
    %c0_112 = arith.constant 0 : index
    %139 = vector.load %arg11[%c2_110, %c8_111, %c0_112] : memref<10x25x128xbf16, #tpu.memory_space<vmem>>, vector<8x16x128xbf16>
    %140 = vector.shape_cast %139 : vector<8x16x128xbf16> to vector<128x128xbf16>
    %c7_113 = arith.constant 7 : index
    %c0_114 = arith.constant 0 : index
    %c0_115 = arith.constant 0 : index
    %141 = vector.load %arg5[%c7_113, %c0_114, %c0_115] : memref<9x128x128xbf16, #tpu.memory_space<vmem>>, vector<1x128x128xbf16>
    %142 = vector.shape_cast %141 : vector<1x128x128xbf16> to vector<128x128xbf16>
    %cst_116 = arith.constant dense<0.000000e+00> : vector<128x128xf32>
    %143 = tpu.matmul %140, %142, %cst_116 {dimension_numbers = #tpu.dot_dimension_numbers<[1], [0], [0], [1], [0, 0, 1, 1], [], []>} : vector<128x128xbf16>, vector<128x128xbf16>, vector<128x128xf32> -> vector<128x128xf32>
    %144 = arith.addf %138, %143 : vector<128x128xf32>
    %c2_117 = arith.constant 2 : index
    %c9_118 = arith.constant 9 : index
    %c0_119 = arith.constant 0 : index
    %145 = vector.load %arg11[%c2_117, %c9_118, %c0_119] : memref<10x25x128xbf16, #tpu.memory_space<vmem>>, vector<8x16x128xbf16>
    %146 = vector.shape_cast %145 : vector<8x16x128xbf16> to vector<128x128xbf16>
    %c8_120 = arith.constant 8 : index
    %c0_121 = arith.constant 0 : index
    %c0_122 = arith.constant 0 : index
    %147 = vector.load %arg5[%c8_120, %c0_121, %c0_122] : memref<9x128x128xbf16, #tpu.memory_space<vmem>>, vector<1x128x128xbf16>
    %148 = vector.shape_cast %147 : vector<1x128x128xbf16> to vector<128x128xbf16>
    %cst_123 = arith.constant dense<0.000000e+00> : vector<128x128xf32>
    %149 = tpu.matmul %146, %148, %cst_123 {dimension_numbers = #tpu.dot_dimension_numbers<[1], [0], [0], [1], [0, 0, 1, 1], [], []>} : vector<128x128xbf16>, vector<128x128xbf16>, vector<128x128xf32> -> vector<128x128xf32>
    %150 = arith.addf %144, %149 : vector<128x128xf32>
    %c0_124 = arith.constant 0 : index
    %c0_125 = arith.constant 0 : index
    %151 = vector.load %arg6[%c0_124, %c0_125] : memref<1x128xf32, #tpu.memory_space<vmem>>, vector<1x128xf32>
    %152 = vector.broadcast %151 : vector<1x128xf32> to vector<128x128xf32>
    %153 = arith.addf %150, %152 : vector<128x128xf32>
    %c2_i32_126 = arith.constant 2 : i32
    %154 = arith.addi %c2_i32_126, %3 : i32
    %155 = arith.index_cast %154 : i32 to index
    %c8_127 = arith.constant 8 : index
    %c0_128 = arith.constant 0 : index
    %156 = vector.load %arg10[%155, %c8_127, %c0_128] : memref<20x25x128xf32, #tpu.memory_space<vmem>>, vector<8x16x128xf32>
    %157 = vector.shape_cast %156 : vector<8x16x128xf32> to vector<128x128xf32>
    %158 = arith.truncf %157 : vector<128x128xf32> to vector<128x128xbf16>
    %c0_129 = arith.constant 0 : index
    %c0_130 = arith.constant 0 : index
    %159 = vector.load %arg7[%c0_129, %c0_130] : memref<128x128xbf16, #tpu.memory_space<vmem>>, vector<128x128xbf16>
    %cst_131 = arith.constant dense<0.000000e+00> : vector<128x128xf32>
    %160 = tpu.matmul %158, %159, %cst_131 {dimension_numbers = #tpu.dot_dimension_numbers<[1], [0], [0], [1], [0, 0, 1, 1], [], []>} : vector<128x128xbf16>, vector<128x128xbf16>, vector<128x128xf32> -> vector<128x128xf32>
    %c0_132 = arith.constant 0 : index
    %c0_133 = arith.constant 0 : index
    %161 = vector.load %arg8[%c0_132, %c0_133] : memref<1x128xf32, #tpu.memory_space<vmem>>, vector<1x128xf32>
    %162 = vector.broadcast %161 : vector<1x128xf32> to vector<128x128xf32>
    %163 = arith.addf %160, %162 : vector<128x128xf32>
    %164 = arith.addf %153, %163 : vector<128x128xf32>
    %cst_134 = arith.constant 0.000000e+00 : f32
    %165 = vector.broadcast %cst_134 : f32 to vector<128x128xf32>
    %166 = arith.maximumf %164, %165 : vector<128x128xf32>
    %167 = vector.shape_cast %166 : vector<128x128xf32> to vector<8x16x128xf32>
    %c0_135 = arith.constant 0 : index
    %c0_136 = arith.constant 0 : index
    %c0_137 = arith.constant 0 : index
    %c0_138 = arith.constant 0 : index
    %168 = vector.load %arg9[%c0_135, %c0_136, %c0_137, %c0_138] : memref<1x8x16x128xf32, #tpu.memory_space<vmem>>, vector<1x8x16x128xf32>
    %169 = vector.shape_cast %168 : vector<1x8x16x128xf32> to vector<8x16x128xf32>
    %170 = vector.shape_cast %167 : vector<8x16x128xf32> to vector<1x8x16x128xf32>
    tpu.vector_store %arg9[%c0_135, %c0_136, %c0_137, %c0_138], %170 {strides = array<i32>} : memref<1x8x16x128xf32, #tpu.memory_space<vmem>>, vector<1x8x16x128xf32>,
    return
  }
  func.func @transform_0(%arg0: i32, %arg1: i32) -> (i32, i32, i32, i32) {
    %c0_i32 = arith.constant 0 : i32
    %c0_i32_0 = arith.constant 0 : i32
    %c0_i32_1 = arith.constant 0 : i32
    %c0_i32_2 = arith.constant 0 : i32
    return %arg0, %c0_i32, %c0_i32_0, %c0_i32_1 : i32, i32, i32, i32
  }
  func.func @transform_1(%arg0: i32, %arg1: i32) -> (i32, i32, i32) {
    %c0_i32 = arith.constant 0 : i32
    %c0_i32_0 = arith.constant 0 : i32
    %c0_i32_1 = arith.constant 0 : i32
    %c0_i32_2 = arith.constant 0 : i32
    return %c0_i32, %c0_i32_0, %c0_i32_1 : i32, i32, i32
  }
  func.func @transform_2(%arg0: i32, %arg1: i32) -> (i32, i32) {
    %c0_i32 = arith.constant 0 : i32
    %c0_i32_0 = arith.constant 0 : i32
    %c0_i32_1 = arith.constant 0 : i32
    return %c0_i32, %c0_i32_0 : i32, i32
  }
  func.func @transform_3(%arg0: i32, %arg1: i32) -> (i32, i32, i32) {
    %c0_i32 = arith.constant 0 : i32
    %c0_i32_0 = arith.constant 0 : i32
    %c0_i32_1 = arith.constant 0 : i32
    %c0_i32_2 = arith.constant 0 : i32
    return %c0_i32, %c0_i32_0, %c0_i32_1 : i32, i32, i32
  }
  func.func @transform_4(%arg0: i32, %arg1: i32) -> (i32, i32) {
    %c0_i32 = arith.constant 0 : i32
    %c0_i32_0 = arith.constant 0 : i32
    %c0_i32_1 = arith.constant 0 : i32
    return %c0_i32, %c0_i32_0 : i32, i32
  }
  func.func @transform_5(%arg0: i32, %arg1: i32) -> (i32, i32) {
    %c0_i32 = arith.constant 0 : i32
    %c0_i32_0 = arith.constant 0 : i32
    %c0_i32_1 = arith.constant 0 : i32
    return %c0_i32, %c0_i32_0 : i32, i32
  }
  func.func @transform_6(%arg0: i32, %arg1: i32) -> (i32, i32) {
    %c0_i32 = arith.constant 0 : i32
    %c0_i32_0 = arith.constant 0 : i32
    %c0_i32_1 = arith.constant 0 : i32
    return %c0_i32, %c0_i32_0 : i32, i32
  }
  func.func @transform_7(%arg0: i32, %arg1: i32) -> (i32, i32, i32, i32) {
    %c0_i32 = arith.constant 0 : i32
    %c0_i32_0 = arith.constant 0 : i32
    %c0_i32_1 = arith.constant 0 : i32
    return %arg0, %arg1, %c0_i32, %c0_i32_0 : i32, i32, i32, i32
  }
}

</mosaic_0001>

<bundles_post_ra>
// kernel: tpu_custom_call.1
= control target key start
LH: loop header
LB: loop body
LE: loop exit
PB: predicated region body
PF: predicated region fallthrough
CT: control target
= control target key end

     0   :  { %12 = vsyncpa [#allocation5], 0  ;;  %s10404_s0 = inlined_call_operand.hbm [shape: f32[2,16,16,128], index: 0, kind: input, shape index: {}]   ;;  %s10405_s1 = inlined_call_operand.hbm [shape: bf16[9,128,128], index: 1, kind: input, shape index: {}]   ;;  %s10406_s2 = inlined_call_operand.vmem [shape: f32[1,128], index: 2, kind: input, shape index: {}]   ;;  %s10407_s3 = inlined_call_operand.hbm [shape: bf16[9,128,128], index: 3, kind: input, shape index: {}]   ;;  %s10408_s4 = inlined_call_operand.vmem [shape: f32[1,128], index: 4, kind: input, shape index: {}]   ;;  %s10409_s5 = inlined_call_operand.hbm [shape: bf16[128,128], index: 5, kind: input, shape index: {}]   ;;  %s10410_s6 = inlined_call_operand.vmem [shape: f32[1,128], index: 6, kind: input, shape index: {}]   ;;  %s10411_s7 = inlined_call_operand.hbm [shape: f32[2,16,16,128], index: 7, kind: output, shape index: {}]  }
   0x1   :  { %13 = vsyncpa [#allocation8], 0 }
   0x2   :  { %14 = vsyncpa [#allocation11], 0 }
   0x3   :  { %15 = vsyncpa [#allocation6], 0 }
   0x4   :  { %17 = vsyncpa [#allocation6 + $0x1], 0  ;;  %s8485_s24 = smov 0   ;;  %s8487_s25 = smov 0  }
   0x5   :  { %s8489_s26 = smov 0   ;;  %s8491_s27 = smov 0  }
   0x6   :  { %s8493_s28 = smov 0   ;;  %s8495_s29 = smov 0  }
   0x7   :  { %s8497_s30 = smov 0   ;;  %s8499_s8 = smov 0  }
   0x8   :  { %s8501_s9 = smov 0   ;;  %s8503_s10 = smov 0  }
   0x9   :  { %s8505_s11 = smov 0  }
   0xa LB: > { %10431 = sst [smem:[#allocation17_spill]] %s8397_s26  ;;  %s6434_s12 = sadd.s32 4294967295, %s8429_s11   ;;  %s8429_s11 = sphi %s8505_s11, %s23_s11   ;;  %s8425_s10 = sphi %s8503_s10, %s10502_s10   ;;  %s8421_s9 = sphi %s8501_s9, %s10501_s9   ;;  %s8417_s8 = sphi %s8499_s8, %s10500_s8   ;;  %s8413_s30 = sphi %s8497_s30, %s10499_s30   ;;  %s8409_s29 = sphi %s8495_s29, %s10498_s29   ;;  %s8405_s28 = sphi %s8493_s28, %s10497_s28   ;;  %s8401_s27 = sphi %s8491_s27, %s10496_s27   ;;  %s8397_s26 = sphi %s8489_s26, %s10495_s26   ;;  %s8393_s25 = sphi %s8487_s25, %s10504_s25   ;;  %s8389_s24 = sphi %s8485_s24, %s10503_s24  }
   0xb   : > { %10432 = sst [smem:[#allocation18_spill]] %s8405_s28  ;;  %s6435_s13 = sadd.s32 4294967294, %s8429_s11  }
   0xc   : > { %10433 = sst [smem:[#allocation19_spill]] %s8409_s29  ;;  %s32_s14 = sadd.s32 1, %s8421_s9 }
   0xd   : > { %10434 = sst [smem:[#allocation20_spill]] %s8421_s9  ;;  %s35_s15 = sadd.s32 1, %s8425_s10 }
   0xe   : > { %10435 = sst [smem:[#allocation21_spill]] %s8425_s10  ;;  %p33_p0 = scmp.ge.s32.totalorder %s32_s14, 2 }
   0xf   : > { %s42_s16 = sadd.s32 1, %s8409_s29  ;;  %p55_p1 = scmp.ne.s32.totalorder %s8405_s28, %s8401_s27 }
  0x10   : > { %p8544_p2 = scmp.eq.s32.totalorder %s6434_s12, 0  ;;  %s10506_s14 = smov (%p33_p0, %s32_s14), 0 }
  0x11   : > { %10437 = sst [smem:[#allocation22_spill]] %s10506_s14  ;;  %s10508_s15 = smov (!%p33_p0, %s35_s15), %s8425_s10 }
  0x12   : > { %s10436_s17 = scalar_select %p8544_p2, 1, 0 }
  0x13   : > { %p8553_p3 = por %p8544_p2, %p55_p1  ;;  %s192_s19 = ssub.s32 %s8421_s9, %s10506_s14 }
  0x14   : > { %p37_p4 = scmp.ge.s32.totalorder %s10508_s15, 2  ;;  %s196_s20 = sadd.s32 1, %s8397_s26 }
  0x15   : > { %s10438_s18 = scalar_select %p8553_p3, 1, 0 }
  0x16   : > { %p206_p5 = scmp.ne.s32.totalorder %s8397_s26, %s8393_s25  ;;  %p207_p6 = scmp.eq.s32.totalorder %s6434_s12, 3 }
  0x17   : > { %s10510_s15 = smov (%p37_p4, %s10508_s15), 0  ;;  %p212_p8 = scmp.ne.s32.totalorder %s8393_s25, %s8389_s24 }
  0x18   : > { %10439 = sst [smem:[#allocation23_spill]] %s10510_s15  ;;  %p8564_p7 = por %p207_p6, %p206_p5 }
  0x19   : > { %s39_s22 = ssub.s32 %s8425_s10, %s10510_s15  ;;  %p213_p9 = scmp.eq.s32.totalorder %s6435_s13, 3 }
  0x1a   : > { %s10440_s21 = scalar_select %p8564_p7, 1, 0 }
  0x1b   : > { %p40_p10 = scmp.eq.s32.totalorder %s39_s22, 0  ;;  %s193_s23 = sor.u32 %s192_s19, %s39_s22 }
  0x1c   : > { %p194_p11 = scmp.eq.s32.totalorder %s193_s23, 0  ;;  %p8572_p12 = por %p213_p9, %p212_p8 }
  0x1d   : > { %s8577_s12 = scalar_select %p40_p10, %s8409_s29, %s42_s16  }
  0x1e   : > { %s10441_s27 = scalar_select %p8572_p12, 1, 0 }
  0x1f   : > { %10443 = sst [smem:[#allocation25_spill]] %s8577_s12  ;;  %p6436_p13 = scmp.ge.s32.totalorder %s8429_s11, 1 }
  0x20   : > { %10442 = sst [smem:[#allocation24_spill]] %s10441_s27  ;;  %p220_p0 = scmp.lt.s32.totalorder %s8429_s11, 5 }
  0x21   : > { %s8580_s14 = scalar_select %p194_p11, %s8397_s26, %s196_s20  }
  0x22   : > { %p8584_p1 = pnand %p6436_p13, %p220_p0  ;;  %s8431_s15 = smov [#allocation7]  }
  0x23   : > { %10444 = sst [smem:[#allocation26_spill]] %s8580_s14  ;;  %s248_s13 = sshll.u32 %s8431_s15, 4  ;;  %s249_s13 = int_to_ptr.vmem [resolvable:$true] %s248_s13 }
  0x24   : > { %s10445_s9 = scalar_select %p8584_p1, 1, 0 }
  0x25   : > { %p7894_p4 = pneg %p8584_p1  ;;  %s8206_s20 = scalar_lea.vmem %s249_s13, 9216 }
  0x26   : > { %p8207_p9 = scmp.ne.s32.totalorder %s249_s13, %s8206_s20  ;;  %p8214_p13 = scmp.lt.s32.totalorder %s249_s13, %s249_s13 }
  0x27   : > { %p8592_p5 = pnand %p7894_p4, %p8553_p3  ;;  %p8598_p6 = pnand %p7894_p4, %p8544_p2 }
  0x28   : > { %p8215_p0 = scmp.lt.s32.totalorder %s8206_s20, %s8206_s20 }
  0x29   : > { %s10447_s16 = scalar_select %p8598_p6, 1, 0 }
  0x2a   : > { %p10423_p8 = pneg %p8598_p6  ;;  %p8216_p12 = por %p8215_p0, %p8214_p13 }
  0x2c   : > { %p8209_p10 = pnand %p8207_p9, %p10423_p8 }
  0x2e   : > { %p8210_p11 = pneg %p8209_p10 }
  0x30   : > { %p8217_p7 = pnand %p8216_p12, %p8210_p11 }
  0x32   : > { %8220 = shalt.err (!%p8217_p7)
}
  0x33   : > { %s10421_s15 = smov 64   ;;  %s8433_s22 = smov 4  }
  0x34   : > { %7900 = dma.hbm_to_vmem [thread:$0]  (!%p8598_p6), %s10405_s1, 9216, %s249_s13, [#allocation8], %s10421_s15, %s10421_s15, %s8433_s22  }
  0x35   : > { %s6871_s12 = sshll.u32 %s8417_s8, 12  ;;  %s8434_s14 = smov [#allocation4]  }
  0x36   : > { %s8619_s20 = scalar_lea.hbm %s10404_s0, %s6871_s12  ;;  %s235_s26 = sshll.u32 %s8434_s14, 4  ;;  %s236_s26 = int_to_ptr.vmem [resolvable:$true] %s235_s26 }
  0x37   : > { %s8221_s27 = scalar_lea.hbm %s8619_s20, 4096  ;;  %p8223_p12 = pneg %p8592_p5 }
  0x38   : > { %p8222_p7 = scmp.ne.s32.totalorder %s8619_s20, %s8221_s27  ;;  %s8226_s23 = scalar_lea.hbm %s10404_s0, 8192 }
  0x39   : > { %p8227_p10 = scmp.lt.s32.totalorder %s8619_s20, %s10404_s0  ;;  %p8228_p11 = scmp.lt.s32.totalorder %s8226_s23, %s8221_s27 }
  0x3a   : > { %p8224_p4 = pnand %p8223_p12, %p8222_p7 }
  0x3b   : > { %p8229_p13 = por %p8228_p11, %p8227_p10 }
  0x3c   : > { %p8225_p9 = pneg %p8224_p4 }
  0x3e   : > { %p8230_p0 = pnand %p8229_p13, %p8225_p9 }
  0x40   : > { %8233 = shalt.err (!%p8230_p0)
}
  0x41   : > { %s8234_s29 = scalar_lea.vmem %s236_s26, 4096  ;;  %p8242_p1 = scmp.lt.s32.totalorder %s236_s26, %s236_s26 }
  0x42   : > { %p8235_p8 = scmp.ne.s32.totalorder %s236_s26, %s8234_s29  ;;  %p8243_p6 = scmp.lt.s32.totalorder %s8234_s29, %s8234_s29 }
  0x44   : > { %p8237_p2 = pnand %p8235_p8, %p8223_p12  ;;  %p8244_p7 = por %p8243_p6, %p8242_p1 }
  0x46   : > { %p8238_p3 = pneg %p8237_p2 }
  0x48   : > { %p8245_p4 = pnand %p8244_p7, %p8238_p3 }
  0x4a   : > { %8248 = shalt.err (!%p8245_p4)
}
  0x4b   : > { %s8435_s14 = smov 128   ;;  %s8436_s12 = smov 8  }
  0x4c   : > { %7897 = dma.hbm_to_vmem [thread:$0]  (!%p8592_p5), %s8619_s20, 4096, %s236_s26, [#allocation5], %s8435_s14, %s8435_s14, %s8436_s12  }
  0x4d   : > { %s8437_s27 = smov [#allocation9]   ;;  %s8438_s10 = smov [#allocation10]  }
  0x4e   : > { %s264_s15 = sshll.u32 %s8437_s27, 4  ;;  %s280_s13 = sshll.u32 %s8438_s10, 4  ;;  %s265_s15 = int_to_ptr.vmem [resolvable:$true] %s264_s15  ;;  %s281_s13 = int_to_ptr.vmem [resolvable:$true] %s280_s13 }
  0x4f   : > { %s8260_s23 = scalar_lea.vmem %s265_s15, 9216  ;;  %p10448_p2 = scmp.ne.s32.totalorder %s10447_s16, 0 }
  0x50   : > { %p8261_p8 = scmp.ne.s32.totalorder %s265_s15, %s8260_s23  ;;  %p8268_p3 = scmp.lt.s32.totalorder %s265_s15, %s265_s15 }
  0x51   : > { %p10449_p12 = pneg %p10448_p2  ;;  %p8269_p6 = scmp.lt.s32.totalorder %s8260_s23, %s8260_s23 }
  0x53   : > { %p8263_p9 = pnand %p8261_p8, %p10449_p12  ;;  %p8270_p10 = por %p8269_p6, %p8268_p3 }
  0x55   : > { %p8264_p1 = pneg %p8263_p9 }
  0x57   : > { %p8271_p11 = pnand %p8270_p10, %p8264_p1 }
  0x59   : > { %8274 = shalt.err (!%p8271_p11)
}
  0x5a   : > { %s10450_s26 = smov 64   ;;  %s8286_s28 = scalar_lea.vmem %s281_s13, 1024 }
  0x5b   : > { %7903 = dma.hbm_to_vmem [thread:$0]  (!%p10448_p2), %s10407_s3, 9216, %s265_s15, [#allocation8], %s10450_s26, %s10450_s26, %s8433_s22  }
  0x5c   : > { %p8287_p5 = scmp.ne.s32.totalorder %s281_s13, %s8286_s28  ;;  %p10451_p13 = pmov %p10449_p12 }
  0x5d   : > { %p8294_p4 = scmp.lt.s32.totalorder %s281_s13, %s281_s13  ;;  %p8295_p8 = scmp.lt.s32.totalorder %s8286_s28, %s8286_s28 }
  0x5e   : > { %p8289_p0 = pnand %p8287_p5, %p10451_p13 }
  0x5f   : > { %p8296_p12 = por %p8295_p8, %p8294_p4 }
  0x60   : > { %p8290_p7 = pneg %p8289_p0 }
  0x62   : > { %p8297_p9 = pnand %p8296_p12, %p8290_p7 }
  0x64   : > { %8300 = shalt.err (!%p8297_p9)
}
  0x65   : > { %7906 = dma.hbm_to_vmem [thread:$0]  (!%p10448_p2), %s10409_s5, 1024, %s281_s13, [#allocation11], %s10450_s26, %s10450_s26, %s8433_s22  }
  0x66   : > { %p10452_p1 = scmp.ne.s32.totalorder %s10445_s9, 0 }
  0x68   : > { %299 = sbr.rel (%p10452_p1) target bundleno = 1147 (0x47b), region = 48 }
  0x6d   : > { %p10453_p3 = scmp.ne.s32.totalorder %s10438_s18, 0 }
  0x6f   : > { %8372 = dma.done.wait (%p10453_p3), [#allocation5], 4096  }
  0x70   : > { %8374 = vsyncadd (%p10453_p3), [#allocation5], 4294963200  ;;  %p10454_p6 = scmp.ne.s32.totalorder %s10436_s17, 0 }
  0x72   : > { %8376 = dma.done.wait (%p10454_p6), [#allocation8], 18432  }
  0x73   : > { %8378 = vsyncadd (%p10454_p6), [#allocation8], 4294948864 }
  0x74   : > { %8380 = dma.done.wait (%p10454_p6), [#allocation11], 1024  }
  0x75   : > { %8382 = vsyncadd (%p10454_p6), [#allocation11], 4294966272  ;;  %s335_s9 = sand.u32 1, %s8393_s25   ;;  %p6447_p2 = scmp.ne.s32.totalorder %s8413_s30, 0 }
  0x76   : > { %s6446_s16 = sshll.u32 %s335_s9, 7 }
  0x77   : > { %s8674_s22 = scalar_lea.vmem [#allocation12], %s6446_s16  ;;  %343 = sbr.rel (%p6447_p2) target bundleno = 178 (0xb2), region = 68 }
  0x7c   : > { %v401_v0 = vld [vmem:[#allocation4] sm:$0xff]  ;;  %v402_v1 = vld [vmem:[#allocation4 + $0x8] sm:$0xff]  ;;  %v403_v2 = vld [vmem:[#allocation4 + $0x10] sm:$0xff]  ;;  %v8439_v3 = vmov 0.0   ;;  %v8440_v7 = vmov 0   ;;  %vm476_vm0 = vcmask 1040384  }
  0x7d   : > { %345 = vst [vmem:[#allocation2 + $0x8] sm:$0xff] %v8439_v3  ;;  %346 = vst [vmem:[#allocation2 + $0x10] sm:$0xff] %v8439_v3  ;;  %v404_v4 = vld [vmem:[#allocation4 + $0x18] sm:$0xff]  ;;  %v405_v5 = vld [vmem:[#allocation4 + $0x20] sm:$0xff]  ;;  %vm477_vm1 = vsmask.f32 256 }
  0x7e   : > { %347 = vst [vmem:[#allocation2 + $0x18] sm:$0x1] %v8439_v3  ;;  %349 = vst [vmem:[#allocation2 + $0x28] sm:$0xff] %v8439_v3  ;;  %v406_v6 = vld [vmem:[#allocation4 + $0x28] sm:$0xff]  ;;  %v407_v8 = vld [vmem:[#allocation4 + $0x30] sm:$0xff] }
  0x7f   : > { %350 = vst [vmem:[#allocation2 + $0x30] sm:$0xff] %v8439_v3  ;;  %351 = vst [vmem:[#allocation2 + $0x38] sm:$0x1] %v8439_v3  ;;  %v408_v9 = vld [vmem:[#allocation4 + $0x38] sm:$0xff]  ;;  %v409_v10 = vld [vmem:[#allocation4 + $0x40] sm:$0xff] }
  0x80   : > { %354 = vst [vmem:[#allocation2 + $0x248] sm:$0xff] %v8439_v3  ;;  %355 = vst [vmem:[#allocation2 + $0x250] sm:$0xff] %v8439_v3  ;;  %v410_v11 = vld [vmem:[#allocation4 + $0x48] sm:$0xff]  ;;  %v411_v12 = vld [vmem:[#allocation4 + $0x50] sm:$0xff] }
  0x81   : > { %356 = vst [vmem:[#allocation2 + $0x258] sm:$0x1] %v8439_v3  ;;  %358 = vst [vmem:[#allocation2 + $0x268] sm:$0xff] %v8439_v3  ;;  %v412_v13 = vld [vmem:[#allocation4 + $0x58] sm:$0xff]  ;;  %v413_v14 = vld [vmem:[#allocation4 + $0x60] sm:$0xff] }
  0x82   : > { %359 = vst [vmem:[#allocation2 + $0x270] sm:$0xff] %v8439_v3  ;;  %360 = vst [vmem:[#allocation2 + $0x278] sm:$0x1] %v8439_v3  ;;  %v414_v15 = vld [vmem:[#allocation4 + $0x68] sm:$0xff]  ;;  %v415_v16 = vld [vmem:[#allocation4 + $0x70] sm:$0xff] }
  0x83   : > { %361 = vst [vmem:[#allocation2] sm:$0xff] %v8439_v3  ;;  %363 = vst [vmem:[#allocation2 + $0x40] sm:$0xff] %v8439_v3  ;;  %v416_v17 = vld [vmem:[#allocation4 + $0x78] sm:$0xff]  ;;  %v417_v18 = vld [vmem:[#allocation4 + $0x80] sm:$0xff] }
  0x84   : > { %364 = vst [vmem:[#allocation2 + $0x60] sm:$0xff] %v8439_v3  ;;  %365 = vst [vmem:[#allocation2 + $0x80] sm:$0xff] %v8439_v3  ;;  %v418_v19 = vld [vmem:[#allocation4 + $0x88] sm:$0xff]  ;;  %v419_v20 = vld [vmem:[#allocation4 + $0x90] sm:$0xff] }
  0x85   : > { %366 = vst [vmem:[#allocation2 + $0xa0] sm:$0xff] %v8439_v3  ;;  %367 = vst [vmem:[#allocation2 + $0xc0] sm:$0xff] %v8439_v3  ;;  %v420_v21 = vld [vmem:[#allocation4 + $0x98] sm:$0xff]  ;;  %v421_v22 = vld [vmem:[#allocation4 + $0xa0] sm:$0xff] }
  0x86   : > { %368 = vst [vmem:[#allocation2 + $0xe0] sm:$0xff] %v8439_v3  ;;  %369 = vst [vmem:[#allocation2 + $0x100] sm:$0xff] %v8439_v3  ;;  %v422_v23 = vld [vmem:[#allocation4 + $0xa8] sm:$0xff]  ;;  %v423_v24 = vld [vmem:[#allocation4 + $0xb0] sm:$0xff] }
  0x87   : > { %370 = vst [vmem:[#allocation2 + $0x120] sm:$0xff] %v8439_v3  ;;  %371 = vst [vmem:[#allocation2 + $0x140] sm:$0xff] %v8439_v3  ;;  %v424_v25 = vld [vmem:[#allocation4 + $0xb8] sm:$0xff]  ;;  %v425_v26 = vld [vmem:[#allocation4 + $0xc0] sm:$0xff] }
  0x88   : > { %372 = vst [vmem:[#allocation2 + $0x160] sm:$0xff] %v8439_v3  ;;  %373 = vst [vmem:[#allocation2 + $0x180] sm:$0xff] %v8439_v3  ;;  %v426_v27 = vld [vmem:[#allocation4 + $0xc8] sm:$0xff]  ;;  %v427_v28 = vld [vmem:[#allocation4 + $0xd0] sm:$0xff] }
  0x89   : > { %374 = vst [vmem:[#allocation2 + $0x1a0] sm:$0xff] %v8439_v3  ;;  %375 = vst [vmem:[#allocation2 + $0x1c0] sm:$0xff] %v8439_v3  ;;  %v428_v29 = vld [vmem:[#allocation4 + $0xd8] sm:$0xff]  ;;  %v429_v30 = vld [vmem:[#allocation4 + $0xe0] sm:$0xff] }
  0x8a   : > { %376 = vst [vmem:[#allocation2 + $0x1e0] sm:$0xff] %v8439_v3  ;;  %377 = vst [vmem:[#allocation2 + $0x200] sm:$0xff] %v8439_v3  ;;  %v430_v31 = vld [vmem:[#allocation4 + $0xe8] sm:$0xff]  ;;  %v431_v32 = vld [vmem:[#allocation4 + $0xf0] sm:$0xff] }
  0x8b   : > { %378 = vst [vmem:[#allocation2 + $0x220] sm:$0xff] %v8439_v3  ;;  %383 = vst [vmem:[#allocation2 + $0x58] sm:$0x1] %v8439_v3  ;;  %v432_v33 = vld [vmem:[#allocation4 + $0xf8] sm:$0xff]  ;;  %v479_v35 = vld [vmem:[#allocation3 + $0xc] sm:$0x1] }
  0x8c   : > { %384 = vst [vmem:[#allocation2 + $0x78] sm:$0x1] %v8439_v3  ;;  %385 = vst [vmem:[#allocation2 + $0x98] sm:$0x1] %v8439_v3  ;;  %v482_v36 = vld [vmem:[#allocation3 + $0x1c] sm:$0x1] }
  0x8d   : > { %386 = vst [vmem:[#allocation2 + $0xb8] sm:$0x1] %v8439_v3  ;;  %387 = vst [vmem:[#allocation2 + $0xd8] sm:$0x1] %v8439_v3  ;;  %v485_v37 = vld [vmem:[#allocation3 + $0x2c] sm:$0x1] }
  0x8e   : > { %388 = vst [vmem:[#allocation2 + $0xf8] sm:$0x1] %v8439_v3  ;;  %389 = vst [vmem:[#allocation2 + $0x118] sm:$0x1] %v8439_v3  ;;  %v488_v41 = vld [vmem:[#allocation3 + $0x3c] sm:$0x1] }
  0x8f   : > { %390 = vst [vmem:[#allocation2 + $0x138] sm:$0x1] %v8439_v3  ;;  %391 = vst [vmem:[#allocation2 + $0x158] sm:$0x1] %v8439_v3  ;;  %v491_v43 = vld [vmem:[#allocation3 + $0x4c] sm:$0x1] }
  0x90   : > { %392 = vst [vmem:[#allocation2 + $0x178] sm:$0x1] %v8439_v3  ;;  %393 = vst [vmem:[#allocation2 + $0x198] sm:$0x1] %v8439_v3  ;;  %v494_v44 = vld [vmem:[#allocation3 + $0x5c] sm:$0x1] }
  0x91   : > { %394 = vst [vmem:[#allocation2 + $0x1b8] sm:$0x1] %v8439_v3  ;;  %395 = vst [vmem:[#allocation2 + $0x1d8] sm:$0x1] %v8439_v3  ;;  %v497_v47 = vld [vmem:[#allocation3 + $0x6c] sm:$0x1] }
  0x92   : > { %396 = vst [vmem:[#allocation2 + $0x1f8] sm:$0x1] %v8439_v3  ;;  %397 = vst [vmem:[#allocation2 + $0x218] sm:$0x1] %v8439_v3  ;;  %v500_v48 = vld [vmem:[#allocation3 + $0x7c] sm:$0x1] }
  0x93   : > { %398 = vst [vmem:[#allocation2 + $0x238] sm:$0x1] %v8439_v3  ;;  %362 = vst [vmem:[#allocation2 + $0x20] sm:$0xff] %v8439_v3  ;;  %v503_v51 = vld [vmem:[#allocation3 + $0x8c] sm:$0x1] }
  0x94   : > { %379 = vst [vmem:[#allocation2 + $0x240] sm:$0xff] %v8439_v3  ;;  %380 = vst [vmem:[#allocation2 + $0x260] sm:$0xff] %v8439_v3  ;;  %v506_v52 = vld [vmem:[#allocation3 + $0x9c] sm:$0x1] }
  0x95   : > { %434 = vst [vmem:[#allocation2 + $0x48] sm:$0xff] %v401_v0  ;;  %435 = vst [vmem:[#allocation2 + $0x50] sm:$0xff] %v402_v1 }
  0x96   : > { %436 = vst [vmem:[#allocation2 + $0x68] sm:$0xff] %v403_v2  ;;  %466 = vst [vmem:[#allocation3] sm:$0xf] %v8440_v7 }
  0x97   : > { %467 = vst [vmem:[#allocation3 + $0x10] sm:$0xf] %v8440_v7  ;;  %468 = vst [vmem:[#allocation3 + $0x20] sm:$0xf] %v8440_v7 }
  0x98   : > { %469 = vst [vmem:[#allocation3 + $0x30] sm:$0xf] %v8440_v7  ;;  %470 = vst [vmem:[#allocation3 + $0x40] sm:$0xf] %v8440_v7 }
  0x99   : > { %471 = vst [vmem:[#allocation3 + $0x50] sm:$0xf] %v8440_v7  ;;  %472 = vst [vmem:[#allocation3 + $0x60] sm:$0xf] %v8440_v7 }
  0x9a   : > { %473 = vst [vmem:[#allocation3 + $0x70] sm:$0xf] %v8440_v7  ;;  %474 = vst [vmem:[#allocation3 + $0x80] sm:$0xf] %v8440_v7 }
  0x9b   : > { %475 = vst [vmem:[#allocation3 + $0x90] sm:$0xf] %v8440_v7  ;;  %381 = vst [vmem:[#allocation2 + $0x18] sm:$0x1] %v8439_v3 }
  0x9c   : > { %382 = vst [vmem:[#allocation2 + $0x38] sm:$0x1] %v8439_v3  ;;  %399 = vst [vmem:[#allocation2 + $0x258] sm:$0x1] %v8439_v3 }
  0x9d   : > { %400 = vst [vmem:[#allocation2 + $0x278] sm:$0x1] %v8439_v3  ;;  %437 = vst [vmem:[#allocation2 + $0x70] sm:$0xff] %v404_v4 }
  0x9e   : > { %438 = vst [vmem:[#allocation2 + $0x88] sm:$0xff] %v405_v5  ;;  %439 = vst [vmem:[#allocation2 + $0x90] sm:$0xff] %v406_v6 }
  0x9f   : > { %440 = vst [vmem:[#allocation2 + $0xa8] sm:$0xff] %v407_v8  ;;  %441 = vst [vmem:[#allocation2 + $0xb0] sm:$0xff] %v408_v9 }
  0xa0   : > { %442 = vst [vmem:[#allocation2 + $0xc8] sm:$0xff] %v409_v10  ;;  %443 = vst [vmem:[#allocation2 + $0xd0] sm:$0xff] %v410_v11 }
  0xa1   : > { %444 = vst [vmem:[#allocation2 + $0xe8] sm:$0xff] %v411_v12  ;;  %445 = vst [vmem:[#allocation2 + $0xf0] sm:$0xff] %v412_v13 }
  0xa2   : > { %446 = vst [vmem:[#allocation2 + $0x108] sm:$0xff] %v413_v14  ;;  %447 = vst [vmem:[#allocation2 + $0x110] sm:$0xff] %v414_v15 }
  0xa3   : > { %448 = vst [vmem:[#allocation2 + $0x128] sm:$0xff] %v415_v16  ;;  %449 = vst [vmem:[#allocation2 + $0x130] sm:$0xff] %v416_v17 }
  0xa4   : > { %450 = vst [vmem:[#allocation2 + $0x148] sm:$0xff] %v417_v18  ;;  %451 = vst [vmem:[#allocation2 + $0x150] sm:$0xff] %v418_v19 }
  0xa5   : > { %452 = vst [vmem:[#allocation2 + $0x168] sm:$0xff] %v419_v20  ;;  %453 = vst [vmem:[#allocation2 + $0x170] sm:$0xff] %v420_v21 }
  0xa6   : > { %454 = vst [vmem:[#allocation2 + $0x188] sm:$0xff] %v421_v22  ;;  %455 = vst [vmem:[#allocation2 + $0x190] sm:$0xff] %v422_v23 }
  0xa7   : > { %456 = vst [vmem:[#allocation2 + $0x1a8] sm:$0xff] %v423_v24  ;;  %457 = vst [vmem:[#allocation2 + $0x1b0] sm:$0xff] %v424_v25 }
  0xa8   : > { %458 = vst [vmem:[#allocation2 + $0x1c8] sm:$0xff] %v425_v26  ;;  %459 = vst [vmem:[#allocation2 + $0x1d0] sm:$0xff] %v426_v27 }
  0xa9   : > { %460 = vst [vmem:[#allocation2 + $0x1e8] sm:$0xff] %v427_v28  ;;  %461 = vst [vmem:[#allocation2 + $0x1f0] sm:$0xff] %v428_v29 }
  0xaa   : > { %462 = vst [vmem:[#allocation2 + $0x208] sm:$0xff] %v429_v30  ;;  %463 = vst [vmem:[#allocation2 + $0x210] sm:$0xff] %v430_v31 }
  0xab   : > { %vm8733_vm2 = vmand %vm476_vm0, %vm477_vm1  ;;  %464 = vst [vmem:[#allocation2 + $0x228] sm:$0xff] %v431_v32 }
  0xac   : > { %465 = vst [vmem:[#allocation2 + $0x230] sm:$0xff] %v432_v33  ;;  %v480_v38 = vsel %vm8733_vm2, 0, %v479_v35  ;;  %v483_v39 = vsel %vm8733_vm2, 0, %v482_v36  ;;  %v486_v40 = vsel %vm8733_vm2, 0, %v485_v37  ;;  %v489_v42 = vsel %vm8733_vm2, 0, %v488_v41 }
  0xad   : > { %481 = vst [vmem:[#allocation3 + $0xc] sm:$0x1] %v480_v38  ;;  %484 = vst [vmem:[#allocation3 + $0x1c] sm:$0x1] %v483_v39  ;;  %v492_v45 = vsel %vm8733_vm2, 0, %v491_v43  ;;  %v495_v46 = vsel %vm8733_vm2, 0, %v494_v44 }
  0xae   : > { %487 = vst [vmem:[#allocation3 + $0x2c] sm:$0x1] %v486_v40  ;;  %490 = vst [vmem:[#allocation3 + $0x3c] sm:$0x1] %v489_v42  ;;  %v498_v49 = vsel %vm8733_vm2, 0, %v497_v47  ;;  %v501_v50 = vsel %vm8733_vm2, 0, %v500_v48 }
  0xaf   : > { %493 = vst [vmem:[#allocation3 + $0x4c] sm:$0x1] %v492_v45  ;;  %496 = vst [vmem:[#allocation3 + $0x5c] sm:$0x1] %v495_v46  ;;  %v504_v53 = vsel %vm8733_vm2, 0, %v503_v51  ;;  %v507_v54 = vsel %vm8733_vm2, 0, %v506_v52 }
  0xb0   : > { %499 = vst [vmem:[#allocation3 + $0x6c] sm:$0x1] %v498_v49  ;;  %502 = vst [vmem:[#allocation3 + $0x7c] sm:$0x1] %v501_v50 }
  0xb1   : > { %505 = vst [vmem:[#allocation3 + $0x8c] sm:$0x1] %v504_v53  ;;  %508 = vst [vmem:[#allocation3 + $0x9c] sm:$0x1] %v507_v54 }
  0xb2 PF: > { %s6448_s17 = sshll.u32 %s8413_s30, 3  ;;  %v8019_v55 = vld [vmem:[#allocation7 + $0x78] sm:$0xff]   ;;  %v8021_v57 = vld [vmem:[#allocation7 + $0x70] sm:$0xff]   ;;  %v8023_v59 = vld [vmem:[#allocation7 + $0x68] sm:$0xff]   ;;  %s6872_s18 = sshll.u32 %s8413_s30, 8 }
  0xb3   : > { %v8020_v56 = vld [vmem:[#allocation7 + $0x38] sm:$0xff]   ;;  %7218 = vmatprep.subr.bf16.mxu0 %v8019_v55  ;;  %v8022_v58 = vld [vmem:[#allocation7 + $0x30] sm:$0xff]   ;;  %v8024_v60 = vld [vmem:[#allocation7 + $0x28] sm:$0xff]   ;;  %s8759_s12 = scalar_lea.vmem [#allocation2], %s6872_s18 }
  0xb4   : > { %7254 = vmatprep.subr.bf16.mxu1 %v8020_v56  ;;  %7219 = vmatpush3.bf16.msra.mxu0 %v8019_v55  ;;  %v8025_v61 = vld [vmem:[#allocation7 + $0x60] sm:$0xff]   ;;  %v8027_v63 = vld [vmem:[#allocation7 + $0x58] sm:$0xff]   ;;  %v8029_v1 = vld [vmem:[#allocation7 + $0x50] sm:$0xff]  }
  0xb5   : > { %7255 = vmatpush3.bf16.msra.mxu1 %v8020_v56  ;;  %7220 = vmatprep.subr.bf16.mxu0 %v8021_v57  ;;  %v8026_v62 = vld [vmem:[#allocation7 + $0x20] sm:$0xff]   ;;  %v8028_v0 = vld [vmem:[#allocation7 + $0x18] sm:$0xff]   ;;  %v558_v2 = vld [vmem:[%s8759_s12 + $0x8] sm:$0xff] }
  0xb6   : > { %7256 = vmatprep.subr.bf16.mxu1 %v8022_v58  ;;  %v559_v3 = vld [vmem:[%s8759_s12 + $0x10] sm:$0xff]  ;;  %v512_v4 = vld [vmem:[%s8759_s12 + $0x7] sm:$0xff]  ;;  %v8035_v17 = vld [vmem:[#allocation7 + $0xb8] sm:$0xff]  }
  0xb7   : > { %v8030_v5 = vld [vmem:[#allocation7 + $0x10] sm:$0xff]   ;;  %v578_v6 = vpack.c.bf16 %v559_v3, %v558_v2  ;;  %v8031_v9 = vld [vmem:[#allocation7 + $0x48] sm:$0xff]   ;;  %v8033_v11 = vld [vmem:[#allocation7 + $0x40] sm:$0xff]  }
  0xb8   : > { %7221 = vmatpush3.bf16.msra.mxu0 %v8021_v57  ;;  %v513_v7 = vld [vmem:[%s8759_s12 + $0xf] sm:$0xff]  ;;  %v8034_v12 = vld [vmem:[#allocation7] sm:$0xff]   ;;  %v8038_v21 = vld [vmem:[#allocation7 + $0xf8] sm:$0xff]  }
  0xb9   : > { %7257 = vmatpush3.bf16.msra.mxu1 %v8022_v58  ;;  %7222 = vmatprep.subr.bf16.mxu0 %v8023_v59  ;;  %v532_v8 = vpack.c.bf16 %v513_v7, %v512_v4  ;;  %v8032_v10 = vld [vmem:[#allocation7 + $0x8] sm:$0xff]   ;;  %v561_v14 = vld [vmem:[%s8759_s12 + $0x30] sm:$0xff]  ;;  %v8040_v43 = vld [vmem:[#allocation7 + $0xa0] sm:$0xff]  }
  0xba   : > { %7258 = vmatprep.subr.bf16.mxu1 %v8024_v60  ;;  %7234 = vmatprep.mubr.bf16.mxu0 %v578_v6  ;;  %v560_v13 = vld [vmem:[%s8759_s12 + $0x28] sm:$0xff]  ;;  %v563_v19 = vld [vmem:[%s8759_s12 + $0x50] sm:$0xff]  ;;  %v8043_v48 = vld [vmem:[#allocation7 + $0xe0] sm:$0xff]  }
  0xbb   : > { %7270 = vmatprep.mubr.bf16.mxu1 %v532_v8  ;;  %v514_v15 = vld [vmem:[%s8759_s12 + $0x27] sm:$0xff]  ;;  %v515_v16 = vld [vmem:[%s8759_s12 + $0x2f] sm:$0xff]  ;;  %v8772_v22 = vpack.c.bf16 %v561_v14, %v560_v13  ;;  %v8042_v49 = vld [vmem:[#allocation7 + $0x98] sm:$0xff]  }
  0xbc   : > { %7223 = vmatpush3.bf16.msra.mxu0 %v8023_v59  ;;  %v562_v18 = vld [vmem:[%s8759_s12 + $0x48] sm:$0xff]  ;;  %v8775_v24 = vpack.c.bf16 %v515_v16, %v514_v15  ;;  %v8036_v25 = vld [vmem:[#allocation7 + $0xb0] sm:$0xff]   ;;  %v8045_v55 = vld [vmem:[#allocation7 + $0xd8] sm:$0xff]  }
  0xbd   : > { %7259 = vmatpush3.bf16.msra.mxu1 %v8024_v60  ;;  %7224 = vmatprep.subr.bf16.mxu0 %v8025_v61  ;;  %v516_v20 = vld [vmem:[%s8759_s12 + $0x47] sm:$0xff]  ;;  %v517_v23 = vld [vmem:[%s8759_s12 + $0x4f] sm:$0xff]  ;;  %v8777_v26 = vpack.c.bf16 %v563_v19, %v562_v18  ;;  %v8051_v19 = vld [vmem:[#allocation7 + $0x138] sm:$0xff]  }
  0xbe   : > { %7260 = vmatprep.subr.bf16.mxu1 %v8026_v62  ;;  %v8779_v27 = vpack.c.bf16 %v517_v23, %v516_v20  ;;  %v564_v28 = vld [vmem:[%s8759_s12 + $0x68] sm:$0xff]  ;;  %v565_v29 = vld [vmem:[%s8759_s12 + $0x70] sm:$0xff]  ;;  %v8050_v15 = vld [vmem:[#allocation7 + $0xc0] sm:$0xff]  }
  0xbf   : > { %v518_v30 = vld [vmem:[%s8759_s12 + $0x67] sm:$0xff]  ;;  %v519_v31 = vld [vmem:[%s8759_s12 + $0x6f] sm:$0xff]  ;;  %v8793_v38 = vpack.c.bf16 %v565_v29, %v564_v28 }
  0xc0   : > { %7225 = vmatpush3.bf16.msra.mxu0 %v8025_v61  ;;  %v8037_v32 = vld [vmem:[#allocation7 + $0xa8] sm:$0xff]   ;;  %v8039_v33 = vld [vmem:[#allocation7 + $0xf0] sm:$0xff]   ;;  %v8795_v40 = vpack.c.bf16 %v519_v31, %v518_v30 }
  0xc1   : > { %7261 = vmatpush3.bf16.msra.mxu1 %v8026_v62  ;;  %7226 = vmatprep.subr.bf16.mxu0 %v8027_v63  ;;  %v566_v34 = vld [vmem:[%s8759_s12 + $0x88] sm:$0xff]  ;;  %v567_v35 = vld [vmem:[%s8759_s12 + $0x90] sm:$0xff] }
  0xc2   : > { %7262 = vmatprep.subr.bf16.mxu1 %v8028_v0  ;;  %v520_v36 = vld [vmem:[%s8759_s12 + $0x87] sm:$0xff]  ;;  %v521_v37 = vld [vmem:[%s8759_s12 + $0x8f] sm:$0xff]  ;;  %v8797_v41 = vpack.c.bf16 %v567_v35, %v566_v34 }
  0xc3   : > { %v8041_v39 = vld [vmem:[#allocation7 + $0xe8] sm:$0xff]   ;;  %v8799_v42 = vpack.c.bf16 %v521_v37, %v520_v36  ;;  %v569_v45 = vld [vmem:[%s8759_s12 + $0xb0] sm:$0xff] }
  0xc4   : > { %7227 = vmatpush3.bf16.msra.mxu0 %v8027_v63  ;;  %v568_v44 = vld [vmem:[%s8759_s12 + $0xa8] sm:$0xff]  ;;  %v571_v51 = vld [vmem:[%s8759_s12 + $0xd0] sm:$0xff] }
  0xc5   : > { %7263 = vmatpush3.bf16.msra.mxu1 %v8028_v0  ;;  %7228 = vmatprep.subr.bf16.mxu0 %v8029_v1  ;;  %v522_v46 = vld [vmem:[%s8759_s12 + $0xa7] sm:$0xff]  ;;  %v523_v47 = vld [vmem:[%s8759_s12 + $0xaf] sm:$0xff]  ;;  %v8813_v54 = vpack.c.bf16 %v569_v45, %v568_v44 }
  0xc6   : > { %7264 = vmatprep.subr.bf16.mxu1 %v8030_v5  ;;  %v570_v50 = vld [vmem:[%s8759_s12 + $0xc8] sm:$0xff]  ;;  %v8815_v56 = vpack.c.bf16 %v523_v47, %v522_v46  ;;  %v573_v60 = vld [vmem:[%s8759_s12 + $0xf0] sm:$0xff]  ;;  %v8056_v47 = vld [vmem:[#allocation7 + $0x120] sm:$0xff]  }
  0xc7   : > { %v524_v52 = vld [vmem:[%s8759_s12 + $0xc7] sm:$0xff]  ;;  %v525_v53 = vld [vmem:[%s8759_s12 + $0xcf] sm:$0xff]  ;;  %v8817_v57 = vpack.c.bf16 %v571_v51, %v570_v50  ;;  %v8058_v51 = vld [vmem:[#allocation7 + $0x118] sm:$0xff]  }
  0xc8   : > { %7229 = vmatpush3.bf16.msra.mxu0 %v8029_v1  ;;  %v8819_v58 = vpack.c.bf16 %v525_v53, %v524_v52  ;;  %v572_v59 = vld [vmem:[%s8759_s12 + $0xe8] sm:$0xff]  ;;  %v8044_v61 = vld [vmem:[#allocation7 + $0x90] sm:$0xff]   ;;  %v8059_v50 = vld [vmem:[#allocation7 + $0x160] sm:$0xff]  }
  0xc9   : > { %7265 = vmatpush3.bf16.msra.mxu1 %v8030_v5  ;;  %7230 = vmatprep.subr.bf16.mxu0 %v8031_v9  ;;  %v526_v62 = vld [vmem:[%s8759_s12 + $0xe7] sm:$0xff]  ;;  %v527_v63 = vld [vmem:[%s8759_s12 + $0xef] sm:$0xff]  ;;  %v8833_v6 = vpack.c.bf16 %v573_v60, %v572_v59  ;;  %v8061_v59 = vld [vmem:[#allocation7 + $0x158] sm:$0xff]  }
  0xca   : > { %7266 = vmatprep.subr.bf16.mxu1 %v8032_v10  ;;  %v8046_v0 = vld [vmem:[#allocation7 + $0x88] sm:$0xff]   ;;  %v8047_v1 = vld [vmem:[#allocation7 + $0xd0] sm:$0xff]   ;;  %v8835_v8 = vpack.c.bf16 %v527_v63, %v526_v62 }
  0xcb   : > { %v574_v2 = vld [vmem:[%s8759_s12 + $0x108] sm:$0xff]  ;;  %v575_v3 = vld [vmem:[%s8759_s12 + $0x110] sm:$0xff] }
  0xcc   : > { %7231 = vmatpush3.bf16.msra.mxu0 %v8031_v9  ;;  %v528_v4 = vld [vmem:[%s8759_s12 + $0x107] sm:$0xff]  ;;  %v529_v5 = vld [vmem:[%s8759_s12 + $0x10f] sm:$0xff]  ;;  %v8837_v9 = vpack.c.bf16 %v575_v3, %v574_v2 }
  0xcd   : > { %7267 = vmatpush3.bf16.msra.mxu1 %v8032_v10  ;;  %7232 = vmatprep.subr.bf16.mxu0 %v8033_v11  ;;  %v8048_v7 = vld [vmem:[#allocation7 + $0xc8] sm:$0xff]   ;;  %v8839_v10 = vpack.c.bf16 %v529_v5, %v528_v4  ;;  %v577_v13 = vld [vmem:[%s8759_s12 + $0x130] sm:$0xff] }
  0xce   : > { %7268 = vmatprep.subr.bf16.mxu1 %v8034_v12  ;;  %v530_v14 = vld [vmem:[%s8759_s12 + $0x127] sm:$0xff]  ;;  %v531_v16 = vld [vmem:[%s8759_s12 + $0x12f] sm:$0xff] }
  0xcf   : > { %v928_v18 = vld [vmem:[%s8759_s12 + $0x11] sm:$0xff]  ;;  %v8853_v23 = vpack.c.bf16 %v531_v16, %v530_v14  ;;  %v929_v28 = vld [vmem:[%s8759_s12 + $0x29] sm:$0xff] }
  0xd0   : > { %7233 = vmatpush3.bf16.msra.mxu0 %v8033_v11  ;;  %v576_v11 = vld [vmem:[%s8759_s12 + $0x128] sm:$0xff]  ;;  %v930_v29 = vld [vmem:[%s8759_s12 + $0x31] sm:$0xff] }
  0xd1   : > { %7269 = vmatpush3.bf16.msra.mxu1 %v8034_v12  ;;  %7290 = vmatprep.subr.bf16.mxu0 %v8035_v17  ;;  %v8049_v12 = vld [vmem:[#allocation7 + $0x80] sm:$0xff]   ;;  %v8851_v20 = vpack.c.bf16 %v577_v13, %v576_v11  ;;  %v931_v30 = vld [vmem:[%s8759_s12 + $0x49] sm:$0xff]  ;;  %v932_v31 = vld [vmem:[%s8759_s12 + $0x51] sm:$0xff] }
  0xd2   : > { %7326 = vmatprep.subr.bf16.mxu1 %v8038_v21  ;;  %v8864_v34 = vpack.c.bf16 %v932_v31, %v931_v30  ;;  %v933_v35 = vld [vmem:[%s8759_s12 + $0x69] sm:$0xff]  ;;  %v934_v36 = vld [vmem:[%s8759_s12 + $0x71] sm:$0xff]  ;;  %v8065_v11 = vld [vmem:[#allocation7 + $0x100] sm:$0xff]  }
  0xd3   : > { %7235 = vmatmul.mubr.bf16.vlgmr.msra.gmra.mxu0 %v8772_v22  ;;  %v8055_v37 = vld [vmem:[#allocation7 + $0x170] sm:$0xff]   ;;  %v8874_v44 = vpack.c.bf16 %v934_v36, %v933_v35  ;;  %v8057_v45 = vld [vmem:[#allocation7 + $0x168] sm:$0xff]   ;;  %v8075_v31 = vld [vmem:[#allocation7 + $0x1e0] sm:$0xff]  }
  0xd4   : > { %7271 = vmatmul.mubr.bf16.vlgmr.msra.gmra.mxu1 %v8775_v24  ;;  %7291 = vmatpush3.bf16.msra.mxu0 %v8035_v17  ;;  %v927_v17 = vld [vmem:[%s8759_s12 + $0x9] sm:$0xff]  ;;  %v940_v53 = vld [vmem:[%s8759_s12 + $0xd1] sm:$0xff] }
  0xd5   : > { %7292 = vmatprep.subr.bf16.mxu0 %v8036_v25  ;;  %7238 = vmatprep.mubr.bf16.mxu0 %v8777_v26  ;;  %v939_v52 = vld [vmem:[%s8759_s12 + $0xc9] sm:$0xff]  ;;  %v942_v62 = vld [vmem:[%s8759_s12 + $0xf1] sm:$0xff] }
  0xd6   : > { %7274 = vmatprep.mubr.bf16.mxu1 %v8779_v27  ;;  %7327 = vmatpush3.bf16.msra.mxu1 %v8038_v21  ;;  %v8054_v21 = vld [vmem:[#allocation7 + $0x178] sm:$0xff]   ;;  %v8888_v60 = vpack.c.bf16 %v940_v53, %v939_v52  ;;  %v8060_v63 = vld [vmem:[#allocation7 + $0x110] sm:$0xff]   ;;  %v8064_v5 = vld [vmem:[#allocation7 + $0x148] sm:$0xff]  }
  0xd7   : > { %7328 = vmatprep.subr.bf16.mxu1 %v8039_v33  ;;  %v943_v2 = vld [vmem:[%s8759_s12 + $0x109] sm:$0xff]  ;;  %v944_v3 = vld [vmem:[%s8759_s12 + $0x111] sm:$0xff] }
  0xd8   : > { %7293 = vmatpush3.bf16.msra.mxu0 %v8036_v25  ;;  %v947_v25 = vpack.c.bf16 %v928_v18, %v927_v17  ;;  %v945_v13 = vld [vmem:[%s8759_s12 + $0x129] sm:$0xff]  ;;  %v946_v14 = vld [vmem:[%s8759_s12 + $0x131] sm:$0xff] }
  0xd9   : > { %7294 = vmatprep.subr.bf16.mxu0 %v8037_v32  ;;  %v6495_v16 = vld [vmem:[%s8759_s12 + $0x14f] sm:$0xff]  ;;  %v8067_v17 = vld [vmem:[#allocation7 + $0x1b8] sm:$0xff]   ;;  %v8910_v18 = vpack.c.bf16 %v946_v14, %v945_v13 }
  0xda   : > { %7329 = vmatpush3.bf16.msra.mxu1 %v8039_v33  ;;  %v8052_v33 = vld [vmem:[#allocation7 + $0x130] sm:$0xff]   ;;  %v8073_v30 = vld [vmem:[#allocation7 + $0x1e8] sm:$0xff]  }
  0xdb   : > { %7239 = vmatmul.mubr.bf16.gmra.mxu0 %v8793_v38  ;;  %7330 = vmatprep.subr.bf16.mxu1 %v8041_v39  ;;  %v8076_v35 = vld [vmem:[#allocation7 + $0x190] sm:$0xff]  }
  0xdc   : > { %7275 = vmatmul.mubr.bf16.gmra.mxu1 %v8795_v40  ;;  %7295 = vmatpush3.bf16.msra.mxu0 %v8037_v32  ;;  %v8862_v32 = vpack.c.bf16 %v930_v29, %v929_v28  ;;  %v8071_v28 = vld [vmem:[#allocation7 + $0x1f0] sm:$0xff]   ;;  %v8069_v29 = vld [vmem:[#allocation7 + $0x1a8] sm:$0xff]  }
  0xdd   : > { %7242 = vmatprep.mubr.bf16.mxu0 %v8797_v41  ;;  %7278 = vmatprep.mubr.bf16.mxu1 %v8799_v42  ;;  %v8079_v36 = vld [vmem:[#allocation7 + $0x1d0] sm:$0xff]  }
  0xde   : > { %7296 = vmatprep.subr.bf16.mxu0 %v8040_v43  ;;  %7331 = vmatpush3.bf16.msra.mxu1 %v8041_v39  ;;  %v8053_v39 = vld [vmem:[#allocation7 + $0x128] sm:$0xff]   ;;  %v8084_v53 = vld [vmem:[#allocation7 + $0x230] sm:$0xff]  }
  0xdf   : > { %7332 = vmatprep.subr.bf16.mxu1 %v8043_v48 }
  0xe0   : > { %7297 = vmatpush3.bf16.msra.mxu0 %v8040_v43  ;;  %v936_v43 = vld [vmem:[%s8759_s12 + $0x91] sm:$0xff] }
  0xe1   : > { %7298 = vmatprep.subr.bf16.mxu0 %v8042_v49 }
  0xe2   : > { %7333 = vmatpush3.bf16.msra.mxu1 %v8043_v48  ;;  %v937_v48 = vld [vmem:[%s8759_s12 + $0xa9] sm:$0xff] }
  0xe3   : > { %7243 = vmatmul.mubr.bf16.gmra.mxu0 %v8813_v54  ;;  %7334 = vmatprep.subr.bf16.mxu1 %v8045_v55 }
  0xe4   : > { %7279 = vmatmul.mubr.bf16.gmra.mxu1 %v8815_v56  ;;  %7299 = vmatpush3.bf16.msra.mxu0 %v8042_v49  ;;  %v938_v49 = vld [vmem:[%s8759_s12 + $0xb1] sm:$0xff] }
  0xe5   : > { %7246 = vmatprep.mubr.bf16.mxu0 %v8817_v57  ;;  %7282 = vmatprep.mubr.bf16.mxu1 %v8819_v58 }
  0xe6   : > { %7300 = vmatprep.subr.bf16.mxu0 %v8044_v61  ;;  %7335 = vmatpush3.bf16.msra.mxu1 %v8045_v55  ;;  %v8886_v55 = vpack.c.bf16 %v938_v49, %v937_v48  ;;  %v6550_v48 = vld [vmem:[%s8759_s12 + $0x149] sm:$0xff]  ;;  %v6551_v49 = vld [vmem:[%s8759_s12 + $0x151] sm:$0xff] }
  0xe7   : > { %7336 = vmatprep.subr.bf16.mxu1 %v8047_v1  ;;  %v1643_v52 = vpack.c.bf16 %v6551_v49, %v6550_v48 }
  0xe8   : > { %7301 = vmatpush3.bf16.msra.mxu0 %v8044_v61  ;;  %v941_v61 = vld [vmem:[%s8759_s12 + $0xe9] sm:$0xff] }
  0xe9   : > { %7302 = vmatprep.subr.bf16.mxu0 %v8046_v0  ;;  %v8898_v4 = vpack.c.bf16 %v942_v62, %v941_v61  ;;  %v8086_v61 = vld [vmem:[#allocation7 + $0x220] sm:$0xff]  }
  0xea   : > { %7337 = vmatpush3.bf16.msra.mxu1 %v8047_v1  ;;  %v8063_v1 = vld [vmem:[#allocation7 + $0x150] sm:$0xff]  }
  0xeb   : > { %7247 = vmatmul.mubr.bf16.gmra.mxu0 %v8833_v6  ;;  %7338 = vmatprep.subr.bf16.mxu1 %v8048_v7 }
  0xec   : > { %7283 = vmatmul.mubr.bf16.gmra.mxu1 %v8835_v8  ;;  %7250 = vmatprep.mubr.bf16.mxu0 %v8837_v9 }
  0xed   : > { %7286 = vmatprep.mubr.bf16.mxu1 %v8839_v10  ;;  %7303 = vmatpush3.bf16.msra.mxu0 %v8046_v0  ;;  %v8062_v0 = vld [vmem:[#allocation7 + $0x108] sm:$0xff]  }
  0xee   : > { %7304 = vmatprep.subr.bf16.mxu0 %v8049_v12  ;;  %7339 = vmatpush3.bf16.msra.mxu1 %v8048_v7  ;;  %v8900_v7 = vpack.c.bf16 %v944_v3, %v943_v2 }
  0xef   : > { %7340 = vmatprep.subr.bf16.mxu1 %v8050_v15 }
  0xf1   : > { %7305 = vmatpush3.bf16.msra.mxu0 %v8049_v12  ;;  %v8066_v12 = vld [vmem:[#allocation7 + $0x140] sm:$0xff]  }
  0xf2   : > { %7341 = vmatpush3.bf16.msra.mxu1 %v8050_v15  ;;  %7362 = vmatprep.subr.bf16.mxu0 %v8051_v19  ;;  %v6494_v15 = vld [vmem:[%s8759_s12 + $0x147] sm:$0xff] }
  0xf3   : > { %7251 = vmatmul.mubr.bf16.gmra.mxu0 %v8851_v20  ;;  %7398 = vmatprep.subr.bf16.mxu1 %v8054_v21 }
  0xf4   : > { %7287 = vmatmul.mubr.bf16.gmra.mxu1 %v8853_v23  ;;  %7306 = vmatprep.mubr.bf16.mxu0 %v947_v25  ;;  %v8068_v25 = vld [vmem:[#allocation7 + $0x1b0] sm:$0xff]  }
  0xf5   : > { %7342 = vmatprep.mubr.bf16.mxu1 %v8775_v24  ;;  %v935_v24 = vld [vmem:[%s8759_s12 + $0x89] sm:$0xff] }
  0xf6   : > { %v8876_v46 = vpack.c.bf16 %v936_v43, %v935_v24  ;;  %v8081_v24 = vld [vmem:[#allocation7 + $0x180] sm:$0xff]  }
  0xf7   : > { %v8082_v43 = vld [vmem:[#allocation7 + $0x1c0] sm:$0xff]  }
  0xfb   : > { %7307 = vmatmul.mubr.bf16.vlgmr.msra.gmra.mxu0 %v8862_v32 }
  0xfc   : > { %7363 = vmatpush3.bf16.msra.mxu0 %v8051_v19  ;;  %7343 = vmatmul.mubr.bf16.vlgmr.msra.gmra.mxu1 %v8779_v27  ;;  %v8070_v19 = vld [vmem:[#allocation7 + $0x1f8] sm:$0xff]  }
  0xfd   : > { %7364 = vmatprep.subr.bf16.mxu0 %v8052_v33  ;;  %7310 = vmatprep.mubr.bf16.mxu0 %v8864_v34 }
  0xfe   : > { %7346 = vmatprep.mubr.bf16.mxu1 %v8795_v40  ;;  %7399 = vmatpush3.bf16.msra.mxu1 %v8054_v21  ;;  %v8912_v21 = vpack.c.bf16 %v6495_v16, %v6494_v15 }
  0xff   : > { %7400 = vmatprep.subr.bf16.mxu1 %v8055_v37 }
 0x100   : > { %7365 = vmatpush3.bf16.msra.mxu0 %v8052_v33  ;;  %v8077_v33 = vld [vmem:[#allocation7 + $0x1d8] sm:$0xff]  }
 0x101   : > { %7366 = vmatprep.subr.bf16.mxu0 %v8053_v39 }
 0x102   : > { %7401 = vmatpush3.bf16.msra.mxu1 %v8055_v37  ;;  %v8078_v37 = vld [vmem:[#allocation7 + $0x188] sm:$0xff]  }
 0x103   : > { %7311 = vmatmul.mubr.bf16.gmra.mxu0 %v8874_v44  ;;  %7402 = vmatprep.subr.bf16.mxu1 %v8057_v45 }
 0x104   : > { %7347 = vmatmul.mubr.bf16.gmra.mxu1 %v8799_v42  ;;  %7367 = vmatpush3.bf16.msra.mxu0 %v8053_v39  ;;  %v8080_v39 = vld [vmem:[#allocation7 + $0x1c8] sm:$0xff]  }
 0x105   : > { %7314 = vmatprep.mubr.bf16.mxu0 %v8876_v46  ;;  %7368 = vmatprep.subr.bf16.mxu0 %v8056_v47 }
 0x106   : > { %7350 = vmatprep.mubr.bf16.mxu1 %v8815_v56  ;;  %7403 = vmatpush3.bf16.msra.mxu1 %v8057_v45  ;;  %v6522_v45 = vld [vmem:[%s8759_s12 + $0x148] sm:$0xff] }
 0x107   : > { %7404 = vmatprep.subr.bf16.mxu1 %v8059_v50 }
 0x108   : > { %7369 = vmatpush3.bf16.msra.mxu0 %v8056_v47  ;;  %v6523_v47 = vld [vmem:[%s8759_s12 + $0x150] sm:$0xff] }
 0x109   : > { %7370 = vmatprep.subr.bf16.mxu0 %v8058_v51 }
 0x10a   : > { %7405 = vmatpush3.bf16.msra.mxu1 %v8059_v50  ;;  %v8083_v50 = vld [vmem:[#allocation7 + $0x238] sm:$0xff]  }
 0x10b   : > { %7315 = vmatmul.mubr.bf16.gmra.mxu0 %v8886_v55  ;;  %7406 = vmatprep.subr.bf16.mxu1 %v8061_v59 }
 0x10c   : > { %7351 = vmatmul.mubr.bf16.gmra.mxu1 %v8819_v58  ;;  %7371 = vmatpush3.bf16.msra.mxu0 %v8058_v51  ;;  %v1415_v51 = vpack.c.bf16 %v6523_v47, %v6522_v45 }
 0x10d   : > { %7318 = vmatprep.mubr.bf16.mxu0 %v8888_v60  ;;  %7354 = vmatprep.mubr.bf16.mxu1 %v8835_v8 }
 0x10e   : > { %7372 = vmatprep.subr.bf16.mxu0 %v8060_v63  ;;  %7407 = vmatpush3.bf16.msra.mxu1 %v8061_v59  ;;  %v8085_v59 = vld [vmem:[#allocation7 + $0x228] sm:$0xff]  }
 0x10f   : > { %7408 = vmatprep.subr.bf16.mxu1 %v8063_v1 }
 0x110   : > { %7373 = vmatpush3.bf16.msra.mxu0 %v8060_v63 }
 0x111   : > { %7374 = vmatprep.subr.bf16.mxu0 %v8062_v0 }
 0x112   : > { %7409 = vmatpush3.bf16.msra.mxu1 %v8063_v1 }
 0x113   : > { %7319 = vmatmul.mubr.bf16.gmra.mxu0 %v8898_v4  ;;  %7410 = vmatprep.subr.bf16.mxu1 %v8064_v5 }
 0x114   : > { %7355 = vmatmul.mubr.bf16.gmra.mxu1 %v8839_v10  ;;  %7322 = vmatprep.mubr.bf16.mxu0 %v8900_v7 }
 0x115   : > { %7375 = vmatpush3.bf16.msra.mxu0 %v8062_v0  ;;  %7358 = vmatprep.mubr.bf16.mxu1 %v8853_v23 }
 0x116   : > { %7376 = vmatprep.subr.bf16.mxu0 %v8065_v11  ;;  %7411 = vmatpush3.bf16.msra.mxu1 %v8064_v5 }
 0x117   : > { %7412 = vmatprep.subr.bf16.mxu1 %v8066_v12 }
 0x119   : > { %7377 = vmatpush3.bf16.msra.mxu0 %v8065_v11 }
 0x11a   : > { %7413 = vmatpush3.bf16.msra.mxu1 %v8066_v12  ;;  %7434 = vmatprep.subr.bf16.mxu0 %v8067_v17 }
 0x11b   : > { %7323 = vmatmul.mubr.bf16.gmra.mxu0 %v8910_v18  ;;  %7470 = vmatprep.subr.bf16.mxu1 %v8070_v19 }
 0x11c   : > { %7359 = vmatmul.mubr.bf16.gmra.mxu1 %v8912_v21  ;;  %7378 = vmatprep.mubr.bf16.mxu0 %v8772_v22  ;;  %v8072_v22 = vld [vmem:[#allocation7 + $0x1a0] sm:$0xff]  }
 0x11d   : > { %7414 = vmatprep.mubr.bf16.mxu1 %v8862_v32  ;;  %v8074_v32 = vld [vmem:[#allocation7 + $0x198] sm:$0xff]  }
 0x123   : > { %7379 = vmatmul.mubr.bf16.vlgmr.msra.gmra.mxu0 %v8777_v26 }
 0x124   : > { %7435 = vmatpush3.bf16.msra.mxu0 %v8067_v17  ;;  %7415 = vmatmul.mubr.bf16.vlgmr.msra.gmra.mxu1 %v8864_v34 }
 0x125   : > { %7436 = vmatprep.subr.bf16.mxu0 %v8068_v25  ;;  %7382 = vmatprep.mubr.bf16.mxu0 %v8793_v38 }
 0x126   : > { %7418 = vmatprep.mubr.bf16.mxu1 %v8874_v44  ;;  %7471 = vmatpush3.bf16.msra.mxu1 %v8070_v19 }
 0x127   : > { %7472 = vmatprep.subr.bf16.mxu1 %v8071_v28 }
 0x128   : > { %7437 = vmatpush3.bf16.msra.mxu0 %v8068_v25 }
 0x129   : > { %7438 = vmatprep.subr.bf16.mxu0 %v8069_v29 }
 0x12a   : > { %7473 = vmatpush3.bf16.msra.mxu1 %v8071_v28 }
 0x12b   : > { %7383 = vmatmul.mubr.bf16.gmra.mxu0 %v8797_v41  ;;  %7474 = vmatprep.subr.bf16.mxu1 %v8073_v30 }
 0x12c   : > { %7419 = vmatmul.mubr.bf16.gmra.mxu1 %v8876_v46  ;;  %7439 = vmatpush3.bf16.msra.mxu0 %v8069_v29 }
 0x12d   : > { %7386 = vmatprep.mubr.bf16.mxu0 %v8813_v54  ;;  %7440 = vmatprep.subr.bf16.mxu0 %v8072_v22 }
 0x12e   : > { %7422 = vmatprep.mubr.bf16.mxu1 %v8886_v55  ;;  %7475 = vmatpush3.bf16.msra.mxu1 %v8073_v30 }
 0x12f   : > { %7476 = vmatprep.subr.bf16.mxu1 %v8075_v31 }
 0x130   : > { %7441 = vmatpush3.bf16.msra.mxu0 %v8072_v22 }
 0x131   : > { %7442 = vmatprep.subr.bf16.mxu0 %v8074_v32 }
 0x132   : > { %7477 = vmatpush3.bf16.msra.mxu1 %v8075_v31 }
 0x133   : > { %7387 = vmatmul.mubr.bf16.gmra.mxu0 %v8817_v57  ;;  %7478 = vmatprep.subr.bf16.mxu1 %v8077_v33 }
 0x134   : > { %7423 = vmatmul.mubr.bf16.gmra.mxu1 %v8888_v60  ;;  %7443 = vmatpush3.bf16.msra.mxu0 %v8074_v32 }
 0x135   : > { %7390 = vmatprep.mubr.bf16.mxu0 %v8833_v6  ;;  %7426 = vmatprep.mubr.bf16.mxu1 %v8898_v4 }
 0x136   : > { %7444 = vmatprep.subr.bf16.mxu0 %v8076_v35  ;;  %7479 = vmatpush3.bf16.msra.mxu1 %v8077_v33 }
 0x137   : > { %7480 = vmatprep.subr.bf16.mxu1 %v8079_v36 }
 0x138   : > { %7445 = vmatpush3.bf16.msra.mxu0 %v8076_v35 }
 0x139   : > { %7446 = vmatprep.subr.bf16.mxu0 %v8078_v37 }
 0x13a   : > { %7481 = vmatpush3.bf16.msra.mxu1 %v8079_v36 }
 0x13b   : > { %7391 = vmatmul.mubr.bf16.gmra.mxu0 %v8837_v9  ;;  %7482 = vmatprep.subr.bf16.mxu1 %v8080_v39 }
 0x13c   : > { %7427 = vmatmul.mubr.bf16.gmra.mxu1 %v8900_v7  ;;  %7394 = vmatprep.mubr.bf16.mxu0 %v8851_v20 }
 0x13d   : > { %7447 = vmatpush3.bf16.msra.mxu0 %v8078_v37  ;;  %7430 = vmatprep.mubr.bf16.mxu1 %v8910_v18 }
 0x13e   : > { %7448 = vmatprep.subr.bf16.mxu0 %v8081_v24  ;;  %7483 = vmatpush3.bf16.msra.mxu1 %v8080_v39 }
 0x13f   : > { %7484 = vmatprep.subr.bf16.mxu1 %v8082_v43 }
 0x141   : > { %7449 = vmatpush3.bf16.msra.mxu0 %v8081_v24 }
 0x142   : > { %7485 = vmatpush3.bf16.msra.mxu1 %v8082_v43  ;;  %7506 = vmatprep.subr.bf16.mxu0 %v8083_v50 }
 0x143   : > { %7395 = vmatmul.mubr.bf16.gmra.mxu0 %v1415_v51 }
 0x144   : > { %7431 = vmatmul.mubr.bf16.gmra.mxu1 %v1643_v52  ;;  %7450 = vmatprep.mubr.bf16.mxu0 %v8779_v27  ;;  %v8088_v27 = vld [vmem:[#allocation7 + $0x210] sm:$0xff]  }
 0x145   : > { %7486 = vmatprep.mubr.bf16.mxu1 %v8777_v26  ;;  %v8087_v26 = vld [vmem:[#allocation7 + $0x218] sm:$0xff]  }
 0x14b   : > { %7451 = vmatmul.mubr.bf16.vlgmr.msra.gmra.mxu0 %v8795_v40  ;;  %v8090_v40 = vld [vmem:[#allocation7 + $0x200] sm:$0xff]  }
 0x14c   : > { %7507 = vmatpush3.bf16.msra.mxu0 %v8083_v50  ;;  %7487 = vmatmul.mubr.bf16.vlgmr.msra.gmra.mxu1 %v8793_v38  ;;  %v8089_v38 = vld [vmem:[#allocation7 + $0x208] sm:$0xff]  }
 0x14d   : > { %7508 = vmatprep.subr.bf16.mxu0 %v8084_v53  ;;  %7454 = vmatprep.mubr.bf16.mxu0 %v8799_v42  ;;  %v6581_v42 = vld [vmem:[%s8759_s12 + $0x16f] sm:$0xff] }
 0x14e   : > { %7490 = vmatprep.mubr.bf16.mxu1 %v8797_v41  ;;  %v6580_v41 = vld [vmem:[%s8759_s12 + $0x167] sm:$0xff] }
 0x150   : > { %7509 = vmatpush3.bf16.msra.mxu0 %v8084_v53 }
 0x151   : > { %7510 = vmatprep.subr.bf16.mxu0 %v8085_v59 }
 0x153   : > { %7455 = vmatmul.mubr.bf16.gmra.mxu0 %v8815_v56  ;;  %v6609_v56 = vld [vmem:[%s8759_s12 + $0x170] sm:$0xff] }
 0x154   : > { %7491 = vmatmul.mubr.bf16.gmra.mxu1 %v8813_v54  ;;  %7511 = vmatpush3.bf16.msra.mxu0 %v8085_v59  ;;  %v6608_v54 = vld [vmem:[%s8759_s12 + $0x168] sm:$0xff] }
 0x155   : > { %7458 = vmatprep.mubr.bf16.mxu0 %v8819_v58  ;;  %7512 = vmatprep.subr.bf16.mxu0 %v8086_v61  ;;  %v2102_v58 = vpack.c.bf16 %v6609_v56, %v6608_v54 }
 0x156   : > { %7494 = vmatprep.mubr.bf16.mxu1 %v8817_v57  ;;  %v1874_v57 = vpack.c.bf16 %v6581_v42, %v6580_v41 }
 0x158   : > { %7513 = vmatpush3.bf16.msra.mxu0 %v8086_v61 }
 0x159   : > { %7514 = vmatprep.subr.bf16.mxu0 %v8087_v26 }
 0x15b   : > { %7459 = vmatmul.mubr.bf16.gmra.mxu0 %v8835_v8  ;;  %v6637_v8 = vld [vmem:[%s8759_s12 + $0x171] sm:$0xff] }
 0x15c   : > { %7495 = vmatmul.mubr.bf16.gmra.mxu1 %v8833_v6  ;;  %7515 = vmatpush3.bf16.msra.mxu0 %v8087_v26  ;;  %v6636_v6 = vld [vmem:[%s8759_s12 + $0x169] sm:$0xff] }
 0x15d   : > { %7462 = vmatprep.mubr.bf16.mxu0 %v8839_v10  ;;  %7498 = vmatprep.mubr.bf16.mxu1 %v8837_v9  ;;  %v2330_v9 = vpack.c.bf16 %v6637_v8, %v6636_v6 }
 0x15e   : > { %7516 = vmatprep.subr.bf16.mxu0 %v8088_v27 }
 0x160   : > { %7517 = vmatpush3.bf16.msra.mxu0 %v8088_v27 }
 0x161   : > { %7518 = vmatprep.subr.bf16.mxu0 %v8089_v38 }
 0x163   : > { %7463 = vmatmul.mubr.bf16.gmra.mxu0 %v8853_v23 }
 0x164   : > { %7499 = vmatmul.mubr.bf16.gmra.mxu1 %v8851_v20  ;;  %7466 = vmatprep.mubr.bf16.mxu0 %v8912_v21 }
 0x165   : > { %7519 = vmatpush3.bf16.msra.mxu0 %v8089_v38  ;;  %7502 = vmatprep.mubr.bf16.mxu1 %v1415_v51 }
 0x166   : > { %7520 = vmatprep.subr.bf16.mxu0 %v8090_v40 }
 0x169   : > { %7521 = vmatpush3.bf16.msra.mxu0 %v8090_v40 }
 0x16b   : > { %7467 = vmatmul.mubr.bf16.gmra.mxu0 %v1874_v57 }
 0x16c   : > { %7503 = vmatmul.mubr.bf16.gmra.mxu1 %v2102_v58  ;;  %7522 = vmatprep.mubr.bf16.mxu0 %v8864_v34 }
 0x173   : > { %7523 = vmatmul.mubr.bf16.vlgmr.msra.gmra.mxu0 %v8874_v44 }
 0x174   : > { %7526 = vmatprep.mubr.bf16.mxu0 %v8876_v46 }
 0x17b   : > { %7527 = vmatmul.mubr.bf16.gmra.mxu0 %v8886_v55 }
 0x17c   : > { %7530 = vmatprep.mubr.bf16.mxu0 %v8888_v60 }
 0x183   : > { %7531 = vmatmul.mubr.bf16.gmra.mxu0 %v8898_v4 }
 0x184   : > { %7534 = vmatprep.mubr.bf16.mxu0 %v8900_v7 }
 0x18b   : > { %7535 = vmatmul.mubr.bf16.gmra.mxu0 %v8910_v18 }
 0x18c   : > { %7538 = vmatprep.mubr.bf16.mxu0 %v1643_v52 }
 0x193   : > { %v7236_v10 = vpop.f32.mrf.mxu0  ;;  %7539 = vmatmul.mubr.bf16.gmra.mxu0 %v2330_v9 }
 0x194   : > { %v7272_v20 = vpop.f32.mrf.mxu1 }
 0x195   : > { %v857_v23 = vadd.f32 %v7272_v20, %v7236_v10  ;;  %v687_v34 = vpop.f32.mrf.mxu0 }
 0x196   : > { %v848_v44 = vpop.f32.mrf.mxu1 }
 0x197   : > { %v849_v46 = vadd.f32 %v848_v44, %v687_v34  ;;  %v7237_v55 = vpop.f32.mrf.mxu0 }
 0x198   : > { %v7273_v62 = vpop.f32.mrf.mxu1 }
 0x199   : > { %v860_v60 = vadd.f32 %v7273_v62, %v7237_v55  ;;  %v690_v63 = vpop.f32.mrf.mxu0 }
 0x19a   : > { %v851_v0 = vpop.f32.mrf.mxu1 }
 0x19b   : > { %v852_v1 = vadd.f32 %v851_v0, %v690_v63  ;;  %v7240_v2 = vpop.f32.mrf.mxu0 }
 0x19c   : > { %v7276_v3 = vpop.f32.mrf.mxu1 }
 0x19d   : > { %v873_v4 = vadd.f32 %v7276_v3, %v7240_v2  ;;  %v703_v5 = vpop.f32.mrf.mxu0 }
 0x19e   : > { %v864_v7 = vpop.f32.mrf.mxu1 }
 0x19f   : > { %v8969_v11 = vadd.f32 %v864_v7, %v703_v5  ;;  %v7241_v12 = vpop.f32.mrf.mxu0 }
 0x1a0   : > { %v7277_v13 = vpop.f32.mrf.mxu1 }
 0x1a1   : > { %v8971_v14 = vadd.f32 %v7277_v13, %v7241_v12  ;;  %v706_v15 = vpop.f32.mrf.mxu0 }
 0x1a2   : > { %v867_v16 = vpop.f32.mrf.mxu1 }
 0x1a3   : > { %v8973_v17 = vadd.f32 %v867_v16, %v706_v15  ;;  %v7244_v18 = vpop.f32.mrf.mxu0 }
 0x1a4   : > { %v7280_v19 = vpop.f32.mrf.mxu1 }
 0x1a5   : > { %v8975_v21 = vadd.f32 %v7280_v19, %v7244_v18  ;;  %v719_v25 = vpop.f32.mrf.mxu0 }
 0x1a6   : > { %v880_v28 = vpop.f32.mrf.mxu1 }
 0x1a7   : > { %v8977_v29 = vadd.f32 %v880_v28, %v719_v25  ;;  %v7245_v30 = vpop.f32.mrf.mxu0 }
 0x1a8   : > { %v7281_v22 = vpop.f32.mrf.mxu1 }
 0x1a9   : > { %v8979_v31 = vadd.f32 %v7281_v22, %v7245_v30  ;;  %v722_v32 = vpop.f32.mrf.mxu0 }
 0x1aa   : > { %v883_v33 = vpop.f32.mrf.mxu1 }
 0x1ab   : > { %v8981_v35 = vadd.f32 %v883_v33, %v722_v32  ;;  %v7248_v36 = vpop.f32.mrf.mxu0 }
 0x1ac   : > { %v7284_v37 = vpop.f32.mrf.mxu1 }
 0x1ad   : > { %v8983_v39 = vadd.f32 %v7284_v37, %v7248_v36  ;;  %v735_v24 = vpop.f32.mrf.mxu0 }
 0x1ae   : > { %v896_v43 = vpop.f32.mrf.mxu1 }
 0x1af   : > { %v8985_v45 = vadd.f32 %v896_v43, %v735_v24  ;;  %v7249_v47 = vpop.f32.mrf.mxu0 }
 0x1b0   : > { %v7285_v48 = vpop.f32.mrf.mxu1 }
 0x1b1   : > { %v8987_v49 = vadd.f32 %v7285_v48, %v7249_v47  ;;  %v738_v50 = vpop.f32.mrf.mxu0 }
 0x1b2   : > { %v899_v51 = vpop.f32.mrf.mxu1 }
 0x1b3   : > { %v8989_v52 = vadd.f32 %v899_v51, %v738_v50  ;;  %v7252_v53 = vpop.f32.mrf.mxu0 }
 0x1b4   : > { %v7288_v59 = vpop.f32.mrf.mxu1 }
 0x1b5   : > { %v8991_v61 = vadd.f32 %v7288_v59, %v7252_v53  ;;  %v751_v26 = vpop.f32.mrf.mxu0 }
 0x1b6   : > { %v912_v27 = vpop.f32.mrf.mxu1 }
 0x1b7   : > { %v8993_v38 = vadd.f32 %v912_v27, %v751_v26  ;;  %v7253_v40 = vpop.f32.mrf.mxu0 }
 0x1b8   : > { %v7289_v41 = vpop.f32.mrf.mxu1 }
 0x1b9   : > { %v8995_v42 = vadd.f32 %v7289_v41, %v7253_v40  ;;  %v754_v54 = vpop.f32.mrf.mxu0 }
 0x1ba   : > { %v915_v56 = vpop.f32.mrf.mxu1 }
 0x1bb   : > { %v8997_v57 = vadd.f32 %v915_v56, %v754_v54  ;;  %v7308_v58 = vpop.f32.mrf.mxu0 }
 0x1bc   : > { %v1137_v6 = vadd.f32 %v7308_v58, %v857_v23  ;;  %v7344_v8 = vpop.f32.mrf.mxu1 }
 0x1bd   : > { %v1056_v9 = vpop.f32.mrf.mxu0 }
 0x1be   : > { %v1135_v10 = vadd.f32 %v1056_v9, %v849_v46  ;;  %v8999_v20 = vadd.f32 %v7344_v8, %v1137_v6  ;;  %v1287_v34 = vpop.f32.mrf.mxu1 }
 0x1bf   : > { %v7309_v44 = vpop.f32.mrf.mxu0 }
 0x1c0   : > { %v1138_v55 = vadd.f32 %v7309_v44, %v860_v60  ;;  %v9001_v62 = vadd.f32 %v1287_v34, %v1135_v10  ;;  %v7345_v63 = vpop.f32.mrf.mxu1 }
 0x1c1   : > { %v1059_v0 = vpop.f32.mrf.mxu0 }
 0x1c2   : > { %v1136_v2 = vadd.f32 %v1059_v0, %v852_v1  ;;  %v9003_v3 = vadd.f32 %v7345_v63, %v1138_v55  ;;  %v1290_v5 = vpop.f32.mrf.mxu1 }
 0x1c3   : > { %v7312_v7 = vpop.f32.mrf.mxu0 }
 0x1c4   : > { %v1141_v12 = vadd.f32 %v7312_v7, %v873_v4  ;;  %v9005_v13 = vadd.f32 %v1290_v5, %v1136_v2  ;;  %v7348_v23 = vpop.f32.mrf.mxu1 }
 0x1c5   : > { %v1072_v15 = vpop.f32.mrf.mxu0 }
 0x1c6   : > { %v1139_v46 = vadd.f32 %v1072_v15, %v8969_v11  ;;  %v9008_v16 = vadd.f32 %v7348_v23, %v1141_v12  ;;  %v1303_v18 = vpop.f32.mrf.mxu1 }
 0x1c7   : > { %v7313_v60 = vpop.f32.mrf.mxu0 }
 0x1c8   : > { %v1142_v19 = vadd.f32 %v7313_v60, %v8971_v14  ;;  %v9011_v25 = vadd.f32 %v1303_v18, %v1139_v46  ;;  %v7349_v1 = vpop.f32.mrf.mxu1 }
 0x1c9   : > { %v1075_v28 = vpop.f32.mrf.mxu0 }
 0x1ca   : > { %v1140_v30 = vadd.f32 %v1075_v28, %v8973_v17  ;;  %v9014_v22 = vadd.f32 %v7349_v1, %v1142_v19  ;;  %v1306_v4 = vpop.f32.mrf.mxu1 }
 0x1cb   : > { %v7316_v32 = vpop.f32.mrf.mxu0 }
 0x1cc   : > { %v1145_v33 = vadd.f32 %v7316_v32, %v8975_v21  ;;  %v9017_v36 = vadd.f32 %v1306_v4, %v1140_v30  ;;  %v7352_v11 = vpop.f32.mrf.mxu1 }
 0x1cd   : > { %v1088_v37 = vpop.f32.mrf.mxu0 }
 0x1ce   : > { %v1143_v24 = vadd.f32 %v1088_v37, %v8977_v29  ;;  %v9020_v43 = vadd.f32 %v7352_v11, %v1145_v33  ;;  %v1319_v14 = vpop.f32.mrf.mxu1 }
 0x1cf   : > { %v7317_v47 = vpop.f32.mrf.mxu0 }
 0x1d0   : > { %v1146_v48 = vadd.f32 %v7317_v47, %v8979_v31  ;;  %v9023_v50 = vadd.f32 %v1319_v14, %v1143_v24  ;;  %v7353_v17 = vpop.f32.mrf.mxu1 }
 0x1d1   : > { %v1091_v51 = vpop.f32.mrf.mxu0 }
 0x1d2   : > { %v1144_v53 = vadd.f32 %v1091_v51, %v8981_v35  ;;  %v9026_v59 = vadd.f32 %v7353_v17, %v1146_v48  ;;  %v1322_v21 = vpop.f32.mrf.mxu1 }
 0x1d3   : > { %v7320_v26 = vpop.f32.mrf.mxu0 }
 0x1d4   : > { %v1149_v27 = vadd.f32 %v7320_v26, %v8983_v39  ;;  %v9029_v40 = vadd.f32 %v1322_v21, %v1144_v53  ;;  %v7356_v29 = vpop.f32.mrf.mxu1 }
 0x1d5   : > { %v1104_v41 = vpop.f32.mrf.mxu0 }
 0x1d6   : > { %v1147_v54 = vadd.f32 %v1104_v41, %v8985_v45  ;;  %v9032_v56 = vadd.f32 %v7356_v29, %v1149_v27  ;;  %v1335_v31 = vpop.f32.mrf.mxu1 }
 0x1d7   : > { %v7321_v58 = vpop.f32.mrf.mxu0 }
 0x1d8   : > { %v1150_v6 = vadd.f32 %v7321_v58, %v8987_v49  ;;  %v9035_v8 = vadd.f32 %v1335_v31, %v1147_v54  ;;  %v7357_v35 = vpop.f32.mrf.mxu1 }
 0x1d9   : > { %v1107_v9 = vpop.f32.mrf.mxu0 }
 0x1da   : > { %v1148_v10 = vadd.f32 %v1107_v9, %v8989_v52  ;;  %v1381_v34 = vadd.f32 %v7357_v35, %v1150_v6  ;;  %v1338_v39 = vpop.f32.mrf.mxu1 }
 0x1db   : > { %v7324_v44 = vpop.f32.mrf.mxu0 }
 0x1dc   : > { %v1153_v55 = vadd.f32 %v7324_v44, %v8991_v61  ;;  %v1379_v63 = vadd.f32 %v1338_v39, %v1148_v10  ;;  %v7360_v0 = vpop.f32.mrf.mxu1 }
 0x1dd   : > { %v1120_v45 = vpop.f32.mrf.mxu0 }
 0x1de   : > { %v1151_v2 = vadd.f32 %v1120_v45, %v8993_v38  ;;  %v1384_v5 = vadd.f32 %v7360_v0, %v1153_v55  ;;  %v1351_v7 = vpop.f32.mrf.mxu1 }
 0x1df   : > { %v7325_v12 = vpop.f32.mrf.mxu0 }
 0x1e0   : > { %v1154_v49 = vadd.f32 %v7325_v12, %v8995_v42  ;;  %v1382_v23 = vadd.f32 %v1351_v7, %v1151_v2  ;;  %v7361_v15 = vpop.f32.mrf.mxu1 }
 0x1e1   : > { %v1123_v46 = vpop.f32.mrf.mxu0 }
 0x1e2   : > { %v1152_v52 = vadd.f32 %v1123_v46, %v8997_v57  ;;  %v1385_v18 = vadd.f32 %v7361_v15, %v1154_v49  ;;  %v1354_v60 = vpop.f32.mrf.mxu1 }
 0x1e3   : > { %v7380_v19 = vpop.f32.mrf.mxu0 }
 0x1e4   : > { %v1383_v1 = vadd.f32 %v1354_v60, %v1152_v52  ;;  %v9043_v61 = vadd.f32 %v7380_v19, %v8999_v20  ;;  %v9045_v28 = vpop.f32.mrf.mxu1 }
 0x1e5   : > { %v1515_v38 = vpop.f32.mrf.mxu0 }
 0x1e6   : > { %v9048_v30 = vadd.f32 %v1515_v38, %v9001_v62  ;;  %v9050_v4 = vpop.f32.mrf.mxu1 }
 0x1e7   : > { %v7381_v42 = vpop.f32.mrf.mxu0 }
 0x1e8   : > { %v9053_v32 = vadd.f32 %v7381_v42, %v9003_v3  ;;  %v9055_v57 = vpop.f32.mrf.mxu1 }
 0x1e9   : > { %v1518_v33 = vpop.f32.mrf.mxu0 }
 0x1ea   : > { %v9058_v11 = vadd.f32 %v1518_v33, %v9005_v13  ;;  %v9060_v20 = vpop.f32.mrf.mxu1 }
 0x1eb   : > { %v7384_v37 = vpop.f32.mrf.mxu0 }
 0x1ec   : > { %v9063_v24 = vadd.f32 %v7384_v37, %v9008_v16  ;;  %v9065_v62 = vpop.f32.mrf.mxu1 }
 0x1ed   : > { %v1531_v14 = vpop.f32.mrf.mxu0 }
 0x1ee   : > { %v9068_v47 = vadd.f32 %v1531_v14, %v9011_v25  ;;  %v9070_v3 = vpop.f32.mrf.mxu1 }
 0x1ef   : > { %v7385_v48 = vpop.f32.mrf.mxu0 }
 0x1f0   : > { %v9073_v17 = vadd.f32 %v7385_v48, %v9014_v22  ;;  %v9075_v13 = vpop.f32.mrf.mxu1 }
 0x1f1   : > { %v1534_v51 = vpop.f32.mrf.mxu0 }
 0x1f2   : > { %v9078_v53 = vadd.f32 %v1534_v51, %v9017_v36  ;;  %v9080_v16 = vpop.f32.mrf.mxu1 }
 0x1f3   : > { %v7388_v21 = vpop.f32.mrf.mxu0 }
 0x1f4   : > { %v9083_v26 = vadd.f32 %v7388_v21, %v9020_v43  ;;  %v9085_v25 = vpop.f32.mrf.mxu1 }
 0x1f5   : > { %v1547_v27 = vpop.f32.mrf.mxu0 }
 0x1f6   : > { %v9088_v29 = vadd.f32 %v1547_v27, %v9023_v50  ;;  %v9090_v22 = vpop.f32.mrf.mxu1 }
 0x1f7   : > { %v7389_v41 = vpop.f32.mrf.mxu0 }
 0x1f8   : > { %v9093_v54 = vadd.f32 %v7389_v41, %v9026_v59  ;;  %v9095_v36 = vpop.f32.mrf.mxu1 }
 0x1f9   : > { %v1550_v31 = vpop.f32.mrf.mxu0 }
 0x1fa   : > { %v9098_v58 = vadd.f32 %v1550_v31, %v9029_v40  ;;  %v9100_v43 = vpop.f32.mrf.mxu1 }
 0x1fb   : > { %v7392_v6 = vpop.f32.mrf.mxu0 }
 0x1fc   : > { %v9103_v35 = vadd.f32 %v7392_v6, %v9032_v56  ;;  %v9105_v50 = vpop.f32.mrf.mxu1 }
 0x1fd   : > { %v1563_v9 = vpop.f32.mrf.mxu0 }
 0x1fe   : > { %v9108_v10 = vadd.f32 %v1563_v9, %v9035_v8  ;;  %v9110_v59 = vpop.f32.mrf.mxu1 }
 0x1ff   : > { %v7393_v39 = vpop.f32.mrf.mxu0 }
 0x200   : > { %v9112_v44 = vadd.f32 %v7393_v39, %v1381_v34  ;;  %v9114_v55 = vpop.f32.mrf.mxu1 }
 0x201   : > { %v1566_v40 = vpop.f32.mrf.mxu0 }
 0x202   : > { %v9116_v0 = vadd.f32 %v1566_v40, %v1379_v63  ;;  %v9118_v45 = vpop.f32.mrf.mxu1 }
 0x203   : > { %10458 = vst [vmem:[#allocation28_spill] sm:$0xff] %v9118_v45  ;;  %v7396_v56 = vpop.f32.mrf.mxu0 }
 0x204   : > { %10457 = vst [vmem:[#allocation27_spill] sm:$0xff] %v9116_v0  ;;  %v9120_v2 = vadd.f32 %v7396_v56, %v1384_v5  ;;  %v9122_v7 = vpop.f32.mrf.mxu1 }
 0x205   : > { %10460 = vst [vmem:[#allocation30_spill] sm:$0xff] %v9122_v7  ;;  %v1579_v12 = vpop.f32.mrf.mxu0 }
 0x206   : > { %10459 = vst [vmem:[#allocation29_spill] sm:$0xff] %v9120_v2  ;;  %v9124_v8 = vadd.f32 %v1579_v12, %v1382_v23  ;;  %v9126_v49 = vpop.f32.mrf.mxu1 }
 0x207   : > { %10462 = vst [vmem:[#allocation32_spill] sm:$0xff] %v9126_v49  ;;  %v7397_v15 = vpop.f32.mrf.mxu0 }
 0x208   : > { %10461 = vst [vmem:[#allocation31_spill] sm:$0xff] %v9124_v8  ;;  %v9128_v34 = vadd.f32 %v7397_v15, %v1385_v18  ;;  %v9130_v46 = vpop.f32.mrf.mxu1  ;;  %v1822_v8 = vadd.f32 %v9050_v4, %v9048_v30  ;;  %v9181_v4 = vld [vmem:[%s10406_s2] ss:$0 sm:$0xff] }
 0x209   : > { %10464 = vst [vmem:[#allocation34_spill] sm:$0xff] %v9130_v46  ;;  %v1582_v52 = vpop.f32.mrf.mxu0  ;;  %v1824_v46 = vadd.f32 %v9045_v28, %v9043_v61  ;;  %v1823_v61 = vadd.f32 %v9060_v20, %v9058_v11 }
 0x20a   : > { %10463 = vst [vmem:[#allocation33_spill] sm:$0xff] %v9128_v34  ;;  %v9132_v63 = vadd.f32 %v1582_v52, %v1383_v1  ;;  %v9134_v60 = vpop.f32.mrf.mxu1 }
 0x20b   : > { %10466 = vst [vmem:[#allocation36_spill] sm:$0xff] %v9134_v60  ;;  %v7452_v19 = vpop.f32.mrf.mxu0 }
 0x20c   : > { %10465 = vst [vmem:[#allocation35_spill] sm:$0xff] %v9132_v63  ;;  %v7488_v5 = vpop.f32.mrf.mxu1  ;;  %v2055_v7 = vadd.f32 %v7452_v19, %v1824_v46  ;;  %v1826_v19 = vadd.f32 %v9070_v3, %v9068_v47  ;;  %v1827_v47 = vadd.f32 %v9080_v16, %v9078_v53 }
 0x20d   : > { %v1974_v38 = vpop.f32.mrf.mxu0 }
 0x20e   : > { %v2202_v42 = vpop.f32.mrf.mxu1  ;;  %v2053_v45 = vadd.f32 %v1974_v38, %v1822_v8  ;;  %v2283_v28 = vadd.f32 %v7488_v5, %v2055_v7 }
 0x20f   : > { %v7453_v33 = vpop.f32.mrf.mxu0 }
 0x210   : > { %v7489_v37 = vpop.f32.mrf.mxu1 }
 0x211   : > { %v1977_v23 = vpop.f32.mrf.mxu0 }
 0x212   : > { %v2205_v48 = vpop.f32.mrf.mxu1 }
 0x213   : > { %v7456_v14 = vpop.f32.mrf.mxu0 }
 0x214   : > { %v7492_v18 = vpop.f32.mrf.mxu1 }
 0x215   : > { %v1990_v51 = vpop.f32.mrf.mxu0 }
 0x216   : > { %v2218_v31 = vpop.f32.mrf.mxu1  ;;  %v2057_v38 = vadd.f32 %v1990_v51, %v1826_v19 }
 0x217   : > { %v7457_v21 = vpop.f32.mrf.mxu0 }
 0x218   : > { %v7493_v9 = vpop.f32.mrf.mxu1 }
 0x219   : > { %v1993_v27 = vpop.f32.mrf.mxu0 }
 0x21a   : > { %v9146_v56 = vpop.f32.mrf.mxu1  ;;  %v2058_v51 = vadd.f32 %v1993_v27, %v1827_v47 }
 0x21b   : > { %v9136_v41 = vpop.f32.mrf.mxu0 }
 0x21c   : > { %v9152_v52 = vpop.f32.mrf.mxu1 }
 0x21d   : > { %v9138_v1 = vpop.f32.mrf.mxu0 }
 0x21e   : > { %v9160_v34 = vpop.f32.mrf.mxu1 }
 0x21f   : > { %v9140_v6 = vpop.f32.mrf.mxu0 }
 0x221   : > { %v9142_v39 = vpop.f32.mrf.mxu0 }
 0x223   : > { %v9144_v40 = vpop.f32.mrf.mxu0 }
 0x225   : > { %v9148_v12 = vpop.f32.mrf.mxu0 }
 0x227   : > { %v9150_v15 = vpop.f32.mrf.mxu0 }
 0x228   : > { %10467 = vst [vmem:[#allocation37_spill] sm:$0xff] %v9150_v15  ;;  %v1825_v15 = vadd.f32 %v9055_v57, %v9053_v32  ;;  %v2281_v32 = vadd.f32 %v2202_v42, %v2053_v45  ;;  %v2054_v57 = vadd.f32 %v1977_v23, %v1823_v61 }
 0x229   : > { %v9154_v60 = vpop.f32.mrf.mxu0 }
 0x22a   : > { %10468 = vst [vmem:[#allocation38_spill] sm:$0xff] %v9154_v60  ;;  %v9170_v60 = vpop.f32.mrf.mxu1  ;;  %v2056_v0 = vadd.f32 %v7453_v33, %v1825_v15  ;;  %v2282_v15 = vadd.f32 %v2205_v48, %v2054_v57  ;;  %v2285_v48 = vadd.f32 %v2218_v31, %v2057_v38  ;;  %v1831_v38 = vadd.f32 %v9100_v43, %v9098_v58 }
 0x22b   : > { %v9156_v63 = vpop.f32.mrf.mxu0 }
 0x22c   : > { %10469 = vst [vmem:[#allocation39_spill] sm:$0xff] %v9156_v63  ;;  %v9183_v8 = vpop.f32.mrf.mxu1  ;;  %v2284_v7 = vadd.f32 %v7489_v37, %v2056_v0  ;;  %v2062_v47 = vadd.f32 %v9142_v39, %v1831_v38 }
 0x22d   : > { %v9162_v49 = vpop.f32.mrf.mxu0 }
 0x22e   : > { %10470 = vst [vmem:[#allocation40_spill] sm:$0xff] %v9162_v49  ;;  %v1828_v49 = vadd.f32 %v9065_v62, %v9063_v24  ;;  %v1829_v62 = vadd.f32 %v9075_v13, %v9073_v17  ;;  %v9190_v45 = vpop.f32.mrf.mxu1  ;;  %v1832_v13 = vadd.f32 %v9085_v25, %v9083_v26 }
 0x22f   : > { %v9166_v2 = vpop.f32.mrf.mxu0 }
 0x230   : > { %v2059_v11 = vadd.f32 %v7456_v14, %v1828_v49  ;;  %v2060_v0 = vadd.f32 %v7457_v21, %v1829_v62  ;;  %v1830_v21 = vadd.f32 %v9090_v22, %v9088_v29  ;;  %v2063_v19 = vadd.f32 %v9136_v41, %v1832_v13 }
 0x231   : > { %v9172_v63 = vpop.f32.mrf.mxu0  ;;  %v2290_v13 = vadd.f32 %v9183_v8, %v2062_v47 }
 0x232   : > { %v2287_v3 = vadd.f32 %v7492_v18, %v2059_v11  ;;  %v2288_v18 = vadd.f32 %v7493_v9, %v2060_v0 }
 0x233   : > { %v7524_v30 = vpop.f32.mrf.mxu0 }
 0x234   : > { %v2511_v46 = vadd.f32 %v7524_v30, %v2283_v28 }
 0x235   : > { %v2430_v20 = vpop.f32.mrf.mxu0 }
 0x236   : > { %v2538_v5 = vadd.f32 %v9181_v4, %v2511_v46  ;;  %v2509_v24 = vadd.f32 %v2430_v20, %v2281_v32  ;;  %v9198_v32 = vpop.f32.mrf.mxu1  ;;  %v1833_v20 = vadd.f32 %v9095_v36, %v9093_v54 }
 0x237   : > { %v7525_v33 = vpop.f32.mrf.mxu0 }
 0x238   : > { %v2558_v42 = vmax.f32 %v2538_v5, 0.0  ;;  %v2536_v23 = vadd.f32 %v9181_v4, %v2509_v24  ;;  %v2512_v61 = vadd.f32 %v7525_v33, %v2284_v7  ;;  %v2286_v7 = vadd.f32 %v9146_v56, %v2058_v51  ;;  %v9209_v62 = vpop.f32.mrf.mxu1 }
 0x239   : > { %v2433_v49 = vpop.f32.mrf.mxu0  ;;  %v2061_v5 = vadd.f32 %v9138_v1, %v1830_v21  ;;  %v2291_v33 = vadd.f32 %v9152_v52, %v2063_v19  ;;  %v2064_v54 = vadd.f32 %v9140_v6, %v1833_v20  ;;  %v10473_v21 = vld [vmem:[#allocation37_spill] sm:$0xff] }
 0x23a   : > { %v6877_v37 = vpack.c.bf16 %v2558_v42, %v2558_v42  ;;  %v2556_v14 = vmax.f32 %v2536_v23, 0.0  ;;  %v2539_v28 = vadd.f32 %v9181_v4, %v2512_v61  ;;  %v2510_v17 = vadd.f32 %v2433_v49, %v2282_v15  ;;  %v2253_v58 = vpop.f32.mrf.mxu1 }
 0x23b   : > { %v7528_v30 = vpop.f32.mrf.mxu0  ;;  %v1836_v23 = vadd.f32 %v9105_v50, %v9103_v35  ;;  %v2289_v61 = vadd.f32 %v9160_v34, %v2061_v5  ;;  %v1834_v49 = vadd.f32 %v9110_v59, %v9108_v10 }
 0x23c   : > { %2658 = vst [vmem:[#allocation3 + $0x14] sm:$0xf] %v6877_v37  ;;  %v6875_v57 = vpack.c.bf16 %v2556_v14, %v2556_v14  ;;  %v2559_v46 = vmax.f32 %v2539_v28, 0.0  ;;  %v2537_v53 = vadd.f32 %v9181_v4, %v2510_v17  ;;  %v2515_v16 = vadd.f32 %v7528_v30, %v2287_v3  ;;  %v7504_v10 = vpop.f32.mrf.mxu1 }
 0x23d   : > { %v2446_v11 = vpop.f32.mrf.mxu0  ;;  %v2292_v37 = vadd.f32 %v9170_v60, %v2064_v54  ;;  %v2067_v14 = vadd.f32 %v9144_v40, %v1836_v23  ;;  %v1837_v17 = vadd.f32 %v9114_v55, %v9112_v44  ;;  %v10479_v54 = vld [vmem:[#allocation39_spill] sm:$0xff]  ;;  %v10480_v23 = vld [vmem:[#allocation33_spill] sm:$0xff] }
 0x23e   : > { %2656 = vst [vmem:[#allocation3 + $0x4] sm:$0xf] %v6875_v57  ;;  %v6878_v26 = vpack.c.bf16 %v2559_v46, %v2559_v46  ;;  %v2557_v25 = vmax.f32 %v2537_v53, 0.0  ;;  %v2542_v27 = vadd.f32 %v9181_v4, %v2515_v16  ;;  %v2513_v31 = vadd.f32 %v2446_v11, %v2285_v48  ;;  %v10471_v57 = vld [vmem:[#allocation27_spill] sm:$0xff]  ;;  %v10472_v46 = vld [vmem:[#allocation28_spill] sm:$0xff]  ;;  %v10474_v11 = vld [vmem:[#allocation29_spill] sm:$0xff]  ;;  %v2266_v5 = vpop.f32.mrf.mxu1 }
 0x23f   : > { %v7529_v24 = vpop.f32.mrf.mxu0  ;;  %v2065_v48 = vadd.f32 %v9148_v12, %v1834_v49  ;;  %v1835_v53 = vadd.f32 %v10472_v46, %v10471_v57  ;;  %v2295_v16 = vadd.f32 %v9190_v45, %v2067_v14 }
 0x240   : > { %2659 = vst [vmem:[#allocation3 + $0x18] sm:$0xf] %v6878_v26  ;;  %v6876_v29 = vpack.c.bf16 %v2557_v25, %v2557_v25  ;;  %v2562_v22 = vmax.f32 %v2542_v27, 0.0  ;;  %v2540_v41 = vadd.f32 %v9181_v4, %v2513_v31  ;;  %v2516_v9 = vadd.f32 %v7529_v24, %v2288_v18  ;;  %v10475_v26 = vld [vmem:[#allocation30_spill] sm:$0xff] }
 0x241   : > { %v2449_v36 = vpop.f32.mrf.mxu0  ;;  %v2068_v18 = vadd.f32 %v10473_v21, %v1837_v17  ;;  %v1840_v25 = vadd.f32 %v10475_v26, %v10474_v11  ;;  %v2293_v27 = vadd.f32 %v9198_v32, %v2065_v48  ;;  %v10476_v31 = vld [vmem:[#allocation38_spill] sm:$0xff] }
 0x242   : > { %2657 = vst [vmem:[#allocation3 + $0x8] sm:$0xf] %v6876_v29  ;;  %v6881_v56 = vpack.c.bf16 %v2562_v22, %v2562_v22  ;;  %v2560_v1 = vmax.f32 %v2540_v41, 0.0  ;;  %v2543_v15 = vadd.f32 %v9181_v4, %v2516_v9  ;;  %v2514_v42 = vadd.f32 %v2449_v36, %v2286_v7  ;;  %v10477_v41 = vld [vmem:[#allocation31_spill] sm:$0xff]  ;;  %v10478_v9 = vld [vmem:[#allocation32_spill] sm:$0xff] }
 0x243   : > { %v7532_v3 = vpop.f32.mrf.mxu0  ;;  %v2066_v20 = vadd.f32 %v10476_v31, %v1835_v53  ;;  %v1838_v38 = vadd.f32 %v10478_v9, %v10477_v41  ;;  %v2071_v36 = vadd.f32 %v10479_v54, %v1840_v25 }
 0x244   : > { %2662 = vst [vmem:[#allocation3 + $0x34] sm:$0xf] %v6881_v56  ;;  %v6879_v43 = vpack.c.bf16 %v2560_v1, %v2560_v1  ;;  %v2563_v52 = vmax.f32 %v2543_v15, 0.0  ;;  %v2541_v6 = vadd.f32 %v9181_v4, %v2514_v42  ;;  %v2519_v0 = vadd.f32 %v7532_v3, %v2291_v33 }
 0x245   : > { %v2462_v35 = vpop.f32.mrf.mxu0  ;;  %v2296_v33 = vadd.f32 %v9209_v62, %v2068_v18  ;;  %v2294_v3 = vadd.f32 %v2253_v58, %v2066_v20 }
 0x246   : > { %2660 = vst [vmem:[#allocation3 + $0x24] sm:$0xf] %v6879_v43  ;;  %v6882_v50 = vpack.c.bf16 %v2563_v52, %v2563_v52  ;;  %v2561_v34 = vmax.f32 %v2541_v6, 0.0  ;;  %v2546_v39 = vadd.f32 %v9181_v4, %v2519_v0  ;;  %v2517_v28 = vadd.f32 %v2462_v35, %v2289_v61  ;;  %v10481_v61 = vld [vmem:[#allocation34_spill] sm:$0xff]  ;;  %v10482_v43 = vld [vmem:[#allocation40_spill] sm:$0xff]  ;;  %v7505_v0 = vpop.f32.mrf.mxu1  ;;  %v10483_v35 = vld [vmem:[#allocation35_spill] sm:$0xff] }
 0x247   : > { %v7533_v51 = vpop.f32.mrf.mxu0  ;;  %v1841_v47 = vadd.f32 %v10481_v61, %v10480_v23  ;;  %v2069_v52 = vadd.f32 %v10482_v43, %v1838_v38 }
 0x248   : > { %2663 = vst [vmem:[#allocation3 + $0x38] sm:$0xf] %v6882_v50  ;;  %v6880_v59 = vpack.c.bf16 %v2561_v34, %v2561_v34  ;;  %v2566_v60 = vmax.f32 %v2546_v39, 0.0  ;;  %v2544_v40 = vadd.f32 %v9181_v4, %v2517_v28  ;;  %v2520_v30 = vadd.f32 %v7533_v51, %v2292_v37  ;;  %v10484_v50 = vld [vmem:[#allocation36_spill] sm:$0xff] }
 0x249   : > { %v2465_v44 = vpop.f32.mrf.mxu0  ;;  %v1839_v34 = vadd.f32 %v10484_v50, %v10483_v35  ;;  %v2299_v39 = vadd.f32 %v7504_v10, %v2071_v36  ;;  %v2072_v28 = vadd.f32 %v9166_v2, %v1841_v47 }
 0x24a   : > { %2661 = vst [vmem:[#allocation3 + $0x28] sm:$0xf] %v6880_v59  ;;  %v6885_v55 = vpack.c.bf16 %v2566_v60, %v2566_v60  ;;  %v2564_v8 = vmax.f32 %v2544_v40, 0.0  ;;  %v2547_v12 = vadd.f32 %v9181_v4, %v2520_v30  ;;  %v2518_v19 = vadd.f32 %v2465_v44, %v2290_v13  ;;  %v2269_v30 = vpop.f32.mrf.mxu1 }
 0x24b   : > { %v7536_v7 = vpop.f32.mrf.mxu0  ;;  %v2297_v59 = vadd.f32 %v2266_v5, %v2069_v52  ;;  %v2070_v60 = vadd.f32 %v9172_v63, %v1839_v34 }
 0x24c   : > { %2666 = vst [vmem:[#allocation3 + $0x54] sm:$0xf] %v6885_v55  ;;  %v6883_v45 = vpack.c.bf16 %v2564_v8, %v2564_v8  ;;  %v2567_v24 = vmax.f32 %v2547_v12, 0.0  ;;  %v2545_v29 = vadd.f32 %v9181_v4, %v2518_v19  ;;  %v2523_v22 = vadd.f32 %v7536_v7, %v2295_v16 }
 0x24d   : > { %v2478_v56 = vpop.f32.mrf.mxu0  ;;  %v2300_v16 = vadd.f32 %v7505_v0, %v2072_v28  ;;  %v2298_v8 = vadd.f32 %v2269_v30, %v2070_v60 }
 0x24e   : > { %2664 = vst [vmem:[#allocation3 + $0x44] sm:$0xf] %v6883_v45  ;;  %v6886_v32 = vpack.c.bf16 %v2567_v24, %v2567_v24  ;;  %v2565_v1 = vmax.f32 %v2545_v29, 0.0  ;;  %v2550_v15 = vadd.f32 %v9181_v4, %v2523_v22  ;;  %v2521_v42 = vadd.f32 %v2478_v56, %v2293_v27 }
 0x24f   : > { %v7537_v6 = vpop.f32.mrf.mxu0 }
 0x250   : > { %2667 = vst [vmem:[#allocation3 + $0x58] sm:$0xf] %v6886_v32  ;;  %v6884_v49 = vpack.c.bf16 %v2565_v1, %v2565_v1  ;;  %v2570_v62 = vmax.f32 %v2550_v15, 0.0  ;;  %v2548_v37 = vadd.f32 %v9181_v4, %v2521_v42  ;;  %v2524_v14 = vadd.f32 %v7537_v6, %v2296_v33 }
 0x251   : > { %v2481_v17 = vpop.f32.mrf.mxu0 }
 0x252   : > { %2665 = vst [vmem:[#allocation3 + $0x48] sm:$0xf] %v6884_v49  ;;  %v6889_v13 = vpack.c.bf16 %v2570_v62, %v2570_v62  ;;  %v2568_v58 = vmax.f32 %v2548_v37, 0.0  ;;  %v2551_v48 = vadd.f32 %v9181_v4, %v2524_v14  ;;  %v2522_v51 = vadd.f32 %v2481_v17, %v2294_v3 }
 0x253   : > { %v7540_v40 = vpop.f32.mrf.mxu0 }
 0x254   : > { %2670 = vst [vmem:[#allocation3 + $0x74] sm:$0xf] %v6889_v13  ;;  %v6887_v57 = vpack.c.bf16 %v2568_v58, %v2568_v58  ;;  %v2571_v46 = vmax.f32 %v2551_v48, 0.0  ;;  %v2549_v53 = vadd.f32 %v9181_v4, %v2522_v51  ;;  %v2527_v10 = vadd.f32 %v7540_v40, %v2299_v39 }
 0x255   : > { %v2494_v2 = vpop.f32.mrf.mxu0 }
 0x256   : > { %2668 = vst [vmem:[#allocation3 + $0x64] sm:$0xf] %v6887_v57  ;;  %v6890_v21 = vpack.c.bf16 %v2571_v46, %v2571_v46  ;;  %v2569_v18 = vmax.f32 %v2549_v53, 0.0  ;;  %v2554_v44 = vadd.f32 %v9181_v4, %v2527_v10  ;;  %v2525_v55 = vadd.f32 %v2494_v2, %v2297_v59 }
 0x257   : > { %v7541_v12 = vpop.f32.mrf.mxu0 }
 0x258   : > { %2671 = vst [vmem:[#allocation3 + $0x78] sm:$0xf] %v6890_v21  ;;  %v6888_v63 = vpack.c.bf16 %v2569_v18, %v2569_v18  ;;  %v2574_v19 = vmax.f32 %v2554_v44, 0.0  ;;  %v2552_v11 = vadd.f32 %v9181_v4, %v2525_v55  ;;  %v2528_v26 = vadd.f32 %v7541_v12, %v2300_v16 }
 0x259   : > { %v2497_v25 = vpop.f32.mrf.mxu0 }
 0x25a   : > { %2669 = vst [vmem:[#allocation3 + $0x68] sm:$0xf] %v6888_v63  ;;  %v6893_v27 = vpack.c.bf16 %v2574_v19, %v2574_v19  ;;  %v2572_v31 = vmax.f32 %v2552_v11, 0.0  ;;  %v2555_v20 = vadd.f32 %v9181_v4, %v2528_v26  ;;  %v2526_v7 = vadd.f32 %v2497_v25, %v2298_v8 }
 0x25c   : > { %2674 = vst [vmem:[#allocation3 + $0x94] sm:$0xf] %v6893_v27  ;;  %v6891_v5 = vpack.c.bf16 %v2572_v31, %v2572_v31  ;;  %v2575_v45 = vmax.f32 %v2555_v20, 0.0  ;;  %v2553_v24 = vadd.f32 %v9181_v4, %v2526_v7 }
 0x25e   : > { %2672 = vst [vmem:[#allocation3 + $0x84] sm:$0xf] %v6891_v5  ;;  %v6894_v29 = vpack.c.bf16 %v2575_v45, %v2575_v45  ;;  %v2573_v22 = vmax.f32 %v2553_v24, 0.0  ;;  %2678 = sbr.rel (%p6447_p2) target bundleno = 616 (0x268), region = 72 }
 0x260   : > { %2675 = vst [vmem:[#allocation3 + $0x98] sm:$0xf] %v6894_v29  ;;  %v6892_v41 = vpack.c.bf16 %v2573_v22, %v2573_v22 }
 0x262   : > { %2673 = vst [vmem:[#allocation3 + $0x88] sm:$0xf] %v6892_v41 }
 0x263   : > { %vm2682_vm3 = vcmask 1040384   ;;  %vm2683_vm4 = vsmask.f32 256  ;;  %v2685_v9 = vld [vmem:[#allocation3 + $0xc] sm:$0x1]  ;;  %v8441_v38 = vmov 0  }
 0x264   : > { %2679 = vst [vmem:[#allocation3] sm:$0xf] %v8441_v38  ;;  %2680 = vst [vmem:[#allocation3 + $0x4] sm:$0xf] %v8441_v38 }
 0x265   : > { %2681 = vst [vmem:[#allocation3 + $0x8] sm:$0xf] %v8441_v38  ;;  %vm2684_vm5 = vmand %vm2682_vm3, %vm2683_vm4 }
 0x266   : > { %v2686_v33 = vsel %vm2684_vm5, 0, %v2685_v9 }
 0x267   : > { %2687 = vst [vmem:[#allocation3 + $0xc] sm:$0x1] %v2686_v33 }
 0x268 PF: > { %p6668_p10 = scmp.ne.s32.totalorder %s8413_s30, 1 }
 0x269   : > { %s6669_s10 = sadd.s32 (!%p6668_p10), 4294967295, %s6448_s17 }
 0x26a   : > { %2691 = sbr.rel (%p6668_p10) target bundleno = 666 (0x29a), region = 76 }
 0x26f   : > { %v2713_v4 = vld [vmem:[#allocation3] sm:$0xf]  ;;  %v2714_v54 = vld [vmem:[#allocation3 + $0x4] sm:$0xf]  ;;  %vm2816_vm6 = vcmask 1040384   ;;  %v9266_v36 = vstv %s6669_s10 }
 0x270   : > { %v2715_v56 = vld [vmem:[#allocation3 + $0x8] sm:$0xf]  ;;  %v2716_v32 = vld [vmem:[#allocation3 + $0xc] sm:$0x1]  ;;  %vm2817_vm7 = vsmask.f32 256 }
 0x271   : > { %vm2703_vm8 = vcmp.lt.s32.totalorder %v9266_v36, 16  ;;  %vm9269_vm9 = vmand %vm2816_vm6, %vm2817_vm7  ;;  %v2819_v15 = vld [vmem:[#allocation3 + $0xc] sm:$0x1]  ;;  %v2694_v42 = vadd.s32 1, %v9266_v36  ;;  %v2717_v23 = vld [vmem:[#allocation3 + $0x10] sm:$0xf] }
 0x272   : > { %v2773_v61 = vsel %vm2703_vm8, %v2713_v4, 0  ;;  %v2774_v47 = vsel %vm2703_vm8, %v2714_v54, 0  ;;  %v2775_v3 = vsel %vm2703_vm8, %v2715_v56, 0  ;;  %v2776_v43 = vsel %vm2703_vm8, %v2716_v32, 0  ;;  %v2718_v52 = vld [vmem:[#allocation3 + $0x14] sm:$0xf] }
 0x273   : > { %2813 = vst [vmem:[#allocation3] sm:$0xf] %v2773_v61  ;;  %2814 = vst [vmem:[#allocation3 + $0x4] sm:$0xf] %v2774_v47  ;;  %v2820_v6 = vsel %vm9269_vm9, %v2776_v43, %v2819_v15  ;;  %vm2704_vm10 = vcmp.lt.s32.totalorder %v2694_v42, 16  ;;  %v2695_v62 = vadd.s32 2, %v9266_v36 }
 0x274   : > { %2815 = vst [vmem:[#allocation3 + $0x8] sm:$0xf] %v2775_v3  ;;  %v2719_v0 = vld [vmem:[#allocation3 + $0x18] sm:$0xf]  ;;  %v2720_v49 = vld [vmem:[#allocation3 + $0x1c] sm:$0x1] }
 0x275   : > { %2821 = vst [vmem:[#allocation3 + $0xc] sm:$0x1] %v2820_v6  ;;  %v2777_v37 = vsel %vm2704_vm10, %v2717_v23, 0  ;;  %v2778_v14 = vsel %vm2704_vm10, %v2718_v52, 0  ;;  %v2779_v35 = vsel %vm2704_vm10, %v2719_v0, 0  ;;  %v2780_v50 = vsel %vm2704_vm10, %v2720_v49, 0 }
 0x276   : > { %v2825_v34 = vld [vmem:[#allocation3 + $0x1c] sm:$0x1]  ;;  %2822 = vst [vmem:[#allocation3 + $0x10] sm:$0xf] %v2777_v37  ;;  %2823 = vst [vmem:[#allocation3 + $0x14] sm:$0xf] %v2778_v14 }
 0x277   : > { %2824 = vst [vmem:[#allocation3 + $0x18] sm:$0xf] %v2779_v35  ;;  %v2826_v39 = vsel %vm9269_vm9, %v2780_v50, %v2825_v34  ;;  %vm2705_vm11 = vcmp.lt.s32.totalorder %v2695_v62, 16  ;;  %v2721_v28 = vld [vmem:[#allocation3 + $0x20] sm:$0xf]  ;;  %v2696_v13 = vadd.s32 3, %v9266_v36 }
 0x278   : > { %v2722_v17 = vld [vmem:[#allocation3 + $0x24] sm:$0xf]  ;;  %2827 = vst [vmem:[#allocation3 + $0x1c] sm:$0x1] %v2826_v39  ;;  %v2781_v58 = vsel %vm2705_vm11, %v2721_v28, 0  ;;  %v2697_v57 = vadd.s32 4, %v9266_v36 }
 0x279   : > { %v2782_v48 = vsel %vm2705_vm11, %v2722_v17, 0  ;;  %v2723_v51 = vld [vmem:[#allocation3 + $0x28] sm:$0xf]  ;;  %v2724_v59 = vld [vmem:[#allocation3 + $0x2c] sm:$0x1]  ;;  %vm2706_vm12 = vcmp.lt.s32.totalorder %v2696_v13, 16 }
 0x27a   : > { %2828 = vst [vmem:[#allocation3 + $0x20] sm:$0xf] %v2781_v58  ;;  %2829 = vst [vmem:[#allocation3 + $0x24] sm:$0xf] %v2782_v48  ;;  %v2783_v60 = vsel %vm2705_vm11, %v2723_v51, 0  ;;  %v2784_v40 = vsel %vm2705_vm11, %v2724_v59, 0 }
 0x27b   : > { %v2831_v30 = vld [vmem:[#allocation3 + $0x2c] sm:$0x1]  ;;  %2830 = vst [vmem:[#allocation3 + $0x28] sm:$0xf] %v2783_v60  ;;  %v2725_v53 = vld [vmem:[#allocation3 + $0x30] sm:$0xf] }
 0x27c   : > { %v2832_v46 = vsel %vm9269_vm9, %v2784_v40, %v2831_v30  ;;  %v2726_v10 = vld [vmem:[#allocation3 + $0x34] sm:$0xf]  ;;  %v2727_v16 = vld [vmem:[#allocation3 + $0x38] sm:$0xf]  ;;  %v2785_v2 = vsel %vm2706_vm12, %v2725_v53, 0  ;;  %vm2707_vm13 = vcmp.lt.s32.totalorder %v2697_v57, 16 }
 0x27d   : > { %2833 = vst [vmem:[#allocation3 + $0x2c] sm:$0x1] %v2832_v46  ;;  %v2786_v21 = vsel %vm2706_vm12, %v2726_v10, 0  ;;  %v2787_v18 = vsel %vm2706_vm12, %v2727_v16, 0  ;;  %v2728_v44 = vld [vmem:[#allocation3 + $0x3c] sm:$0x1] }
 0x27e   : > { %2834 = vst [vmem:[#allocation3 + $0x30] sm:$0xf] %v2785_v2  ;;  %2835 = vst [vmem:[#allocation3 + $0x34] sm:$0xf] %v2786_v21  ;;  %v2788_v55 = vsel %vm2706_vm12, %v2728_v44, 0  ;;  %v2698_v63 = vadd.s32 5, %v9266_v36 }
 0x27f   : > { %2836 = vst [vmem:[#allocation3 + $0x38] sm:$0xf] %v2787_v18  ;;  %v2837_v8 = vld [vmem:[#allocation3 + $0x3c] sm:$0x1]  ;;  %v2729_v12 = vld [vmem:[#allocation3 + $0x40] sm:$0xf] }
 0x280   : > { %v2838_v19 = vsel %vm9269_vm9, %v2788_v55, %v2837_v8  ;;  %v2789_v11 = vsel %vm2707_vm13, %v2729_v12, 0  ;;  %v2730_v26 = vld [vmem:[#allocation3 + $0x44] sm:$0xf]  ;;  %v2731_v25 = vld [vmem:[#allocation3 + $0x48] sm:$0xf]  ;;  %v2699_v27 = vadd.s32 6, %v9266_v36 }
 0x281   : > { %2839 = vst [vmem:[#allocation3 + $0x3c] sm:$0x1] %v2838_v19  ;;  %2840 = vst [vmem:[#allocation3 + $0x40] sm:$0xf] %v2789_v11  ;;  %v2790_v31 = vsel %vm2707_vm13, %v2730_v26, 0  ;;  %v2791_v20 = vsel %vm2707_vm13, %v2731_v25, 0 }
 0x282   : > { %v2732_v7 = vld [vmem:[#allocation3 + $0x4c] sm:$0x1]  ;;  %2841 = vst [vmem:[#allocation3 + $0x44] sm:$0xf] %v2790_v31  ;;  %2842 = vst [vmem:[#allocation3 + $0x48] sm:$0xf] %v2791_v20 }
 0x283   : > { %v2843_v5 = vld [vmem:[#allocation3 + $0x4c] sm:$0x1]  ;;  %v2792_v45 = vsel %vm2707_vm13, %v2732_v7, 0  ;;  %vm2708_vm14 = vcmp.lt.s32.totalorder %v2698_v63, 16  ;;  %v2733_v24 = vld [vmem:[#allocation3 + $0x50] sm:$0xf] }
 0x284   : > { %v2734_v29 = vld [vmem:[#allocation3 + $0x54] sm:$0xf]  ;;  %v2844_v22 = vsel %vm9269_vm9, %v2792_v45, %v2843_v5  ;;  %v2793_v41 = vsel %vm2708_vm14, %v2733_v24, 0  ;;  %v2735_v38 = vld [vmem:[#allocation3 + $0x58] sm:$0xf]  ;;  %vm2709_vm15 = vcmp.lt.s32.totalorder %v2699_v27, 16 }
 0x285   : > { %v2794_v9 = vsel %vm2708_vm14, %v2734_v29, 0  ;;  %v2736_v33 = vld [vmem:[#allocation3 + $0x5c] sm:$0x1]  ;;  %2845 = vst [vmem:[#allocation3 + $0x4c] sm:$0x1] %v2844_v22  ;;  %v2795_v4 = vsel %vm2708_vm14, %v2735_v38, 0 }
 0x286   : > { %2846 = vst [vmem:[#allocation3 + $0x50] sm:$0xf] %v2793_v41  ;;  %2847 = vst [vmem:[#allocation3 + $0x54] sm:$0xf] %v2794_v9  ;;  %v2796_v54 = vsel %vm2708_vm14, %v2736_v33, 0  ;;  %v2700_v32 = vadd.s32 7, %v9266_v36 }
 0x287   : > { %v2849_v56 = vld [vmem:[#allocation3 + $0x5c] sm:$0x1]  ;;  %2848 = vst [vmem:[#allocation3 + $0x58] sm:$0xf] %v2795_v4  ;;  %v2737_v42 = vld [vmem:[#allocation3 + $0x60] sm:$0xf] }
 0x288   : > { %v2850_v15 = vsel %vm9269_vm9, %v2796_v54, %v2849_v56  ;;  %v2738_v23 = vld [vmem:[#allocation3 + $0x64] sm:$0xf]  ;;  %v2739_v61 = vld [vmem:[#allocation3 + $0x68] sm:$0xf]  ;;  %v2797_v47 = vsel %vm2709_vm15, %v2737_v42, 0  ;;  %vm2710_vm0 = vcmp.lt.s32.totalorder %v2700_v32, 16 }
 0x289   : > { %2851 = vst [vmem:[#allocation3 + $0x5c] sm:$0x1] %v2850_v15  ;;  %v2798_v3 = vsel %vm2709_vm15, %v2738_v23, 0  ;;  %v2799_v43 = vsel %vm2709_vm15, %v2739_v61, 0  ;;  %v2740_v52 = vld [vmem:[#allocation3 + $0x6c] sm:$0x1] }
 0x28a   : > { %2852 = vst [vmem:[#allocation3 + $0x60] sm:$0xf] %v2797_v47  ;;  %2853 = vst [vmem:[#allocation3 + $0x64] sm:$0xf] %v2798_v3  ;;  %v2800_v6 = vsel %vm2709_vm15, %v2740_v52, 0  ;;  %v2701_v62 = vadd.s32 8, %v9266_v36 }
 0x28b   : > { %2854 = vst [vmem:[#allocation3 + $0x68] sm:$0xf] %v2799_v43  ;;  %v2855_v0 = vld [vmem:[#allocation3 + $0x6c] sm:$0x1]  ;;  %v2741_v49 = vld [vmem:[#allocation3 + $0x70] sm:$0xf] }
 0x28c   : > { %v2856_v37 = vsel %vm9269_vm9, %v2800_v6, %v2855_v0  ;;  %v2801_v14 = vsel %vm2710_vm0, %v2741_v49, 0  ;;  %v2742_v35 = vld [vmem:[#allocation3 + $0x74] sm:$0xf]  ;;  %v2743_v50 = vld [vmem:[#allocation3 + $0x78] sm:$0xf]  ;;  %v2702_v34 = vadd.s32 9, %v9266_v36 }
 0x28d   : > { %2857 = vst [vmem:[#allocation3 + $0x6c] sm:$0x1] %v2856_v37  ;;  %2858 = vst [vmem:[#allocation3 + $0x70] sm:$0xf] %v2801_v14  ;;  %v2802_v39 = vsel %vm2710_vm0, %v2742_v35, 0  ;;  %v2803_v28 = vsel %vm2710_vm0, %v2743_v50, 0 }
 0x28e   : > { %v2744_v17 = vld [vmem:[#allocation3 + $0x7c] sm:$0x1]  ;;  %2859 = vst [vmem:[#allocation3 + $0x74] sm:$0xf] %v2802_v39  ;;  %2860 = vst [vmem:[#allocation3 + $0x78] sm:$0xf] %v2803_v28 }
 0x28f   : > { %v2861_v13 = vld [vmem:[#allocation3 + $0x7c] sm:$0x1]  ;;  %v2804_v58 = vsel %vm2710_vm0, %v2744_v17, 0  ;;  %vm2711_vm1 = vcmp.lt.s32.totalorder %v2701_v62, 16  ;;  %v2745_v48 = vld [vmem:[#allocation3 + $0x80] sm:$0xf] }
 0x290   : > { %v2746_v51 = vld [vmem:[#allocation3 + $0x84] sm:$0xf]  ;;  %v2862_v59 = vsel %vm9269_vm9, %v2804_v58, %v2861_v13  ;;  %v2805_v60 = vsel %vm2711_vm1, %v2745_v48, 0  ;;  %v2747_v40 = vld [vmem:[#allocation3 + $0x88] sm:$0xf]  ;;  %vm2712_vm2 = vcmp.lt.s32.totalorder %v2702_v34, 16 }
 0x291   : > { %v2806_v36 = vsel %vm2711_vm1, %v2746_v51, 0  ;;  %v2748_v30 = vld [vmem:[#allocation3 + $0x8c] sm:$0x1]  ;;  %2863 = vst [vmem:[#allocation3 + $0x7c] sm:$0x1] %v2862_v59  ;;  %v2807_v57 = vsel %vm2711_vm1, %v2747_v40, 0 }
 0x292   : > { %2864 = vst [vmem:[#allocation3 + $0x80] sm:$0xf] %v2805_v60  ;;  %2865 = vst [vmem:[#allocation3 + $0x84] sm:$0xf] %v2806_v36  ;;  %v2808_v46 = vsel %vm2711_vm1, %v2748_v30, 0 }
 0x293   : > { %v2867_v53 = vld [vmem:[#allocation3 + $0x8c] sm:$0x1]  ;;  %2866 = vst [vmem:[#allocation3 + $0x88] sm:$0xf] %v2807_v57  ;;  %v2749_v16 = vld [vmem:[#allocation3 + $0x90] sm:$0xf] }
 0x294   : > { %v2868_v10 = vsel %vm9269_vm9, %v2808_v46, %v2867_v53  ;;  %v2750_v2 = vld [vmem:[#allocation3 + $0x94] sm:$0xf]  ;;  %v2751_v21 = vld [vmem:[#allocation3 + $0x98] sm:$0xf]  ;;  %v2809_v18 = vsel %vm2712_vm2, %v2749_v16, 0 }
 0x295   : > { %2869 = vst [vmem:[#allocation3 + $0x8c] sm:$0x1] %v2868_v10  ;;  %v2810_v44 = vsel %vm2712_vm2, %v2750_v2, 0  ;;  %v2811_v55 = vsel %vm2712_vm2, %v2751_v21, 0  ;;  %v2752_v8 = vld [vmem:[#allocation3 + $0x9c] sm:$0x1] }
 0x296   : > { %2870 = vst [vmem:[#allocation3 + $0x90] sm:$0xf] %v2809_v18  ;;  %2871 = vst [vmem:[#allocation3 + $0x94] sm:$0xf] %v2810_v44  ;;  %v2812_v12 = vsel %vm2712_vm2, %v2752_v8, 0 }
 0x297   : > { %2872 = vst [vmem:[#allocation3 + $0x98] sm:$0xf] %v2811_v55  ;;  %v2873_v63 = vld [vmem:[#allocation3 + $0x9c] sm:$0x1] }
 0x298   : > { %v2874_v19 = vsel %vm9269_vm9, %v2812_v12, %v2873_v63 }
 0x299   : > { %2875 = vst [vmem:[#allocation3 + $0x9c] sm:$0x1] %v2874_v19 }
 0x29a PF: > { %v8091_v11 = vld [vmem:[#allocation9 + $0x78] sm:$0xff]   ;;  %v8092_v26 = vld [vmem:[#allocation9 + $0x70] sm:$0xff]   ;;  %v8094_v27 = vld [vmem:[#allocation9 + $0x68] sm:$0xff]   ;;  %vm3506_vm3 = vsmask.f32 3328  ;;  %s6895_s20 = sshll.u32 %s8413_s30, 4 }
 0x29b   : > { %7542 = vmatprep.subr.bf16.mxu1 %v8091_v11  ;;  %v8093_v25 = vld [vmem:[#allocation9 + $0xb8] sm:$0xff]   ;;  %v8095_v31 = vld [vmem:[#allocation9 + $0xb0] sm:$0xff]   ;;  %v8097_v20 = vld [vmem:[#allocation9 + $0xa8] sm:$0xff]   ;;  %vm3507_vm4 = vsmask.f32 7440  ;;  %s6867_s28 = sshll.u32 %s8417_s8, 5 }
 0x29c   : > { %7543 = vmatpush3.bf16.msra.mxu1 %v8091_v11  ;;  %7606 = vmatprep.subr.bf16.mxu0 %v8093_v25  ;;  %v8096_v7 = vld [vmem:[#allocation9 + $0x60] sm:$0xff]   ;;  %v8098_v5 = vld [vmem:[#allocation9 + $0x58] sm:$0xff]   ;;  %v9320_v29 = vld [vmem:[#allocation3 + $0x8] sm:$0xf]  ;;  %vm2900_vm6 = vsmask.f32 256  ;;  %s6314_s30 = sadd.s32 %s6895_s20, %s6867_s28 }
 0x29d   : > { %7544 = vmatprep.subr.bf16.mxu1 %v8092_v26  ;;  %7607 = vmatpush3.bf16.msra.mxu0 %v8093_v25  ;;  %v8099_v1 = vld [vmem:[#allocation9 + $0xa0] sm:$0xff]   ;;  %v8101_v45 = vld [vmem:[#allocation9 + $0x98] sm:$0xff]   ;;  %v8100_v22 = vld [vmem:[#allocation9 + $0x50] sm:$0xff]   ;;  %v2918_v9 = vshrl.u32 %v9320_v29, 16  ;;  %v2921_v15 = vshll.u32 %v9320_v29, 16  ;;  %s6317_s8 = sshll.u32 %s8674_s22, 4  ;;  %s10333_s8 = int_to_ptr.vmem [resolvable:$true] %s6317_s8 }
 0x29e   : > { %7608 = vmatprep.subr.bf16.mxu0 %v8095_v31  ;;  %v9318_v24 = vld [vmem:[#allocation3 + $0x4] sm:$0xf]  ;;  %v9324_v38 = vld [vmem:[#allocation3 + $0x14] sm:$0xf]  ;;  %v8102_v56 = vld [vmem:[#allocation9 + $0x48] sm:$0xff]   ;;  %s6868_s29 = sshll.u32 %s6314_s30, 7 }
 0x29f   : > { %v2909_v41 = vshrl.u32 %v9318_v24, 16  ;;  %v8103_v33 = vld [vmem:[#allocation9 + $0x90] sm:$0xff]   ;;  %v6678_v4 = vcombine.low %v9318_v24, %v9320_v29  ;;  %v2931_v54 = vshrl.u32 %v9324_v38, 16  ;;  %v2912_v32 = vshll.u32 %v9318_v24, 16  ;;  %v9331_v42 = vld [vmem:[#allocation3 + $0x18] sm:$0xf]  ;;  %vm9347_vm5 = vmor %vm3506_vm3, %vm3507_vm4  ;;  %s10339_s17 = scalar_lea.hbm %s10411_s7, %s6868_s29 }
 0x2a0   : > { %7545 = vmatpush3.bf16.msra.mxu1 %v8092_v26  ;;  %v2934_v23 = vshll.u32 %v9324_v38, 16  ;;  %v2940_v61 = vshrl.u32 %v9331_v42, 16  ;;  %v9337_v3 = vrot.slane %v2918_v9, 7  ;;  %v3482_v43 = vld [vmem:[#allocation3 + $0x4] sm:$0xf]  ;;  %v2943_v0 = vshll.u32 %v9331_v42, 16 }
 0x2a1   : > { %7546 = vmatprep.subr.bf16.mxu1 %v8094_v27  ;;  %7609 = vmatpush3.bf16.msra.mxu0 %v8095_v31  ;;  %v9335_v47 = vrot.slane %v2909_v41, 7  ;;  %v3483_v52 = vld [vmem:[#allocation3 + $0x8] sm:$0xf]  ;;  %v9339_v6 = vrot.slane %v2931_v54, 7  ;;  %v3484_v49 = vld [vmem:[#allocation3 + $0xc] sm:$0x1] }
 0x2a2   : > { %7610 = vmatprep.subr.bf16.mxu0 %v8097_v20  ;;  %7558 = vmatprep.mubr.bf16.mxu1 %v6678_v4  ;;  %v8104_v62 = vld [vmem:[#allocation9 + $0x40] sm:$0xff]   ;;  %v8105_v37 = vld [vmem:[#allocation9 + $0x88] sm:$0xff]   ;;  %v3510_v14 = vshrl.u32 %v3482_v43, 16  ;;  %v3513_v35 = vshll.u32 %v3482_v43, 16  ;;  %v3519_v50 = vshll.u32 %v3483_v52, 16  ;;  %v3523_v34 = vshrl.u32 %v3483_v52, 16 }
 0x2a3   : > { %v3529_v39 = vshll.u32 %v3484_v49, 16  ;;  %v9342_v28 = vrot.slane %v2940_v61, 7  ;;  %v3485_v48 = vld [vmem:[#allocation3 + $0x14] sm:$0xf]  ;;  %v2916_v51 = vrot.slane %v9335_v47, 4  ;;  %v8109_v40 = vld [vmem:[#allocation9 + $0x80] sm:$0xff]  }
 0x2a4   : > { %7547 = vmatpush3.bf16.msra.mxu1 %v8094_v27  ;;  %v3512_v17 = vrot.slane %v3510_v14, 4  ;;  %v3515_v13 = vrot.slane %v3513_v35, 5  ;;  %v3521_v58 = vrot.slane %v3519_v50, 5  ;;  %v3525_v59 = vrot.slane %v3523_v34, 4  ;;  %v3486_v60 = vld [vmem:[#allocation3 + $0x18] sm:$0xf] }
 0x2a5   : > { %7548 = vmatprep.subr.bf16.mxu1 %v8096_v7  ;;  %7611 = vmatpush3.bf16.msra.mxu0 %v8097_v20  ;;  %v3487_v36 = vld [vmem:[#allocation3 + $0x1c] sm:$0x1]  ;;  %v3534_v57 = vshrl.u32 %v3485_v48, 16  ;;  %v3537_v46 = vshll.u32 %v3485_v48, 16  ;;  %v3543_v53 = vshll.u32 %v3486_v60, 16  ;;  %v3531_v21 = vrot.slane %v3529_v39, 5 }
 0x2a6   : > { %7612 = vmatprep.subr.bf16.mxu0 %v8099_v1  ;;  %v3516_v30 = vor.u32 %v3515_v13, %v3512_v17  ;;  %v8108_v10 = vld [vmem:[#allocation9 + $0x38] sm:$0xff]   ;;  %v3526_v2 = vor.u32 %v3525_v59, %v3521_v58  ;;  %v3547_v18 = vshrl.u32 %v3486_v60, 16  ;;  %v3553_v44 = vshll.u32 %v3487_v36, 16  ;;  %v9351_v19 = vld [vmem:[#allocation3 + $0x24] sm:$0xf]  ;;  %s10344_s18 = scalar_lea.sflag [#allocation6], %s335_s9 }
 0x2a7   : > { %v3536_v8 = vrot.slane %v3534_v57, 4  ;;  %v3539_v12 = vrot.slane %v3537_v46, 5  ;;  %v3545_v63 = vrot.slane %v3543_v53, 5  ;;  %v2938_v11 = vrot.slane %v9339_v6, 4  ;;  %v9354_v27 = vld [vmem:[#allocation3 + $0x28] sm:$0xf] }
 0x2a8   : > { %7549 = vmatpush3.bf16.msra.mxu1 %v8096_v7  ;;  %v3517_v55 = vrot.slane %v3516_v30, 4  ;;  %v3527_v26 = vrot.slane %v3526_v2, 4  ;;  %v3549_v25 = vrot.slane %v3547_v18, 4  ;;  %v2953_v31 = vshrl.u32 %v9351_v19, 16  ;;  %v9362_v41 = vld [vmem:[#allocation3 + $0x34] sm:$0xf] }
 0x2a9   : > { %7550 = vmatprep.subr.bf16.mxu1 %v8098_v5  ;;  %7613 = vmatpush3.bf16.msra.mxu0 %v8099_v1  ;;  %v6679_v20 = vcombine.low %v9324_v38, %v9331_v42  ;;  %v8110_v1 = vld [vmem:[#allocation9 + $0x30] sm:$0xff]   ;;  %v3555_v4 = vrot.slane %v3553_v44, 5  ;;  %v2956_v54 = vshll.u32 %v9351_v19, 16  ;;  %v6680_v52 = vcombine.low %v9351_v19, %v9354_v27  ;;  %v9371_v49 = vld [vmem:[#allocation3 + $0x38] sm:$0xf]  ;;  %p10491_p5 = scmp.ne.s32.totalorder %s10440_s21, 0 }
 0x2aa   : > { %7614 = vmatprep.subr.bf16.mxu0 %v8101_v45  ;;  %v3522_v7 = vsel %vm9347_vm5, %v3517_v55, %v3521_v58  ;;  %v3532_v9 = vsel %vm9347_vm5, %v3527_v26, %v3531_v21  ;;  %v9367_v43 = vrot.slane %v2953_v31, 7  ;;  %v2965_v35 = vshll.u32 %v9354_v27, 16  ;;  %v3489_v34 = vld [vmem:[#allocation3 + $0x28] sm:$0xf]  ;;  %v3490_v58 = vld [vmem:[#allocation3 + $0x2c] sm:$0x1] }
 0x2ab   : > { %v2975_v50 = vshrl.u32 %v9362_v41, 16  ;;  %v9380_v39 = vor.u32 %v2912_v32, %v9335_v47  ;;  %v2978_v13 = vshll.u32 %v9362_v41, 16  ;;  %v2984_v60 = vshrl.u32 %v9371_v49, 16  ;;  %v8114_v32 = vld [vmem:[#allocation9 + $0x28] sm:$0xff]   ;;  %v8115_v30 = vld [vmem:[#allocation9 + $0x130] sm:$0xff]   ;;  %s8442_s27 = smov [#allocation12]  }
 0x2ac   : > { %7551 = vmatpush3.bf16.msra.mxu1 %v8098_v5  ;;  %v3540_v5 = vor.u32 %v3539_v12, %v3536_v8  ;;  %v2987_v24 = vshll.u32 %v9371_v49, 16  ;;  %v3567_v46 = vshll.u32 %v3489_v34, 16  ;;  %v3571_v53 = vshrl.u32 %v3489_v34, 16  ;;  %v3491_v2 = vld [vmem:[#allocation3 + $0x34] sm:$0xf]  ;;  %s8305_s15 = sshll.u32 %s8442_s27, 4  ;;  %s8306_s15 = int_to_ptr.vmem [resolvable:$false] %s8305_s15 }
 0x2ad   : > { %7552 = vmatprep.subr.bf16.mxu1 %v8100_v22  ;;  %7615 = vmatpush3.bf16.msra.mxu0 %v8101_v45  ;;  %v8111_v45 = vld [vmem:[#allocation9 + $0x138] sm:$0xff]   ;;  %v6681_v21 = vcombine.low %v9362_v41, %v9371_v49  ;;  %v3577_v44 = vshll.u32 %v3490_v58, 16  ;;  %v3582_v26 = vshrl.u32 %v3491_v2, 16  ;;  %v9405_v58 = vld [vmem:[#allocation3 + $0x54] sm:$0xf]  ;;  %s8307_s10 = scalar_lea.vmem %s8306_s15, 4096  ;;  %p8308_p7 = scmp.lt.s32.totalorder %s10333_s8, %s8306_s15 }
 0x2ae   : > { %7616 = vmatprep.subr.bf16.mxu0 %v8103_v33  ;;  %v3541_v61 = vrot.slane %v3540_v5, 4  ;;  %v3492_v55 = vld [vmem:[#allocation3 + $0x38] sm:$0xf]  ;;  %v3493_v8 = vld [vmem:[#allocation3 + $0x3c] sm:$0x1]  ;;  %v3569_v12 = vrot.slane %v3567_v46, 5 }
 0x2af   : > { %v3591_v29 = vshll.u32 %v3492_v55, 16  ;;  %v3584_v5 = vrot.slane %v3582_v26, 4  ;;  %v9410_v46 = vld [vmem:[#allocation3 + $0x58] sm:$0xf]  ;;  %v3494_v26 = vld [vmem:[#allocation3 + $0x44] sm:$0xf] }
 0x2b0   : > { %7553 = vmatpush3.bf16.msra.mxu1 %v8100_v22  ;;  %v2962_v22 = vshrl.u32 %v9354_v27, 16  ;;  %v3546_v17 = vsel %vm9347_vm5, %v3541_v61, %v3545_v63  ;;  %v9503_v41 = vld [vmem:[#allocation9 + $0x1b8] sm:$0xff]   ;;  %vm2901_vm7 = vsmask.f32 4368 }
 0x2b1   : > { %7554 = vmatprep.subr.bf16.mxu1 %v8102_v56  ;;  %7617 = vmatpush3.bf16.msra.mxu0 %v8103_v33  ;;  %v3550_v33 = vor.u32 %v3549_v25, %v3545_v63  ;;  %v3573_v63 = vrot.slane %v3571_v53, 4  ;;  %v3585_v25 = vshll.u32 %v3491_v2, 16  ;;  %v3593_v61 = vrot.slane %v3591_v29, 5  ;;  %vm9512_vm8 = vmor %vm2900_vm6, %vm2901_vm7 }
 0x2b2   : > { %7618 = vmatprep.subr.bf16.mxu0 %v8105_v37  ;;  %v9373_v14 = vrot.slane %v2962_v22, 7  ;;  %v6683_v29 = vcombine.low %v9405_v58, %v9410_v46 }
 0x2b3   : > { %v3587_v22 = vrot.slane %v3585_v25, 5  ;;  %v8122_v25 = vld [vmem:[#allocation9 + $0x10] sm:$0xff]  }
 0x2b4   : > { %7555 = vmatpush3.bf16.msra.mxu1 %v8102_v56  ;;  %v6710_v56 = vcombine.low %v3522_v7, %v3532_v9  ;;  %v8116_v7 = vld [vmem:[#allocation9 + $0x20] sm:$0xff]   ;;  %v3601_v9 = vshll.u32 %v3493_v8, 16  ;;  %v9461_v19 = vor.u32 %v2965_v35, %v9373_v14 }
 0x2b5   : > { %7556 = vmatprep.subr.bf16.mxu1 %v8104_v62  ;;  %7619 = vmatpush3.bf16.msra.mxu0 %v8105_v37  ;;  %v3488_v37 = vld [vmem:[#allocation3 + $0x24] sm:$0xf] }
 0x2b6   : > { %7620 = vmatprep.subr.bf16.mxu0 %v8109_v40  ;;  %7622 = vmatprep.mubr.bf16.mxu0 %v6710_v56  ;;  %v3558_v48 = vshrl.u32 %v3488_v37, 16  ;;  %v3561_v36 = vshll.u32 %v3488_v37, 16  ;;  %v9398_v37 = vld [vmem:[#allocation3 + $0x48] sm:$0xf] }
 0x2b8   : > { %7557 = vmatpush3.bf16.msra.mxu1 %v8104_v62  ;;  %v3551_v62 = vrot.slane %v3550_v33, 4  ;;  %v3560_v57 = vrot.slane %v3558_v48, 4  ;;  %v3563_v18 = vrot.slane %v3561_v36, 5  ;;  %v8117_v33 = vld [vmem:[#allocation9 + $0x128] sm:$0xff]   ;;  %v8120_v48 = vld [vmem:[#allocation9 + $0x18] sm:$0xff]  }
 0x2b9   : > { %7574 = vmatprep.subr.bf16.mxu1 %v8108_v10  ;;  %7621 = vmatpush3.bf16.msra.mxu0 %v8109_v40 }
 0x2ba   : > { %v3556_v59 = vsel %vm9347_vm5, %v3551_v62, %v3555_v4  ;;  %7670 = vmatprep.subr.bf16.mxu0 %v8111_v45  ;;  %v3564_v31 = vor.u32 %v3563_v18, %v3560_v57  ;;  %v9396_v4 = vld [vmem:[#allocation3 + $0x44] sm:$0xf]  ;;  %v9403_v62 = vrot.slane %v2984_v60, 7  ;;  %v3006_v57 = vshrl.u32 %v9398_v37, 16 }
 0x2bb   : > { %7559 = vmatmul.mubr.bf16.vlgmr.msra.gmra.mxu1 %v6679_v20  ;;  %v6711_v40 = vcombine.low %v3546_v17, %v3556_v59  ;;  %v3579_v20 = vrot.slane %v3577_v44, 5  ;;  %v3588_v17 = vor.u32 %v3587_v22, %v3584_v5  ;;  %v3000_v53 = vshll.u32 %v9396_v4, 16  ;;  %v8121_v44 = vld [vmem:[#allocation9 + $0x120] sm:$0xff]  }
 0x2bc   : > { %7575 = vmatpush3.bf16.msra.mxu1 %v8108_v10  ;;  %7562 = vmatprep.mubr.bf16.mxu1 %v6680_v52  ;;  %v9392_v10 = vor.u32 %v2921_v15, %v9337_v3  ;;  %v3595_v15 = vshrl.u32 %v3492_v55, 16  ;;  %v3574_v3 = vor.u32 %v3573_v63, %v3569_v12  ;;  %v3565_v56 = vrot.slane %v3564_v31, 4 }
 0x2bd   : > { %7576 = vmatprep.subr.bf16.mxu1 %v8110_v1  ;;  %7623 = vmatmul.mubr.bf16.vlgmr.msra.gmra.mxu0 %v6711_v40  ;;  %v3603_v40 = vrot.slane %v3601_v9, 5  ;;  %v3589_v60 = vrot.slane %v3588_v17, 4  ;;  %v3019_v18 = vshrl.u32 %v9405_v58, 16  ;;  %v9422_v8 = vrot.slane %v3006_v57, 7  ;;  %v3497_v57 = vld [vmem:[#allocation3 + $0x54] sm:$0xf] }
 0x2be   : > { %7671 = vmatpush3.bf16.msra.mxu0 %v8111_v45  ;;  %v3597_v52 = vrot.slane %v3595_v15, 4  ;;  %v9401_v45 = vrot.slane %v2975_v50, 7  ;;  %v3575_v34 = vrot.slane %v3574_v3, 4  ;;  %v3570_v59 = vsel %vm9347_vm5, %v3565_v56, %v3569_v12  ;;  %v3495_v15 = vld [vmem:[#allocation3 + $0x48] sm:$0xf] }
 0x2bf   : > { %7672 = vmatprep.subr.bf16.mxu0 %v8115_v30  ;;  %v3594_v55 = vsel %vm9347_vm5, %v3589_v60, %v3593_v61  ;;  %v3009_v12 = vshll.u32 %v9398_v37, 16  ;;  %v3022_v63 = vshll.u32 %v9405_v58, 16  ;;  %v3496_v3 = vld [vmem:[#allocation3 + $0x4c] sm:$0x1]  ;;  %v3606_v5 = vshrl.u32 %v3494_v26, 16 }
 0x2c0   : > { %7577 = vmatpush3.bf16.msra.mxu1 %v8110_v1  ;;  %v2997_v1 = vshrl.u32 %v9396_v4, 16  ;;  %v3598_v36 = vor.u32 %v3597_v52, %v3593_v61  ;;  %v3580_v50 = vsel %vm9347_vm5, %v3575_v34, %v3579_v20  ;;  %v3028_v20 = vshrl.u32 %v9410_v46, 16  ;;  %v8123_v52 = vld [vmem:[#allocation9 + $0x118] sm:$0xff]   ;;  %v8126_v60 = vld [vmem:[#allocation9 + $0x8] sm:$0xff]  }
 0x2c1   : > { %7578 = vmatprep.subr.bf16.mxu1 %v8114_v32  ;;  %v3031_v9 = vshll.u32 %v9410_v46, 16  ;;  %v3609_v56 = vshll.u32 %v3494_v26, 16  ;;  %v3615_v61 = vshll.u32 %v3495_v15, 16  ;;  %v3619_v34 = vshrl.u32 %v3495_v15, 16  ;;  %v9444_v15 = vld [vmem:[#allocation3 + $0x64] sm:$0xf] }
 0x2c2   : > { %7673 = vmatpush3.bf16.msra.mxu0 %v8115_v30  ;;  %v6712_v30 = vcombine.low %v3570_v59, %v3580_v50  ;;  %v3599_v2 = vrot.slane %v3598_v36, 4  ;;  %v3625_v17 = vshll.u32 %v3496_v3, 16  ;;  %v9437_v59 = vor.u32 %v2934_v23, %v9339_v6  ;;  %v3498_v50 = vld [vmem:[#allocation3 + $0x58] sm:$0xf] }
 0x2c3   : > { %7563 = vmatmul.mubr.bf16.gmra.mxu1 %v6681_v21  ;;  %7674 = vmatprep.subr.bf16.mxu0 %v8117_v33  ;;  %v9417_v21 = vrot.slane %v2997_v1, 7  ;;  %v9432_v1 = vrot.slane %v3019_v18, 7  ;;  %v3611_v36 = vrot.slane %v3609_v56, 5  ;;  %v3630_v18 = vshrl.u32 %v3497_v57, 16  ;;  %v9453_v56 = vld [vmem:[#allocation3 + $0x68] sm:$0xf] }
 0x2c4   : > { %7579 = vmatpush3.bf16.msra.mxu1 %v8114_v32  ;;  %v6682_v32 = vcombine.low %v9396_v4, %v9398_v37  ;;  %7626 = vmatprep.mubr.bf16.mxu0 %v6712_v30  ;;  %v3604_v31 = vsel %vm9347_vm5, %v3599_v2, %v3603_v40  ;;  %v3617_v40 = vrot.slane %v3615_v61, 5  ;;  %v3627_v30 = vrot.slane %v3625_v17, 5  ;;  %v3499_v2 = vld [vmem:[#allocation3 + $0x5c] sm:$0x1]  ;;  %v9456_v17 = vld [vmem:[#allocation3 + $0x74] sm:$0xf] }
 0x2c5   : > { %7580 = vmatprep.subr.bf16.mxu1 %v8116_v7  ;;  %v6713_v22 = vcombine.low %v3594_v55, %v3604_v31  ;;  %v3633_v38 = vshll.u32 %v3497_v57, 16  ;;  %v3639_v55 = vshll.u32 %v3498_v50, 16  ;;  %v3643_v42 = vshrl.u32 %v3498_v50, 16  ;;  %v8129_v57 = vld [vmem:[#allocation9 + $0x108] sm:$0xff]   ;;  %v8133_v37 = vld [vmem:[#allocation9 + $0xf0] sm:$0xff]  }
 0x2c6   : > { %7566 = vmatprep.mubr.bf16.mxu1 %v6682_v32  ;;  %7675 = vmatpush3.bf16.msra.mxu0 %v8117_v33  ;;  %v9442_v33 = vor.u32 %v2943_v0, %v9342_v28  ;;  %v3621_v32 = vrot.slane %v3619_v34, 4  ;;  %v3649_v0 = vshll.u32 %v3499_v2, 16  ;;  %v8127_v28 = vld [vmem:[#allocation9 + $0x110] sm:$0xff]   ;;  %v3632_v31 = vrot.slane %v3630_v18, 4 }
 0x2c7   : > { %7676 = vmatprep.subr.bf16.mxu0 %v8121_v44  ;;  %7627 = vmatmul.mubr.bf16.gmra.mxu0 %v6713_v22  ;;  %v9451_v3 = vrot.slane %v3028_v20, 7  ;;  %v3645_v22 = vrot.slane %v3643_v42, 4  ;;  %v3041_v34 = vshrl.u32 %v9444_v15, 16  ;;  %v6684_v27 = vcombine.low %v9444_v15, %v9453_v56 }
 0x2c8   : > { %7581 = vmatpush3.bf16.msra.mxu1 %v8116_v7  ;;  %v3608_v7 = vrot.slane %v3606_v5, 4  ;;  %v3622_v26 = vor.u32 %v3621_v32, %v3617_v40  ;;  %v3641_v5 = vrot.slane %v3639_v55, 5  ;;  %v3651_v50 = vrot.slane %v3649_v0, 5  ;;  %v3500_v0 = vld [vmem:[#allocation3 + $0x64] sm:$0xf] }
 0x2c9   : > { %7582 = vmatprep.subr.bf16.mxu1 %v8120_v48  ;;  %v3050_v32 = vshrl.u32 %v9453_v56, 16  ;;  %v9477_v55 = vrot.slane %v3041_v34, 7 }
 0x2ca   : > { %7677 = vmatpush3.bf16.msra.mxu0 %v8121_v44  ;;  %v3612_v23 = vor.u32 %v3611_v36, %v3608_v7  ;;  %v3623_v61 = vrot.slane %v3622_v26, 4  ;;  %v8128_v36 = vld [vmem:[#allocation9] sm:$0xff]   ;;  %v3646_v20 = vor.u32 %v3645_v22, %v3641_v5  ;;  %v9482_v26 = vld [vmem:[#allocation9 + $0xf8] sm:$0xff]   ;;  %v3502_v22 = vld [vmem:[#allocation3 + $0x6c] sm:$0x1] }
 0x2cb   : > { %7567 = vmatmul.mubr.bf16.gmra.mxu1 %v6683_v29  ;;  %v3635_v29 = vrot.slane %v3633_v38, 5  ;;  %7678 = vmatprep.subr.bf16.mxu0 %v8123_v52  ;;  %v3044_v38 = vshll.u32 %v9444_v15, 16  ;;  %v9479_v42 = vrot.slane %v3050_v32, 7  ;;  %v9599_v15 = vld [vmem:[#allocation3 + $0x34] sm:$0xf] }
 0x2cc   : > { %7583 = vmatpush3.bf16.msra.mxu1 %v8120_v48  ;;  %v9449_v48 = vor.u32 %v2956_v54, %v9367_v43  ;;  %v3613_v44 = vrot.slane %v3612_v23, 4  ;;  %v3628_v2 = vsel %vm9347_vm5, %v3623_v61, %v3627_v30  ;;  %v3647_v35 = vrot.slane %v3646_v20, 4  ;;  %7570 = vmatprep.mubr.bf16.mxu1 %v6684_v27  ;;  %v8131_v20 = vld [vmem:[#allocation9 + $0x100] sm:$0xff]  }
 0x2cd   : > { %7584 = vmatprep.subr.bf16.mxu1 %v8122_v25  ;;  %v3636_v7 = vor.u32 %v3635_v29, %v3632_v31  ;;  %v3066_v30 = vshll.u32 %v9456_v17, 16  ;;  %v3654_v61 = vshrl.u32 %v3500_v0, 16 }
 0x2ce   : > { %v3618_v54 = vsel %vm9347_vm5, %v3613_v44, %v3617_v40  ;;  %7679 = vmatpush3.bf16.msra.mxu0 %v8123_v52  ;;  %v3053_v40 = vshll.u32 %v9453_v56, 16  ;;  %v3063_v52 = vshrl.u32 %v9456_v17, 16  ;;  %v3652_v31 = vsel %vm9347_vm5, %v3647_v35, %v3651_v50  ;;  %v3504_v35 = vld [vmem:[#allocation3 + $0x78] sm:$0xf] }
 0x2cf   : > { %v3637_v18 = vrot.slane %v3636_v7, 4  ;;  %7680 = vmatprep.subr.bf16.mxu0 %v8127_v28  ;;  %v6714_v14 = vcombine.low %v3618_v54, %v3628_v2  ;;  %v3656_v50 = vrot.slane %v3654_v61, 4  ;;  %v3989_v56 = vshll.u32 %v9599_v15, 16 }
 0x2d0   : > { %7585 = vmatpush3.bf16.msra.mxu1 %v8122_v25  ;;  %v9466_v25 = vld [vmem:[#allocation3 + $0x78] sm:$0xf]  ;;  %v9490_v32 = vrot.slane %v3063_v52, 7  ;;  %v9500_v52 = vor.u32 %v2987_v24, %v9403_v62  ;;  %v2876_v24 = vld [vmem:[#allocation3] sm:$0x8]  ;;  %v9508_v62 = vor.u32 %v3000_v53, %v9417_v21 }
 0x2d1   : > { %7586 = vmatprep.subr.bf16.mxu1 %v8126_v60  ;;  %v3642_v23 = vsel %vm9347_vm5, %v3637_v18, %v3641_v5  ;;  %7630 = vmatprep.mubr.bf16.mxu0 %v6714_v14  ;;  %v3072_v29 = vshrl.u32 %v9466_v25, 16  ;;  %v6685_v44 = vcombine.low %v9456_v17, %v9466_v25  ;;  %v3501_v5 = vld [vmem:[#allocation3 + $0x68] sm:$0xf]  ;;  %v3075_v34 = vshll.u32 %v9466_v25, 16  ;;  %v3503_v14 = vld [vmem:[#allocation3 + $0x74] sm:$0xf] }
 0x2d2   : > { %7681 = vmatpush3.bf16.msra.mxu0 %v8127_v28  ;;  %v6715_v7 = vcombine.low %v3642_v23, %v3652_v31  ;;  %v3663_v54 = vshll.u32 %v3501_v5, 16  ;;  %v3667_v2 = vshrl.u32 %v3501_v5, 16  ;;  %v3673_v18 = vshll.u32 %v3502_v22, 16  ;;  %v9658_v25 = vld [vmem:[#allocation3 + $0x54] sm:$0xf] }
 0x2d3   : > { %7682 = vmatprep.subr.bf16.mxu0 %v8129_v57  ;;  %7571 = vmatmul.mubr.bf16.gmra.mxu1 %v6685_v44  ;;  %v9495_v23 = vor.u32 %v2978_v13, %v9401_v45  ;;  %v3505_v44 = vld [vmem:[#allocation3 + $0x7c] sm:$0x1]  ;;  %v3678_v5 = vshrl.u32 %v3503_v14, 16  ;;  %v3681_v22 = vshll.u32 %v3503_v14, 16  ;;  %v2904_v4 = vshrl.u32 %v2876_v24, 16 }
 0x2d4   : > { %7587 = vmatpush3.bf16.msra.mxu1 %v8126_v60  ;;  %v3657_v60 = vshll.u32 %v3500_v0, 16  ;;  %7631 = vmatmul.mubr.bf16.gmra.mxu0 %v6715_v7  ;;  %v3665_v28 = vrot.slane %v3663_v54, 5  ;;  %v3669_v0 = vrot.slane %v3667_v2, 4  ;;  %v3675_v31 = vrot.slane %v3673_v18, 5 }
 0x2d5   : > { %7588 = vmatprep.subr.bf16.mxu1 %v8128_v36  ;;  %v3691_v7 = vshrl.u32 %v3504_v35, 16  ;;  %v3680_v54 = vrot.slane %v3678_v5, 4  ;;  %v3683_v49 = vrot.slane %v3681_v22, 5  ;;  %v5612_v5 = vld [vmem:[#allocation3 + $0x28] sm:$0xf] }
 0x2d6   : > { %v3659_v27 = vrot.slane %v3657_v60, 5  ;;  %7683 = vmatpush3.bf16.msra.mxu0 %v8129_v57  ;;  %v3697_v60 = vshll.u32 %v3505_v44, 16  ;;  %v3670_v13 = vor.u32 %v3669_v0, %v3665_v28 }
 0x2d7   : > { %7684 = vmatprep.subr.bf16.mxu0 %v8131_v20  ;;  %v3693_v18 = vrot.slane %v3691_v7, 4 }
 0x2d8   : > { %7589 = vmatpush3.bf16.msra.mxu1 %v8128_v36  ;;  %v3660_v61 = vor.u32 %v3659_v27, %v3656_v50  ;;  %v3687_v36 = vshll.u32 %v3504_v35, 16  ;;  %v3699_v14 = vrot.slane %v3697_v60, 5  ;;  %v2879_v50 = vld [vmem:[#allocation3 + $0x10] sm:$0x8]  ;;  %v3671_v27 = vrot.slane %v3670_v13, 4 }
 0x2d9   : > { %7638 = vmatprep.subr.bf16.mxu1 %v9482_v26  ;;  %v3684_v35 = vor.u32 %v3683_v49, %v3680_v54  ;;  %v2926_v53 = vshrl.u32 %v2879_v50, 16  ;;  %v6670_v60 = vrot.slane %v2904_v4, 11  ;;  %v9529_v54 = vld [vmem:[#allocation3 + $0x14] sm:$0xf] }
 0x2da   : > { %v3661_v2 = vrot.slane %v3660_v61, 4  ;;  %v3689_v57 = vrot.slane %v3687_v36, 5  ;;  %7685 = vmatpush3.bf16.msra.mxu0 %v8131_v20  ;;  %v3676_v22 = vsel %vm9347_vm5, %v3671_v27, %v3675_v31  ;;  %v2924_v20 = vsel %vm9512_vm8, %v2916_v51, %v9392_v10  ;;  %v9537_v51 = vld [vmem:[#allocation3 + $0x18] sm:$0xf] }
 0x2db   : > { %7734 = vmatprep.subr.bf16.mxu0 %v9503_v41  ;;  %v3685_v61 = vrot.slane %v3684_v35, 4  ;;  %v6671_v13 = vrot.slane %v2926_v53, 11  ;;  %v9533_v31 = vrot.slane %v3072_v29, 7  ;;  %v3942_v6 = vshrl.u32 %v9529_v54, 16 }
 0x2dc   : > { %v3666_v0 = vsel %vm9347_vm5, %v3661_v2, %v3665_v28  ;;  %v3694_v44 = vor.u32 %v3693_v18, %v3689_v57  ;;  %v2946_v28 = vsel %vm9512_vm8, %v2938_v11, %v9442_v33  ;;  %v9543_v11 = vor.u32 %v3009_v12, %v9422_v8  ;;  %v9554_v8 = vld [vmem:[#allocation3 + $0x24] sm:$0xf] }
 0x2dd   : > { %v6716_v36 = vcombine.low %v3666_v0, %v3676_v22  ;;  %v3690_v47 = vsel %vm9347_vm5, %v3685_v61, %v3689_v57  ;;  %v2915_v33 = vsel %vm9512_vm8, %v6670_v60, %v9380_v39  ;;  %v2937_v29 = vsel %vm9512_vm8, %v6671_v13, %v9437_v59  ;;  %v9560_v39 = vld [vmem:[#allocation3 + $0x28] sm:$0xf] }
 0x2de   : > { %v3695_v7 = vrot.slane %v3694_v44, 4  ;;  %v3951_v49 = vshrl.u32 %v9537_v51, 16  ;;  %v6694_v2 = vcombine.low %v2915_v33, %v2924_v20  ;;  %v6695_v57 = vcombine.low %v2937_v29, %v2946_v28  ;;  %v2882_v44 = vld [vmem:[#allocation3 + $0x20] sm:$0x8]  ;;  %v8136_v61 = vld [vmem:[#allocation9 + $0xe8] sm:$0xff]  }
 0x2df   : > { %7634 = vmatprep.mubr.bf16.mxu0 %v6716_v36  ;;  %v2960_v12 = vrot.slane %v9367_v43, 4  ;;  %v3945_v18 = vshll.u32 %v9529_v54, 16  ;;  %v3964_v50 = vshrl.u32 %v9554_v8, 16  ;;  %v9566_v59 = vor.u32 %v3022_v63, %v9432_v1  ;;  %v2885_v63 = vld [vmem:[#allocation3 + $0x30] sm:$0x8] }
 0x2e0   : > { %v3700_v10 = vsel %vm9347_vm5, %v3695_v7, %v3699_v14  ;;  %v6750_v14 = vcombine.low %v9529_v54, %v9537_v51  ;;  %7590 = vmatprep.mubr.bf16.mxu1 %v6694_v2  ;;  %v9568_v27 = vrot.slane %v3942_v6, 7  ;;  %v9570_v35 = vrot.slane %v3951_v49, 7  ;;  %v9622_v2 = vld [vmem:[#allocation3 + $0x48] sm:$0xf] }
 0x2e1   : > { %v6717_v24 = vcombine.low %v3690_v47, %v3700_v10  ;;  %v3954_v43 = vshll.u32 %v9537_v51, 16  ;;  %v3973_v0 = vshrl.u32 %v9560_v39, 16  ;;  %7591 = vmatmul.mubr.bf16.vlgmr.msra.gmra.mxu1 %v6695_v57  ;;  %v3967_v4 = vshll.u32 %v9554_v8, 16 }
 0x2e2   : > { %v3976_v53 = vshll.u32 %v9560_v39, 16  ;;  %v2948_v58 = vshrl.u32 %v2882_v44, 16  ;;  %v2982_v22 = vrot.slane %v9401_v45, 4  ;;  %7639 = vmatpush3.bf16.msra.mxu1 %v9482_v26  ;;  %v9578_v20 = vrot.slane %v3964_v50, 7  ;;  %v2888_v44 = vld [vmem:[#allocation3 + $0x40] sm:$0x8] }
 0x2e3   : > { %7635 = vmatmul.mubr.bf16.gmra.mxu0 %v6717_v24  ;;  %v2970_v28 = vshrl.u32 %v2885_v63, 16  ;;  %v3033_v36 = vor.u32 %v3031_v9, %v9451_v3  ;;  %v9586_v7 = vor.u32 %v3044_v38, %v9477_v55  ;;  %7640 = vmatprep.subr.bf16.mxu1 %v8133_v37  ;;  %v6751_v60 = vcombine.low %v9554_v8, %v9560_v39  ;;  %v9601_v3 = vld [vmem:[#allocation3 + $0x38] sm:$0xf] }
 0x2e4   : > { %7686 = vmatprep.mubr.bf16.mxu0 %v6750_v14  ;;  %v6672_v45 = vrot.slane %v2948_v58, 11  ;;  %v2968_v26 = vsel %vm9512_vm8, %v2960_v12, %v9461_v19  ;;  %v3004_v13 = vrot.slane %v9417_v21, 4  ;;  %v9594_v47 = vrot.slane %v3973_v0, 7  ;;  %v8137_v21 = vld [vmem:[#allocation9 + $0x1b0] sm:$0xff]   ;;  %v8141_v14 = vld [vmem:[#allocation9 + $0x1a8] sm:$0xff]   ;;  %v8142_v63 = vld [vmem:[#allocation9 + $0xd8] sm:$0xff]  }
 0x2e5   : > { %v6673_v46 = vrot.slane %v2970_v28, 11  ;;  %v2990_v9 = vsel %vm9512_vm8, %v2982_v22, %v9500_v52  ;;  %v3055_v38 = vor.u32 %v3053_v40, %v9479_v42  ;;  %v3986_v6 = vshrl.u32 %v9599_v15, 16  ;;  %v9616_v40 = vld [vmem:[#allocation3 + $0x44] sm:$0xf] }
 0x2e6   : > { %v2959_v19 = vsel %vm9512_vm8, %v6672_v45, %v9449_v48  ;;  %v3995_v10 = vshrl.u32 %v9601_v3, 16  ;;  %v3026_v33 = vrot.slane %v9432_v1, 4  ;;  %7641 = vmatpush3.bf16.msra.mxu1 %v8133_v37  ;;  %v3048_v42 = vrot.slane %v9477_v55, 4  ;;  %v8139_v1 = vld [vmem:[#allocation9 + $0xe0] sm:$0xff]  }
 0x2e7   : > { %v6696_v52 = vcombine.low %v2959_v19, %v2968_v26  ;;  %v2981_v29 = vsel %vm9512_vm8, %v6673_v46, %v9495_v23  ;;  %7642 = vmatprep.subr.bf16.mxu1 %v8136_v61  ;;  %v3998_v49 = vshll.u32 %v9601_v3, 16  ;;  %v6752_v24 = vcombine.low %v9599_v15, %v9601_v3  ;;  %v9668_v46 = vld [vmem:[#allocation3 + $0x58] sm:$0xf]  ;;  %v3931_v3 = vld [vmem:[#allocation3 + $0x74] sm:$0xf] }
 0x2e8   : > { %v6697_v48 = vcombine.low %v2981_v29, %v2990_v9  ;;  %v4008_v57 = vshrl.u32 %v9616_v40, 16  ;;  %v9625_v23 = vrot.slane %v3986_v6, 7  ;;  %v9627_v37 = vrot.slane %v3995_v10, 7 }
 0x2e9   : > { %7594 = vmatprep.mubr.bf16.mxu1 %v6696_v52  ;;  %v4011_v55 = vshll.u32 %v9616_v40, 16  ;;  %v4017_v12 = vshrl.u32 %v9622_v2, 16  ;;  %v4020_v0 = vshll.u32 %v9622_v2, 16  ;;  %v3012_v58 = vsel %vm9512_vm8, %v3004_v13, %v9543_v11  ;;  %v8143_v13 = vld [vmem:[#allocation9 + $0x1a0] sm:$0xff]   ;;  %v9690_v52 = vld [vmem:[#allocation3 + $0x68] sm:$0xf] }
 0x2ea   : > { %7595 = vmatmul.mubr.bf16.gmra.mxu1 %v6697_v48  ;;  %v9632_v50 = vrot.slane %v4008_v57, 7  ;;  %v9641_v22 = vor.u32 %v3066_v30, %v9490_v32  ;;  %v2992_v28 = vshrl.u32 %v2888_v44, 16  ;;  %v3077_v45 = vor.u32 %v3075_v34, %v9533_v31 }
 0x2eb   : > { %7687 = vmatmul.mubr.bf16.vlgmr.msra.gmra.mxu0 %v6751_v60  ;;  %7643 = vmatpush3.bf16.msra.mxu1 %v8136_v61  ;;  %v3070_v60 = vrot.slane %v9490_v32, 4  ;;  %v9650_v11 = vor.u32 %v3945_v18, %v9568_v27  ;;  %v9652_v17 = vrot.slane %v4017_v12, 7  ;;  %v6753_v30 = vcombine.low %v9616_v40, %v9622_v2 }
 0x2ec   : > { %7735 = vmatpush3.bf16.msra.mxu0 %v9503_v41  ;;  %v2891_v41 = vld [vmem:[#allocation3 + $0x50] sm:$0x8]  ;;  %7690 = vmatprep.mubr.bf16.mxu0 %v6752_v24  ;;  %v3034_v32 = vsel %vm9512_vm8, %v3026_v33, %v3033_v36  ;;  %v6674_v26 = vrot.slane %v2992_v28, 11  ;;  %v9662_v34 = vsel %vm9512_vm8, %v3048_v42, %v3055_v38  ;;  %v3949_v54 = vrot.slane %v9568_v27, 4  ;;  %v9688_v33 = vld [vmem:[#allocation3 + $0x64] sm:$0xf] }
 0x2ed   : > { %7736 = vmatprep.subr.bf16.mxu0 %v8137_v21  ;;  %7644 = vmatprep.subr.bf16.mxu1 %v8139_v1  ;;  %v3014_v61 = vshrl.u32 %v2891_v41, 16  ;;  %v3956_v31 = vor.u32 %v3954_v43, %v9570_v35  ;;  %v4030_v36 = vshrl.u32 %v9658_v25, 16  ;;  %v4033_v9 = vshll.u32 %v9658_v25, 16  ;;  %v2894_v24 = vld [vmem:[#allocation3 + $0x60] sm:$0x8] }
 0x2ee   : > { %v3971_v19 = vrot.slane %v9578_v20, 4  ;;  %v3003_v27 = vsel %vm9512_vm8, %v6674_v26, %v9508_v62  ;;  %v4039_v38 = vshrl.u32 %v9668_v46, 16  ;;  %v4042_v51 = vshll.u32 %v9668_v46, 16  ;;  %v8145_v62 = vld [vmem:[#allocation9 + $0xd0] sm:$0xff]  }
 0x2ef   : > { %v6675_v18 = vrot.slane %v3014_v61, 11  ;;  %7645 = vmatpush3.bf16.msra.mxu1 %v8139_v1  ;;  %v3978_v35 = vor.u32 %v3976_v53, %v9594_v47  ;;  %v6698_v43 = vcombine.low %v3003_v27, %v3012_v58  ;;  %v9684_v6 = vrot.slane %v4030_v36, 7  ;;  %v8148_v58 = vld [vmem:[#allocation9 + $0xc8] sm:$0xff]   ;;  %v8151_v36 = vld [vmem:[#allocation9 + $0xc0] sm:$0xff]  }
 0x2f0   : > { %7737 = vmatpush3.bf16.msra.mxu0 %v8137_v21  ;;  %7646 = vmatprep.subr.bf16.mxu1 %v8142_v63  ;;  %v6754_v10 = vcombine.low %v9658_v25, %v9668_v46  ;;  %v9692_v39 = vrot.slane %v4039_v38, 7  ;;  %v4052_v53 = vshrl.u32 %v9688_v33, 16  ;;  %v4055_v47 = vshll.u32 %v9688_v33, 16  ;;  %v3935_v27 = vld [vmem:[#allocation3 + $0x88] sm:$0xf] }
 0x2f1   : > { %7738 = vmatprep.subr.bf16.mxu0 %v8141_v14  ;;  %v3025_v21 = vsel %vm9512_vm8, %v6675_v18, %v9566_v59  ;;  %v8147_v59 = vld [vmem:[#allocation9 + $0x198] sm:$0xff]   ;;  %7598 = vmatprep.mubr.bf16.mxu1 %v6698_v43  ;;  %v4061_v42 = vshrl.u32 %v9690_v52, 16  ;;  %v4064_v48 = vshll.u32 %v9690_v52, 16  ;;  %v3078_v1 = vsel %vm9512_vm8, %v3070_v60, %v3077_v45  ;;  %v8149_v45 = vld [vmem:[#allocation9 + $0x190] sm:$0xff]  }
 0x2f2   : > { %v6699_v29 = vcombine.low %v3025_v21, %v3034_v32  ;;  %v9703_v57 = vor.u32 %v3967_v4, %v9578_v20  ;;  %v9705_v12 = vrot.slane %v4052_v53, 7  ;;  %v3036_v44 = vshrl.u32 %v2894_v24, 16  ;;  %v3912_v43 = vld [vmem:[#allocation3 + $0x10] sm:$0x8]  ;;  %v8154_v53 = vld [vmem:[#allocation9 + $0x178] sm:$0xff]   ;;  %v8155_v24 = vld [vmem:[#allocation9 + $0x180] sm:$0xff]  }
 0x2f3   : > { %7691 = vmatmul.mubr.bf16.gmra.mxu0 %v6753_v30  ;;  %v9710_v28 = vor.u32 %v3989_v56, %v9625_v23  ;;  %v4000_v41 = vor.u32 %v3998_v49, %v9627_v37  ;;  %7647 = vmatpush3.bf16.msra.mxu1 %v8142_v63  ;;  %v4063_v8 = vrot.slane %v4061_v42, 7  ;;  %v9717_v20 = vsel %vm9512_vm8, %v3949_v54, %v3956_v31  ;;  %v3932_v30 = vld [vmem:[#allocation3 + $0x78] sm:$0xf] }
 0x2f4   : > { %7739 = vmatpush3.bf16.msra.mxu0 %v8141_v14  ;;  %7599 = vmatmul.mubr.bf16.gmra.mxu1 %v6699_v29  ;;  %v2897_v14 = vld [vmem:[#allocation3 + $0x70] sm:$0x8]  ;;  %v9721_v60 = vsel %vm9512_vm8, %v3971_v19, %v3978_v35  ;;  %v6755_v15 = vcombine.low %v9688_v33, %v9690_v52  ;;  %v6676_v56 = vrot.slane %v3036_v44, 11  ;;  %v3993_v49 = vrot.slane %v9625_v23, 4  ;;  %v3934_v19 = vld [vmem:[#allocation3 + $0x84] sm:$0xf] }
 0x2f5   : > { %7740 = vmatprep.subr.bf16.mxu0 %v8143_v13  ;;  %7694 = vmatprep.mubr.bf16.mxu0 %v6754_v10  ;;  %v3058_v4 = vshrl.u32 %v2897_v14, 16  ;;  %v9729_v37 = vor.u32 %v4011_v55, %v9632_v50  ;;  %v4074_v61 = vshrl.u32 %v3931_v3, 16  ;;  %v4077_v32 = vshll.u32 %v3931_v3, 16  ;;  %v3915_v29 = vld [vmem:[#allocation3 + $0x20] sm:$0x8] }
 0x2f6   : > { %7648 = vmatprep.subr.bf16.mxu1 %v8145_v62  ;;  %v4015_v26 = vrot.slane %v9632_v50, 4  ;;  %v3047_v54 = vsel %vm9512_vm8, %v6676_v56, %v9586_v7  ;;  %v4083_v31 = vshrl.u32 %v3932_v30, 16  ;;  %v4086_v18 = vshll.u32 %v3932_v30, 16 }
 0x2f7   : > { %v6677_v63 = vrot.slane %v3058_v4, 11  ;;  %v4022_v40 = vor.u32 %v4020_v0, %v9652_v17  ;;  %7649 = vmatpush3.bf16.msra.mxu1 %v8145_v62  ;;  %v6700_v23 = vcombine.low %v3047_v54, %v9662_v34  ;;  %v6756_v50 = vcombine.low %v3931_v3, %v3932_v30  ;;  %v8153_v0 = vld [vmem:[#allocation9 + $0x188] sm:$0xff]   ;;  %v8156_v3 = vld [vmem:[#allocation9 + $0x170] sm:$0xff]  }
 0x2f8   : > { %7741 = vmatpush3.bf16.msra.mxu0 %v8143_v13  ;;  %v9742_v13 = vrot.slane %v4074_v61, 7  ;;  %7650 = vmatprep.subr.bf16.mxu1 %v8148_v58  ;;  %v4085_v38 = vrot.slane %v4083_v31, 7  ;;  %v4096_v35 = vshrl.u32 %v3934_v19, 16  ;;  %v4099_v2 = vshll.u32 %v3934_v19, 16  ;;  %v9799_v31 = vld [vmem:[#allocation3 + $0x34] sm:$0xf] }
 0x2f9   : > { %7742 = vmatprep.subr.bf16.mxu0 %v8147_v59  ;;  %v3069_v55 = vsel %vm9512_vm8, %v6677_v63, %v9641_v22  ;;  %7602 = vmatprep.mubr.bf16.mxu1 %v6700_v23  ;;  %v4105_v17 = vshrl.u32 %v3935_v27, 16  ;;  %v4108_v34 = vshll.u32 %v3935_v27, 16  ;;  %v9747_v22 = vor.u32 %v4033_v9, %v9684_v6 }
 0x2fa   : > { %v6701_v7 = vcombine.low %v3069_v55, %v3078_v1  ;;  %v9752_v21 = vor.u32 %v4042_v51, %v9692_v39  ;;  %v9754_v10 = vrot.slane %v4096_v35, 7  ;;  %v3937_v62 = vshrl.u32 %v3912_v43, 16  ;;  %v4975_v1 = vld [vmem:[#allocation3 + $0x20] sm:$0x8] }
 0x2fb   : > { %7695 = vmatmul.mubr.bf16.gmra.mxu0 %v6755_v15  ;;  %v9763_v25 = vor.u32 %v4055_v47, %v9705_v12  ;;  %7651 = vmatpush3.bf16.msra.mxu1 %v8148_v58  ;;  %v4107_v46 = vrot.slane %v4105_v17, 7  ;;  %v6757_v9 = vcombine.low %v3934_v19, %v3935_v27  ;;  %v3959_v51 = vshrl.u32 %v3915_v29, 16  ;;  %v9778_v58 = vld [vmem:[#allocation3 + $0x24] sm:$0xf] }
 0x2fc   : > { %7743 = vmatpush3.bf16.msra.mxu0 %v8147_v59  ;;  %7603 = vmatmul.mubr.bf16.gmra.mxu1 %v6701_v7  ;;  %v9758_v59 = vsel %vm9512_vm8, %v3993_v49, %v4000_v41  ;;  %v9767_v39 = vsel %vm9512_vm8, %v4015_v26, %v4022_v40  ;;  %v6726_v42 = vrot.slane %v3937_v62, 11  ;;  %v9771_v44 = vor.u32 %v4064_v48, %v4063_v8  ;;  %v9780_v41 = vld [vmem:[#allocation3 + $0x28] sm:$0xf]  ;;  %v9803_v40 = vld [vmem:[#allocation9 + $0x238] sm:$0xff]   ;;  %v3918_v7 = vld [vmem:[#allocation3 + $0x30] sm:$0x8] }
 0x2fd   : > { %7744 = vmatprep.subr.bf16.mxu0 %v8149_v45  ;;  %7698 = vmatprep.mubr.bf16.mxu0 %v6756_v50  ;;  %v9774_v33 = vor.u32 %v4077_v32, %v9742_v13  ;;  %v9776_v47 = vor.u32 %v4086_v18, %v4085_v38  ;;  %v6727_v14 = vrot.slane %v3959_v51, 11  ;;  %v5000_v4 = vshrl.u32 %v4975_v1, 16  ;;  %v4978_v32 = vld [vmem:[#allocation3 + $0x30] sm:$0x8]  ;;  %v9801_v18 = vld [vmem:[#allocation3 + $0x38] sm:$0xf] }
 0x2fe   : > { %7652 = vmatprep.subr.bf16.mxu1 %v8151_v36  ;;  %v9783_v15 = vor.u32 %v4099_v2, %v9754_v10  ;;  %v9785_v56 = vor.u32 %v4108_v34, %v4107_v46  ;;  %v3948_v52 = vsel %vm9512_vm8, %v6726_v42, %v9650_v11  ;;  %v5005_v48 = vshrl.u32 %v9778_v58, 16  ;;  %v9811_v38 = vld [vmem:[#allocation9 + $0x168] sm:$0xff]   ;;  %v3921_v34 = vld [vmem:[#allocation3 + $0x40] sm:$0x8] }
 0x2ff   : > { %v5008_v8 = vshll.u32 %v9778_v58, 16  ;;  %7653 = vmatpush3.bf16.msra.mxu1 %v8151_v36  ;;  %v6734_v49 = vcombine.low %v3948_v52, %v9717_v20  ;;  %v3970_v63 = vsel %vm9512_vm8, %v6727_v14, %v9703_v57  ;;  %v6782_v30 = vrot.slane %v5000_v4, 11  ;;  %v8159_v4 = vld [vmem:[#allocation9 + $0x230] sm:$0xff]   ;;  %v4981_v52 = vld [vmem:[#allocation3 + $0x40] sm:$0x8] }
 0x300   : > { %7745 = vmatpush3.bf16.msra.mxu0 %v8149_v45  ;;  %v5014_v45 = vshrl.u32 %v9780_v41, 16  ;;  %v5017_v61 = vshll.u32 %v9780_v41, 16  ;;  %v6735_v11 = vcombine.low %v3970_v63, %v9721_v60  ;;  %7702 = vmatprep.subr.bf16.mxu1 %v8154_v53  ;;  %v5007_v26 = vrot.slane %v5005_v48, 7  ;;  %v9819_v48 = vld [vmem:[#allocation3 + $0x44] sm:$0xf] }
 0x301   : > { %7746 = vmatprep.subr.bf16.mxu0 %v8153_v0  ;;  %v6806_v20 = vcombine.low %v9778_v58, %v9780_v41  ;;  %7654 = vmatprep.mubr.bf16.mxu1 %v6734_v49  ;;  %v5022_v57 = vshrl.u32 %v4978_v32, 16  ;;  %v5027_v23 = vshrl.u32 %v9799_v31, 16  ;;  %v5030_v55 = vshll.u32 %v9799_v31, 16  ;;  %v9832_v49 = vld [vmem:[#allocation3 + $0x48] sm:$0xf]  ;;  %v6842_v41 = vld [vmem:[%s8759_s12 + $0x70] sm:$0xff] }
 0x302   : > { %v5016_v54 = vrot.slane %v5014_v45, 7  ;;  %v5036_v60 = vshrl.u32 %v9801_v18, 16  ;;  %v5010_v50 = vor.u32 %v5008_v8, %v5007_v26  ;;  %v5012_v36 = vrot.slane %v5007_v26, 4  ;;  %v8160_v26 = vld [vmem:[#allocation9 + $0x160] sm:$0xff]   ;;  %v6841_v58 = vld [vmem:[%s8759_s12 + $0x68] sm:$0xff] }
 0x303   : > { %7699 = vmatmul.mubr.bf16.gmra.mxu0 %v6757_v9  ;;  %v5039_v27 = vshll.u32 %v9801_v18, 16  ;;  %v6783_v35 = vrot.slane %v5022_v57, 11  ;;  %v5029_v2 = vrot.slane %v5027_v23, 7  ;;  %v3981_v17 = vshrl.u32 %v3918_v7, 16 }
 0x304   : > { %7747 = vmatpush3.bf16.msra.mxu0 %v8153_v0  ;;  %7655 = vmatmul.mubr.bf16.vlgmr.msra.gmra.mxu1 %v6735_v11  ;;  %v5019_v19 = vor.u32 %v5017_v61, %v5016_v54  ;;  %v5038_v0 = vrot.slane %v5036_v60, 7  ;;  %v5011_v43 = vsel %vm9512_vm8, %v6782_v30, %v5010_v50  ;;  %v4003_v29 = vshrl.u32 %v3921_v34, 16  ;;  %v9845_v60 = vld [vmem:[#allocation3 + $0x54] sm:$0xf]  ;;  %v9847_v50 = vld [vmem:[#allocation3 + $0x58] sm:$0xf] }
 0x305   : > { %7748 = vmatprep.subr.bf16.mxu0 %v8155_v24  ;;  %7703 = vmatpush3.bf16.msra.mxu1 %v8154_v53  ;;  %v4037_v46 = vrot.slane %v9684_v6, 4  ;;  %v5032_v51 = vor.u32 %v5030_v55, %v5029_v2  ;;  %v5034_v42 = vrot.slane %v5029_v2, 4  ;;  %v6728_v1 = vrot.slane %v3981_v17, 11 }
 0x306   : > { %v5020_v62 = vsel %vm9512_vm8, %v5012_v36, %v5019_v19  ;;  %7704 = vmatprep.subr.bf16.mxu1 %v8156_v3  ;;  %v5041_v53 = vor.u32 %v5039_v27, %v5038_v0  ;;  %v6729_v14 = vrot.slane %v4003_v29, 11  ;;  %v6807_v6 = vcombine.low %v9799_v31, %v9801_v18 }
 0x307   : > { %v6790_v9 = vcombine.low %v5011_v43, %v5020_v62  ;;  %v9824_v8 = vsel %vm9512_vm8, %v4037_v46, %v9752_v21  ;;  %v5044_v63 = vshrl.u32 %v4981_v52, 16  ;;  %v5049_v30 = vshrl.u32 %v9819_v48, 16  ;;  %v3924_v43 = vld [vmem:[#allocation3 + $0x50] sm:$0x8]  ;;  %v3927_v46 = vld [vmem:[#allocation3 + $0x60] sm:$0x8] }
 0x308   : > { %7749 = vmatpush3.bf16.msra.mxu0 %v8155_v24  ;;  %v5033_v24 = vsel %vm9512_vm8, %v6783_v35, %v5032_v51  ;;  %v5042_v45 = vsel %vm9512_vm8, %v5034_v42, %v5041_v53  ;;  %v3992_v21 = vsel %vm9512_vm8, %v6728_v1, %v9710_v28  ;;  %v4014_v32 = vsel %vm9512_vm8, %v6729_v14, %v9729_v37  ;;  %v8161_v35 = vld [vmem:[#allocation9 + $0x228] sm:$0xff]   ;;  %v8162_v51 = vld [vmem:[#allocation9 + $0x158] sm:$0xff]  }
 0x309   : > { %7798 = vmatprep.subr.bf16.mxu0 %v9803_v40  ;;  %7750 = vmatprep.mubr.bf16.mxu0 %v6790_v9  ;;  %v6791_v61 = vcombine.low %v5033_v24, %v5042_v45  ;;  %v5052_v11 = vshll.u32 %v9819_v48, 16  ;;  %v6736_v54 = vcombine.low %v3992_v21, %v9758_v59  ;;  %v6737_v57 = vcombine.low %v4014_v32, %v9767_v39  ;;  %v9868_v21 = vld [vmem:[#allocation3 + $0x64] sm:$0xf] }
 0x30a   : > { %7705 = vmatpush3.bf16.msra.mxu1 %v8156_v3  ;;  %v4984_v3 = vld [vmem:[#allocation3 + $0x50] sm:$0x8]  ;;  %v6784_v23 = vrot.slane %v5044_v63, 11  ;;  %v5051_v55 = vrot.slane %v5049_v30, 7  ;;  %v5058_v28 = vshrl.u32 %v9832_v49, 16  ;;  %v5061_v37 = vshll.u32 %v9832_v49, 16 }
 0x30b   : > { %7706 = vmatprep.subr.bf16.mxu1 %v9811_v38  ;;  %7751 = vmatmul.mubr.bf16.vlgmr.msra.gmra.mxu0 %v6791_v61  ;;  %v5066_v36 = vshrl.u32 %v4984_v3, 16  ;;  %v5071_v19 = vshrl.u32 %v9845_v60, 16  ;;  %v5074_v39 = vshll.u32 %v9845_v60, 16  ;;  %v5080_v7 = vshrl.u32 %v9847_v50, 16  ;;  %v4987_v61 = vld [vmem:[#allocation3 + $0x60] sm:$0x8] }
 0x30c   : > { %7799 = vmatpush3.bf16.msra.mxu0 %v9803_v40  ;;  %7658 = vmatprep.mubr.bf16.mxu1 %v6736_v54  ;;  %v5054_v59 = vor.u32 %v5052_v11, %v5051_v55  ;;  %v5056_v27 = vrot.slane %v5051_v55, 4  ;;  %v5060_v2 = vrot.slane %v5058_v28, 7  ;;  %v5083_v34 = vshll.u32 %v9847_v50, 16  ;;  %v9876_v3 = vld [vmem:[#allocation3 + $0x68] sm:$0xf]  ;;  %v8164_v28 = vld [vmem:[#allocation9 + $0x150] sm:$0xff]  }
 0x30d   : > { %7659 = vmatmul.mubr.bf16.gmra.mxu1 %v6737_v57  ;;  %7800 = vmatprep.subr.bf16.mxu0 %v8159_v4  ;;  %v6785_v0 = vrot.slane %v5066_v36, 11  ;;  %v5073_v17 = vrot.slane %v5071_v19, 7  ;;  %v5082_v62 = vrot.slane %v5080_v7, 7  ;;  %v4025_v29 = vshrl.u32 %v3924_v43, 16 }
 0x30e   : > { %7707 = vmatpush3.bf16.msra.mxu1 %v9811_v38  ;;  %v5055_v40 = vsel %vm9512_vm8, %v6784_v23, %v5054_v59  ;;  %v4059_v9 = vrot.slane %v9705_v12, 4  ;;  %v5063_v42 = vor.u32 %v5061_v37, %v5060_v2  ;;  %v4047_v14 = vshrl.u32 %v3927_v46, 16  ;;  %v9885_v59 = vld [vmem:[#allocation3 + $0x74] sm:$0xf]  ;;  %v8166_v46 = vld [vmem:[#allocation9 + $0x148] sm:$0xff]  }
 0x30f   : > { %7708 = vmatprep.subr.bf16.mxu1 %v8160_v26  ;;  %v5076_v53 = vor.u32 %v5074_v39, %v5073_v17  ;;  %v5078_v1 = vrot.slane %v5073_v17, 4  ;;  %v5085_v52 = vor.u32 %v5083_v34, %v5082_v62  ;;  %v6730_v24 = vrot.slane %v4025_v29, 11  ;;  %v9888_v39 = vld [vmem:[#allocation3 + $0x78] sm:$0xf] }
 0x310   : > { %7801 = vmatpush3.bf16.msra.mxu0 %v8159_v4  ;;  %v4067_v38 = vsel %vm9512_vm8, %v4059_v9, %v9771_v44  ;;  %v4081_v45 = vrot.slane %v9742_v13, 4  ;;  %v5064_v63 = vsel %vm9512_vm8, %v5056_v27, %v5063_v42  ;;  %v6731_v30 = vrot.slane %v4047_v14, 11  ;;  %v8163_v44 = vld [vmem:[#allocation9 + $0x220] sm:$0xff]  }
 0x311   : > { %v5077_v12 = vsel %vm9512_vm8, %v6785_v0, %v5076_v53  ;;  %7802 = vmatprep.subr.bf16.mxu0 %v8161_v35  ;;  %v4103_v4 = vrot.slane %v9754_v10, 4  ;;  %v6792_v32 = vcombine.low %v5055_v40, %v5064_v63  ;;  %v5086_v11 = vsel %vm9512_vm8, %v5078_v1, %v5085_v52  ;;  %v3930_v53 = vld [vmem:[#allocation3 + $0x70] sm:$0x8]  ;;  %v3933_v14 = vld [vmem:[#allocation3 + $0x80] sm:$0x8] }
 0x312   : > { %7709 = vmatpush3.bf16.msra.mxu1 %v8160_v26  ;;  %v4036_v13 = vsel %vm9512_vm8, %v6730_v24, %v9747_v22  ;;  %v5088_v54 = vshrl.u32 %v4987_v61, 16  ;;  %v6793_v57 = vcombine.low %v5077_v12, %v5086_v11  ;;  %v4058_v10 = vsel %vm9512_vm8, %v6731_v30, %v9763_v25  ;;  %v4990_v26 = vld [vmem:[#allocation3 + $0x70] sm:$0x8]  ;;  %v4993_v11 = vld [vmem:[#allocation3 + $0x80] sm:$0x8] }
 0x313   : > { %v6738_v23 = vcombine.low %v4036_v13, %v9824_v8  ;;  %7710 = vmatprep.subr.bf16.mxu1 %v8162_v51  ;;  %v5093_v55 = vshrl.u32 %v9868_v21, 16  ;;  %7754 = vmatprep.mubr.bf16.mxu0 %v6792_v32  ;;  %v6739_v37 = vcombine.low %v4058_v10, %v4067_v38  ;;  %v5096_v36 = vshll.u32 %v9868_v21, 16  ;;  %v8165_v8 = vld [vmem:[#allocation9 + $0x218] sm:$0xff]   ;;  %v9908_v13 = vld [vmem:[#allocation3 + $0x84] sm:$0xf] }
 0x314   : > { %7803 = vmatpush3.bf16.msra.mxu0 %v8161_v35  ;;  %v6786_v22 = vrot.slane %v5088_v54, 11  ;;  %v5102_v19 = vshrl.u32 %v9876_v3, 16  ;;  %v5105_v25 = vshll.u32 %v9876_v3, 16  ;;  %v5110_v7 = vshrl.u32 %v4990_v26, 16  ;;  %v9914_v10 = vld [vmem:[#allocation3 + $0x88] sm:$0xf] }
 0x315   : > { %7755 = vmatmul.mubr.bf16.gmra.mxu0 %v6793_v57  ;;  %7662 = vmatprep.mubr.bf16.mxu1 %v6738_v23  ;;  %v5095_v27 = vrot.slane %v5093_v55, 7  ;;  %v5115_v2 = vshrl.u32 %v9885_v59, 16  ;;  %v5118_v0 = vshll.u32 %v9885_v59, 16  ;;  %v5124_v17 = vshrl.u32 %v9888_v39, 16 }
 0x316   : > { %7663 = vmatmul.mubr.bf16.gmra.mxu1 %v6739_v37  ;;  %7804 = vmatprep.subr.bf16.mxu0 %v8163_v44  ;;  %v5104_v35 = vrot.slane %v5102_v19, 7  ;;  %v5127_v34 = vshll.u32 %v9888_v39, 16  ;;  %v6787_v62 = vrot.slane %v5110_v7, 11  ;;  %v4089_v1 = vsel %vm9512_vm8, %v4081_v45, %v9776_v47 }
 0x317   : > { %7711 = vmatpush3.bf16.msra.mxu1 %v8162_v51  ;;  %v5098_v43 = vor.u32 %v5096_v36, %v5095_v27  ;;  %v5100_v40 = vrot.slane %v5095_v27, 4  ;;  %v5117_v29 = vrot.slane %v5115_v2, 7  ;;  %v5126_v42 = vrot.slane %v5124_v17, 7  ;;  %v8167_v51 = vld [vmem:[#allocation9 + $0x210] sm:$0xff]  }
 0x318   : > { %7805 = vmatpush3.bf16.msra.mxu0 %v8163_v44  ;;  %v5107_v9 = vor.u32 %v5105_v25, %v5104_v35  ;;  %7712 = vmatprep.subr.bf16.mxu1 %v8164_v28  ;;  %v4111_v52 = vsel %vm9512_vm8, %v4103_v4, %v9785_v56  ;;  %v4069_v12 = vshrl.u32 %v3930_v53, 16  ;;  %v4091_v32 = vshrl.u32 %v3933_v14, 16  ;;  %v8168_v44 = vld [vmem:[#allocation9 + $0x140] sm:$0xff]   ;;  %v4996_v2 = vld [vmem:[#allocation3 + $0x90] sm:$0x8] }
 0x319   : > { %v5099_v24 = vsel %vm9512_vm8, %v6786_v22, %v5098_v43  ;;  %v5120_v38 = vor.u32 %v5118_v0, %v5117_v29  ;;  %v5122_v63 = vrot.slane %v5117_v29, 4  ;;  %7806 = vmatprep.subr.bf16.mxu0 %v8165_v8  ;;  %v5129_v61 = vor.u32 %v5127_v34, %v5126_v42  ;;  %v9925_v35 = vld [vmem:[#allocation3 + $0x94] sm:$0xf]  ;;  %v9928_v34 = vld [vmem:[#allocation3 + $0x98] sm:$0xf]  ;;  %v8171_v14 = vld [vmem:[#allocation9 + $0x200] sm:$0xff]  }
 0x31a   : > { %v5108_v30 = vsel %vm9512_vm8, %v5100_v40, %v5107_v9  ;;  %v6808_v47 = vcombine.low %v9819_v48, %v9832_v49  ;;  %v6732_v4 = vrot.slane %v4069_v12, 11  ;;  %v6809_v54 = vcombine.low %v9845_v60, %v9847_v50  ;;  %v9932_v9 = vld [vmem:[#allocation9 + $0x1f8] sm:$0xff]  }
 0x31b   : > { %v6794_v45 = vcombine.low %v5099_v24, %v5108_v30  ;;  %v5121_v56 = vsel %vm9512_vm8, %v6787_v62, %v5120_v38  ;;  %7713 = vmatpush3.bf16.msra.mxu1 %v8164_v28  ;;  %v5130_v57 = vsel %vm9512_vm8, %v5122_v63, %v5129_v61  ;;  %v6733_v23 = vrot.slane %v4091_v32, 11  ;;  %v8169_v28 = vld [vmem:[#allocation9 + $0x208] sm:$0xff]   ;;  %v4548_v24 = vld [vmem:[#allocation3 + $0x14] sm:$0xf]  ;;  %v4549_v38 = vld [vmem:[#allocation3 + $0x18] sm:$0xf] }
 0x31c   : > { %7807 = vmatpush3.bf16.msra.mxu0 %v8165_v8  ;;  %7714 = vmatprep.subr.bf16.mxu1 %v8166_v46  ;;  %v5132_v55 = vshrl.u32 %v4993_v11, 16  ;;  %v5137_v26 = vshrl.u32 %v9908_v13, 16  ;;  %v6795_v37 = vcombine.low %v5121_v56, %v5130_v57  ;;  %v4080_v22 = vsel %vm9512_vm8, %v6732_v4, %v9774_v33  ;;  %v4550_v32 = vld [vmem:[#allocation3 + $0x1c] sm:$0x1] }
 0x31d   : > { %7758 = vmatprep.mubr.bf16.mxu0 %v6794_v45  ;;  %7808 = vmatprep.subr.bf16.mxu0 %v8167_v51  ;;  %v5140_v36 = vshll.u32 %v9908_v13, 16  ;;  %v5146_v19 = vshrl.u32 %v9914_v10, 16  ;;  %v6740_v8 = vcombine.low %v4080_v22, %v4089_v1  ;;  %v4102_v27 = vsel %vm9512_vm8, %v6733_v23, %v9783_v15 }
 0x31e   : > { %v6788_v25 = vrot.slane %v5132_v55, 11  ;;  %v5139_v7 = vrot.slane %v5137_v26, 7  ;;  %7759 = vmatmul.mubr.bf16.gmra.mxu0 %v6795_v37  ;;  %v6741_v0 = vcombine.low %v4102_v27, %v4111_v52  ;;  %v5149_v33 = vshll.u32 %v9914_v10, 16  ;;  %v4551_v55 = vld [vmem:[#allocation3 + $0x24] sm:$0xf]  ;;  %v9945_v27 = vld [vmem:[#allocation10 + $0x38] sm:$0xff]  }
 0x31f   : > { %7715 = vmatpush3.bf16.msra.mxu1 %v8166_v46  ;;  %v5148_v17 = vrot.slane %v5146_v19, 7  ;;  %v5154_v43 = vshrl.u32 %v4996_v2, 16  ;;  %7666 = vmatprep.mubr.bf16.mxu1 %v6740_v8  ;;  %v5159_v15 = vshrl.u32 %v9925_v35, 16  ;;  %v5162_v29 = vshll.u32 %v9925_v35, 16  ;;  %v4552_v26 = vld [vmem:[#allocation3 + $0x28] sm:$0xf] }
 0x320   : > { %7809 = vmatpush3.bf16.msra.mxu0 %v8167_v51  ;;  %v5142_v40 = vor.u32 %v5140_v36, %v5139_v7  ;;  %v5144_v62 = vrot.slane %v5139_v7, 4  ;;  %7667 = vmatmul.mubr.bf16.gmra.mxu1 %v6741_v0  ;;  %v5168_v53 = vshrl.u32 %v9928_v34, 16  ;;  %v5171_v1 = vshll.u32 %v9928_v34, 16  ;;  %v4553_v8 = vld [vmem:[#allocation3 + $0x2c] sm:$0x1] }
 0x321   : > { %v5151_v42 = vor.u32 %v5149_v33, %v5148_v17  ;;  %7716 = vmatprep.subr.bf16.mxu1 %v8168_v44  ;;  %v6789_v46 = vrot.slane %v5154_v43, 11  ;;  %v5161_v51 = vrot.slane %v5159_v15, 7  ;;  %7810 = vmatprep.subr.bf16.mxu0 %v8169_v28  ;;  %v6810_v63 = vcombine.low %v9868_v21, %v9876_v3  ;;  %v6843_v3 = vld [vmem:[%s8759_s12 + $0x88] sm:$0xff] }
 0x322   : > { %v5143_v52 = vsel %vm9512_vm8, %v6788_v25, %v5142_v40  ;;  %v6811_v12 = vcombine.low %v9885_v59, %v9888_v39  ;;  %v5170_v61 = vrot.slane %v5168_v53, 7  ;;  %v4573_v45 = vshrl.u32 %v4548_v24, 16 }
 0x323   : > { %v5152_v30 = vsel %vm9512_vm8, %v5144_v62, %v5151_v42  ;;  %7717 = vmatpush3.bf16.msra.mxu1 %v8168_v44  ;;  %v4576_v56 = vshll.u32 %v4548_v24, 16  ;;  %v5164_v11 = vor.u32 %v5162_v29, %v5161_v51  ;;  %v5166_v57 = vrot.slane %v5161_v51, 4 }
 0x324   : > { %v6796_v4 = vcombine.low %v5143_v52, %v5152_v30  ;;  %7811 = vmatpush3.bf16.msra.mxu0 %v8169_v28  ;;  %v4582_v23 = vshll.u32 %v4549_v38, 16  ;;  %7766 = vmatprep.subr.bf16.mxu1 %v9932_v9  ;;  %v5173_v37 = vor.u32 %v5171_v1, %v5170_v61  ;;  %v4575_v22 = vrot.slane %v4573_v45, 4  ;;  %v5611_v52 = vld [vmem:[#allocation3 + $0x24] sm:$0xf] }
 0x325   : > { %v4578_v36 = vrot.slane %v4576_v56, 5  ;;  %v4586_v19 = vshrl.u32 %v4549_v38, 16  ;;  %7812 = vmatprep.subr.bf16.mxu0 %v8171_v14  ;;  %v5165_v44 = vsel %vm9512_vm8, %v6789_v46, %v5164_v11  ;;  %v4592_v7 = vshll.u32 %v4550_v32, 16  ;;  %v5613_v56 = vld [vmem:[#allocation3 + $0x2c] sm:$0x1] }
 0x326   : > { %7762 = vmatprep.mubr.bf16.mxu0 %v6796_v4  ;;  %v4584_v25 = vrot.slane %v4582_v23, 5  ;;  %v4597_v28 = vshrl.u32 %v4551_v55, 16  ;;  %v5174_v2 = vsel %vm9512_vm8, %v5166_v57, %v5173_v37  ;;  %v4600_v33 = vshll.u32 %v4551_v55, 16 }
 0x327   : > { %v4579_v0 = vor.u32 %v4578_v36, %v4575_v22  ;;  %v4588_v17 = vrot.slane %v4586_v19, 4  ;;  %v6797_v43 = vcombine.low %v5165_v44, %v5174_v2  ;;  %v4594_v40 = vrot.slane %v4592_v7, 5  ;;  %v5614_v22 = vld [vmem:[#allocation3 + $0x34] sm:$0xf]  ;;  %v5615_v36 = vld [vmem:[#allocation3 + $0x38] sm:$0xf] }
 0x328   : > { %v4599_v62 = vrot.slane %v4597_v28, 4  ;;  %v4606_v15 = vshll.u32 %v4552_v26, 16  ;;  %7813 = vmatpush3.bf16.msra.mxu0 %v8171_v14  ;;  %v4602_v53 = vrot.slane %v4600_v33, 5  ;;  %v4610_v1 = vshrl.u32 %v4552_v26, 16  ;;  %v5616_v33 = vld [vmem:[#allocation3 + $0x3c] sm:$0x1] }
 0x329   : > { %v4580_v29 = vrot.slane %v4579_v0, 4  ;;  %v4589_v42 = vor.u32 %v4588_v17, %v4584_v25  ;;  %7830 = vmatprep.subr.bf16.mxu0 %v9945_v27  ;;  %7763 = vmatmul.mubr.bf16.gmra.mxu0 %v6797_v43  ;;  %v4616_v51 = vshll.u32 %v4553_v8, 16  ;;  %v6812_v24 = vcombine.low %v9908_v13, %v9914_v10 }
 0x32a   : > { %v4608_v46 = vrot.slane %v4606_v15, 5  ;;  %v6813_v38 = vcombine.low %v9925_v35, %v9928_v34  ;;  %v4603_v61 = vor.u32 %v4602_v53, %v4599_v62  ;;  %v4612_v32 = vrot.slane %v4610_v1, 4  ;;  %v4554_v1 = vld [vmem:[#allocation3 + $0x34] sm:$0xf] }
 0x32b   : > { %v4585_v14 = vsel %vm9347_vm5, %v4580_v29, %v4584_v25  ;;  %v4590_v30 = vrot.slane %v4589_v42, 4  ;;  %v4618_v45 = vrot.slane %v4616_v51, 5  ;;  %v5636_v4 = vshrl.u32 %v5611_v52, 16 }
 0x32c   : > { %v5639_v11 = vshll.u32 %v5611_v52, 16  ;;  %v5645_v57 = vshll.u32 %v5612_v5, 16  ;;  %v4604_v55 = vrot.slane %v4603_v61, 4  ;;  %v4613_v26 = vor.u32 %v4612_v32, %v4608_v46  ;;  %v4555_v52 = vld [vmem:[#allocation3 + $0x38] sm:$0xf] }
 0x32d   : > { %v4595_v23 = vsel %vm9347_vm5, %v4590_v30, %v4594_v40  ;;  %v5649_v37 = vshrl.u32 %v5612_v5, 16  ;;  %v5638_v8 = vrot.slane %v5636_v4, 4  ;;  %v5655_v0 = vshll.u32 %v5613_v56, 16  ;;  %v4556_v61 = vld [vmem:[#allocation3 + $0x3c] sm:$0x1] }
 0x32e   : > { %v6766_v19 = vcombine.low %v4585_v14, %v4595_v23  ;;  %v5641_v44 = vrot.slane %v5639_v11, 5  ;;  %v5647_v25 = vrot.slane %v5645_v57, 5  ;;  %v4609_v7 = vsel %vm9347_vm5, %v4604_v55, %v4608_v46  ;;  %v8172_v46 = vld [vmem:[#allocation9 + $0x1f0] sm:$0xff]   ;;  %v4557_v57 = vld [vmem:[#allocation3 + $0x44] sm:$0xf] }
 0x32f   : > { %v4614_v28 = vrot.slane %v4613_v26, 4  ;;  %v5651_v2 = vrot.slane %v5649_v37, 4  ;;  %v5660_v43 = vshrl.u32 %v5614_v22, 16  ;;  %v5663_v40 = vshll.u32 %v5614_v22, 16  ;;  %v4558_v37 = vld [vmem:[#allocation3 + $0x48] sm:$0xf] }
 0x330   : > { %7718 = vmatprep.mubr.bf16.mxu1 %v6766_v19  ;;  %v5642_v17 = vor.u32 %v5641_v44, %v5638_v8  ;;  %v5669_v62 = vshll.u32 %v5615_v36, 16  ;;  %v5657_v42 = vrot.slane %v5655_v0, 5  ;;  %v5673_v53 = vshrl.u32 %v5615_v36, 16  ;;  %v8174_v0 = vld [vmem:[#allocation9 + $0x1e8] sm:$0xff]  }
 0x331   : > { %v4619_v15 = vsel %vm9347_vm5, %v4614_v28, %v4618_v45  ;;  %v5652_v29 = vor.u32 %v5651_v2, %v5647_v25  ;;  %v5662_v14 = vrot.slane %v5660_v43, 4  ;;  %v5665_v30 = vrot.slane %v5663_v40, 5  ;;  %v4559_v40 = vld [vmem:[#allocation3 + $0x4c] sm:$0x1] }
 0x332   : > { %v6767_v51 = vcombine.low %v4609_v7, %v4619_v15  ;;  %v5643_v5 = vrot.slane %v5642_v17, 4  ;;  %v5671_v56 = vrot.slane %v5669_v62, 5  ;;  %v5675_v4 = vrot.slane %v5673_v53, 4  ;;  %v5618_v53 = vld [vmem:[#allocation3 + $0x48] sm:$0xf] }
 0x333   : > { %v5653_v32 = vrot.slane %v5652_v29, 4  ;;  %v5679_v11 = vshll.u32 %v5616_v33, 16  ;;  %v5666_v23 = vor.u32 %v5665_v30, %v5662_v14  ;;  %v4621_v55 = vshrl.u32 %v4554_v1, 16  ;;  %v9973_v30 = vld [vmem:[#allocation10 + $0x30] sm:$0xff]  }
 0x334   : > { %7719 = vmatmul.mubr.bf16.vlgmr.msra.gmra.mxu1 %v6767_v51  ;;  %v5648_v45 = vsel %vm9347_vm5, %v5643_v5, %v5647_v25  ;;  %v4624_v26 = vshll.u32 %v4554_v1, 16  ;;  %v5676_v36 = vor.u32 %v5675_v4, %v5671_v56  ;;  %v4630_v8 = vshll.u32 %v4555_v52, 16 }
 0x335   : > { %7767 = vmatpush3.bf16.msra.mxu1 %v9932_v9  ;;  %v5658_v22 = vsel %vm9347_vm5, %v5653_v32, %v5657_v42  ;;  %v5681_v19 = vrot.slane %v5679_v11, 5  ;;  %v5667_v7 = vrot.slane %v5666_v23, 4  ;;  %v4623_v28 = vrot.slane %v4621_v55, 4  ;;  %v5617_v42 = vld [vmem:[#allocation3 + $0x44] sm:$0xf] }
 0x336   : > { %v6822_v44 = vcombine.low %v5648_v45, %v5658_v22  ;;  %7768 = vmatprep.subr.bf16.mxu1 %v8172_v46  ;;  %v4626_v2 = vrot.slane %v4624_v26, 5  ;;  %v5677_v17 = vrot.slane %v5676_v36, 4  ;;  %v4632_v25 = vrot.slane %v4630_v8, 5  ;;  %v5619_v26 = vld [vmem:[#allocation3 + $0x4c] sm:$0x1] }
 0x337   : > { %v4634_v33 = vshrl.u32 %v4555_v52, 16  ;;  %v4640_v43 = vshll.u32 %v4556_v61, 16  ;;  %v5672_v9 = vsel %vm9347_vm5, %v5667_v7, %v5671_v56  ;;  %v4645_v15 = vshrl.u32 %v4557_v57, 16  ;;  %v8176_v56 = vld [vmem:[#allocation9 + $0x1e0] sm:$0xff]   ;;  %v9977_v8 = vld [vmem:[#allocation10 + $0x28] sm:$0xff]  }
 0x338   : > { %7814 = vmatprep.mubr.bf16.mxu0 %v6822_v44  ;;  %v4627_v62 = vor.u32 %v4626_v2, %v4623_v28  ;;  %v4648_v29 = vshll.u32 %v4557_v57, 16  ;;  %v5682_v1 = vsel %vm9347_vm5, %v5677_v17, %v5681_v19  ;;  %v4654_v14 = vshll.u32 %v4558_v37, 16  ;;  %v5620_v19 = vld [vmem:[#allocation3 + $0x54] sm:$0xf] }
 0x339   : > { %7769 = vmatpush3.bf16.msra.mxu1 %v8172_v46  ;;  %v4636_v51 = vrot.slane %v4634_v33, 4  ;;  %v4642_v5 = vrot.slane %v4640_v43, 5  ;;  %v6823_v52 = vcombine.low %v5672_v9, %v5682_v1  ;;  %v4647_v32 = vrot.slane %v4645_v15, 4  ;;  %v5621_v15 = vld [vmem:[#allocation3 + $0x58] sm:$0xf] }
 0x33a   : > { %v4628_v61 = vrot.slane %v4627_v62, 4  ;;  %v4650_v4 = vrot.slane %v4648_v29, 5  ;;  %7770 = vmatprep.subr.bf16.mxu1 %v8174_v0  ;;  %v4656_v45 = vrot.slane %v4654_v14, 5  ;;  %v4658_v57 = vshrl.u32 %v4558_v37, 16  ;;  %v8178_v29 = vld [vmem:[#allocation9 + $0x1d8] sm:$0xff]  }
 0x33b   : > { %v4637_v11 = vor.u32 %v4636_v51, %v4632_v25  ;;  %v4664_v23 = vshll.u32 %v4559_v40, 16  ;;  %7815 = vmatmul.mubr.bf16.vlgmr.msra.gmra.mxu0 %v6823_v52  ;;  %v5684_v22 = vshrl.u32 %v5617_v42, 16  ;;  %v5687_v36 = vshll.u32 %v5617_v42, 16  ;;  %v5622_v14 = vld [vmem:[#allocation3 + $0x5c] sm:$0x1] }
 0x33c   : > { %v4633_v55 = vsel %vm9347_vm5, %v4628_v61, %v4632_v25  ;;  %v4651_v46 = vor.u32 %v4650_v4, %v4647_v32  ;;  %7831 = vmatpush3.bf16.msra.mxu0 %v9945_v27  ;;  %v4660_v7 = vrot.slane %v4658_v57, 4  ;;  %v5693_v2 = vshll.u32 %v5618_v53, 16 }
 0x33d   : > { %v4638_v44 = vrot.slane %v4637_v11, 4  ;;  %v4666_v28 = vrot.slane %v4664_v23, 5  ;;  %7771 = vmatpush3.bf16.msra.mxu1 %v8174_v0  ;;  %7832 = vmatprep.subr.bf16.mxu0 %v9973_v30  ;;  %v5686_v17 = vrot.slane %v5684_v22, 4  ;;  %v5689_v33 = vrot.slane %v5687_v36, 5 }
 0x33e   : > { %v4652_v37 = vrot.slane %v4651_v46, 4  ;;  %v5697_v25 = vshrl.u32 %v5618_v53, 16  ;;  %7772 = vmatprep.subr.bf16.mxu1 %v8176_v56  ;;  %v4661_v40 = vor.u32 %v4660_v7, %v4656_v45  ;;  %v5695_v9 = vrot.slane %v5693_v2, 5 }
 0x33f   : > { %v4643_v43 = vsel %vm9347_vm5, %v4638_v44, %v4642_v5  ;;  %v5703_v62 = vshll.u32 %v5619_v26, 16  ;;  %v5690_v1 = vor.u32 %v5689_v33, %v5686_v17  ;;  %v5708_v61 = vshrl.u32 %v5620_v19, 16  ;;  %v4560_v5 = vld [vmem:[#allocation3 + $0x54] sm:$0xf]  ;;  %v4562_v44 = vld [vmem:[#allocation3 + $0x5c] sm:$0x1] }
 0x340   : > { %v6768_v42 = vcombine.low %v4633_v55, %v4643_v43  ;;  %v4657_v0 = vsel %vm9347_vm5, %v4652_v37, %v4656_v45  ;;  %v5699_v51 = vrot.slane %v5697_v25, 4  ;;  %v4662_v52 = vrot.slane %v4661_v40, 4  ;;  %7833 = vmatpush3.bf16.msra.mxu0 %v9973_v30  ;;  %v4561_v55 = vld [vmem:[#allocation3 + $0x58] sm:$0xf]  ;;  %v9987_v45 = vld [vmem:[#allocation10 + $0x20] sm:$0xff]  }
 0x341   : > { %v5705_v53 = vrot.slane %v5703_v62, 5  ;;  %v5711_v32 = vshll.u32 %v5620_v19, 16  ;;  %7773 = vmatpush3.bf16.msra.mxu1 %v8176_v56  ;;  %v5691_v4 = vrot.slane %v5690_v1, 4  ;;  %v5717_v57 = vshll.u32 %v5621_v15, 16  ;;  %7834 = vmatprep.subr.bf16.mxu0 %v9977_v8  ;;  %v8180_v56 = vld [vmem:[#allocation9 + $0x1d0] sm:$0xff]  }
 0x342   : > { %7722 = vmatprep.mubr.bf16.mxu1 %v6768_v42  ;;  %v5700_v11 = vor.u32 %v5699_v51, %v5695_v9  ;;  %v5721_v23 = vshrl.u32 %v5621_v15, 16  ;;  %v4667_v46 = vsel %vm9347_vm5, %v4662_v52, %v4666_v28  ;;  %v5710_v26 = vrot.slane %v5708_v61, 4  ;;  %7774 = vmatprep.subr.bf16.mxu1 %v8178_v29  ;;  %v4563_v42 = vld [vmem:[#allocation3 + $0x64] sm:$0xf]  ;;  %v4564_v52 = vld [vmem:[#allocation3 + $0x68] sm:$0xf] }
 0x343   : > { %v5713_v22 = vrot.slane %v5711_v32, 5  ;;  %v5727_v36 = vshll.u32 %v5622_v14, 16  ;;  %v6769_v19 = vcombine.low %v4657_v0, %v4667_v46  ;;  %v5696_v7 = vsel %vm9347_vm5, %v5691_v4, %v5695_v9  ;;  %v9997_v9 = vld [vmem:[#allocation10 + $0x18] sm:$0xff]   ;;  %v8182_v61 = vld [vmem:[#allocation9 + $0x1c8] sm:$0xff]  }
 0x344   : > { %v5701_v2 = vrot.slane %v5700_v11, 4  ;;  %v5719_v37 = vrot.slane %v5717_v57, 5  ;;  %v5723_v33 = vrot.slane %v5721_v23, 4  ;;  %7835 = vmatpush3.bf16.msra.mxu0 %v9977_v8  ;;  %v4669_v43 = vshrl.u32 %v4560_v5, 16 }
 0x345   : > { %v5714_v17 = vor.u32 %v5713_v22, %v5710_v26  ;;  %v5729_v25 = vrot.slane %v5727_v36, 5  ;;  %7775 = vmatpush3.bf16.msra.mxu1 %v8178_v29  ;;  %v4672_v40 = vshll.u32 %v4560_v5, 16  ;;  %v4678_v62 = vshll.u32 %v4561_v55, 16  ;;  %7836 = vmatprep.subr.bf16.mxu0 %v9987_v45  ;;  %v4565_v36 = vld [vmem:[#allocation3 + $0x6c] sm:$0x1] }
 0x346   : > { %7723 = vmatmul.mubr.bf16.gmra.mxu1 %v6769_v19  ;;  %v5706_v28 = vsel %vm9347_vm5, %v5701_v2, %v5705_v53  ;;  %v4682_v15 = vshrl.u32 %v4561_v55, 16  ;;  %v5724_v51 = vor.u32 %v5723_v33, %v5719_v37  ;;  %v4671_v14 = vrot.slane %v4669_v43, 4  ;;  %7776 = vmatprep.subr.bf16.mxu1 %v8180_v56  ;;  %v10002_v55 = vld [vmem:[#allocation10 + $0x10] sm:$0xff]   ;;  %v5624_v33 = vld [vmem:[#allocation3 + $0x68] sm:$0xf] }
 0x347   : > { %v6824_v0 = vcombine.low %v5696_v7, %v5706_v28  ;;  %v5715_v1 = vrot.slane %v5714_v17, 4  ;;  %v4674_v29 = vrot.slane %v4672_v40, 5  ;;  %v4680_v32 = vrot.slane %v4678_v62, 5  ;;  %v5623_v7 = vld [vmem:[#allocation3 + $0x64] sm:$0xf] }
 0x348   : > { %v4684_v4 = vrot.slane %v4682_v15, 4  ;;  %v4688_v11 = vshll.u32 %v4562_v44, 16  ;;  %v5725_v5 = vrot.slane %v5724_v51, 4  ;;  %v4693_v57 = vshrl.u32 %v4563_v42, 16  ;;  %7837 = vmatpush3.bf16.msra.mxu0 %v9987_v45  ;;  %v8184_v15 = vld [vmem:[#allocation9 + $0x1c0] sm:$0xff]  }
 0x349   : > { %7818 = vmatprep.mubr.bf16.mxu0 %v6824_v0  ;;  %v5720_v53 = vsel %vm9347_vm5, %v5715_v1, %v5719_v37  ;;  %v4696_v23 = vshll.u32 %v4563_v42, 16  ;;  %v4675_v46 = vor.u32 %v4674_v29, %v4671_v14  ;;  %v4702_v19 = vshll.u32 %v4564_v52, 16  ;;  %7838 = vmatprep.subr.bf16.mxu0 %v9997_v9 }
 0x34a   : > { %v4685_v26 = vor.u32 %v4684_v4, %v4680_v32  ;;  %v4690_v22 = vrot.slane %v4688_v11, 5  ;;  %7777 = vmatpush3.bf16.msra.mxu1 %v8180_v56  ;;  %v5730_v44 = vsel %vm9347_vm5, %v5725_v5, %v5729_v25  ;;  %v4695_v2 = vrot.slane %v4693_v57, 4  ;;  %v10008_v56 = vld [vmem:[#allocation10 + $0x8] sm:$0xff]   ;;  %v5626_v11 = vld [vmem:[#allocation3 + $0x74] sm:$0xf] }
 0x34b   : > { %v4698_v37 = vrot.slane %v4696_v23, 5  ;;  %v4706_v17 = vshrl.u32 %v4564_v52, 16  ;;  %7778 = vmatprep.subr.bf16.mxu1 %v8182_v61  ;;  %v6825_v43 = vcombine.low %v5720_v53, %v5730_v44  ;;  %v4676_v28 = vrot.slane %v4675_v46, 4  ;;  %v5625_v52 = vld [vmem:[#allocation3 + $0x6c] sm:$0x1] }
 0x34c   : > { %v4686_v40 = vrot.slane %v4685_v26, 4  ;;  %v4704_v62 = vrot.slane %v4702_v19, 5  ;;  %v4712_v1 = vshll.u32 %v4565_v36, 16  ;;  %v5732_v51 = vshrl.u32 %v5623_v7, 16  ;;  %7839 = vmatpush3.bf16.msra.mxu0 %v9997_v9  ;;  %v5627_v46 = vld [vmem:[#allocation3 + $0x78] sm:$0xf] }
 0x34d   : > { %v4699_v42 = vor.u32 %v4698_v37, %v4695_v2  ;;  %v4708_v0 = vrot.slane %v4706_v17, 4  ;;  %7819 = vmatmul.mubr.bf16.gmra.mxu0 %v6825_v43  ;;  %v4681_v25 = vsel %vm9347_vm5, %v4676_v28, %v4680_v32  ;;  %v5735_v29 = vshll.u32 %v5623_v7, 16  ;;  %7840 = vmatprep.subr.bf16.mxu0 %v10002_v55  ;;  %v5628_v32 = vld [vmem:[#allocation3 + $0x7c] sm:$0x1]  ;;  %v4566_v17 = vld [vmem:[#allocation3 + $0x74] sm:$0xf] }
 0x34e   : > { %v4691_v14 = vsel %vm9347_vm5, %v4686_v40, %v4690_v22  ;;  %v5741_v4 = vshll.u32 %v5624_v33, 16  ;;  %v4714_v23 = vrot.slane %v4712_v1, 5  ;;  %7779 = vmatpush3.bf16.msra.mxu1 %v8182_v61  ;;  %v5734_v26 = vrot.slane %v5732_v51, 4 }
 0x34f   : > { %v6770_v53 = vcombine.low %v4681_v25, %v4691_v14  ;;  %v4700_v5 = vrot.slane %v4699_v42, 4  ;;  %v4709_v57 = vor.u32 %v4708_v0, %v4704_v62  ;;  %v5737_v36 = vrot.slane %v5735_v29, 5  ;;  %7780 = vmatprep.subr.bf16.mxu1 %v8184_v15  ;;  %v4567_v42 = vld [vmem:[#allocation3 + $0x78] sm:$0xf] }
 0x350   : > { %v5743_v19 = vrot.slane %v5741_v4, 5  ;;  %v5745_v44 = vshrl.u32 %v5624_v33, 16  ;;  %v5751_v2 = vshll.u32 %v5625_v52, 16  ;;  %v5756_v37 = vshrl.u32 %v5626_v11, 16  ;;  %7841 = vmatpush3.bf16.msra.mxu0 %v10002_v55  ;;  %v10019_v33 = vld [vmem:[#allocation10] sm:$0xff]  }
 0x351   : > { %7726 = vmatprep.mubr.bf16.mxu1 %v6770_v53  ;;  %v4705_v22 = vsel %vm9347_vm5, %v4700_v5, %v4704_v62  ;;  %v4710_v7 = vrot.slane %v4709_v57, 4  ;;  %v5738_v43 = vor.u32 %v5737_v36, %v5734_v26  ;;  %v5759_v40 = vshll.u32 %v5626_v11, 16  ;;  %7842 = vmatprep.subr.bf16.mxu0 %v10008_v56  ;;  %v4568_v5 = vld [vmem:[#allocation3 + $0x7c] sm:$0x1]  ;;  %v4569_v36 = vld [vmem:[#allocation3 + $0x84] sm:$0xf] }
 0x352   : > { %v5747_v28 = vrot.slane %v5745_v44, 4  ;;  %v5765_v61 = vshll.u32 %v5627_v46, 16  ;;  %v5753_v1 = vrot.slane %v5751_v2, 5  ;;  %v5758_v62 = vrot.slane %v5756_v37, 4  ;;  %7781 = vmatpush3.bf16.msra.mxu1 %v8184_v15  ;;  %v4570_v44 = vld [vmem:[#allocation3 + $0x88] sm:$0xf] }
 0x353   : > { %v4715_v0 = vsel %vm9347_vm5, %v4710_v7, %v4714_v23  ;;  %v5769_v51 = vshrl.u32 %v5627_v46, 16  ;;  %v5739_v14 = vrot.slane %v5738_v43, 4  ;;  %v5761_v29 = vrot.slane %v5759_v40, 5  ;;  %7862 = vmatprep.subr.bf16.mxu1 %v9945_v27 }
 0x354   : > { %v6771_v25 = vcombine.low %v4705_v22, %v4715_v0  ;;  %v5748_v52 = vor.u32 %v5747_v28, %v5743_v19  ;;  %v5767_v4 = vrot.slane %v5765_v61, 5  ;;  %v5775_v53 = vshll.u32 %v5628_v32, 16  ;;  %7843 = vmatpush3.bf16.msra.mxu0 %v10008_v56 }
 0x355   : > { %v5771_v11 = vrot.slane %v5769_v51, 4  ;;  %v4717_v57 = vshrl.u32 %v4566_v17, 16  ;;  %v5744_v23 = vsel %vm9347_vm5, %v5739_v14, %v5743_v19  ;;  %v5762_v46 = vor.u32 %v5761_v29, %v5758_v62  ;;  %7844 = vmatprep.subr.bf16.mxu0 %v10019_v33  ;;  %v4571_v62 = vld [vmem:[#allocation3 + $0x8c] sm:$0x1]  ;;  %v5629_v29 = vld [vmem:[#allocation3 + $0x84] sm:$0xf] }
 0x356   : > { %7727 = vmatmul.mubr.bf16.gmra.mxu1 %v6771_v25  ;;  %v5749_v26 = vrot.slane %v5748_v52, 4  ;;  %v4720_v15 = vshll.u32 %v4566_v17, 16  ;;  %v5777_v7 = vrot.slane %v5775_v53, 5  ;;  %v4726_v37 = vshll.u32 %v4567_v42, 16 }
 0x357   : > { %v5772_v22 = vor.u32 %v5771_v11, %v5767_v4  ;;  %v4719_v2 = vrot.slane %v4717_v57, 4  ;;  %v5763_v43 = vrot.slane %v5762_v46, 4  ;;  %v4730_v40 = vshrl.u32 %v4567_v42, 16  ;;  %v5630_v11 = vld [vmem:[#allocation3 + $0x88] sm:$0xf] }
 0x358   : > { %v5754_v32 = vsel %vm9347_vm5, %v5749_v26, %v5753_v1  ;;  %v4722_v28 = vrot.slane %v4720_v15, 5  ;;  %v4728_v19 = vrot.slane %v4726_v37, 5  ;;  %v4736_v51 = vshll.u32 %v4568_v5, 16  ;;  %7845 = vmatpush3.bf16.msra.mxu0 %v10019_v33 }
 0x359   : > { %v6826_v61 = vcombine.low %v5744_v23, %v5754_v32  ;;  %v5773_v0 = vrot.slane %v5772_v22, 4  ;;  %v5768_v17 = vsel %vm9347_vm5, %v5763_v43, %v5767_v4  ;;  %v4732_v14 = vrot.slane %v4730_v40, 4  ;;  %v5631_v43 = vld [vmem:[#allocation3 + $0x8c] sm:$0x1] }
 0x35a   : > { %v4723_v25 = vor.u32 %v4722_v28, %v4719_v2  ;;  %v4741_v52 = vshrl.u32 %v4569_v36, 16  ;;  %v4738_v42 = vrot.slane %v4736_v51, 5  ;;  %v4744_v53 = vshll.u32 %v4569_v36, 16  ;;  %v5632_v51 = vld [vmem:[#allocation3 + $0x94] sm:$0xf] }
 0x35b   : > { %7822 = vmatprep.mubr.bf16.mxu0 %v6826_v61  ;;  %v5778_v1 = vsel %vm9347_vm5, %v5773_v0, %v5777_v7  ;;  %v4750_v57 = vshll.u32 %v4570_v44, 16  ;;  %v4733_v26 = vor.u32 %v4732_v14, %v4728_v19  ;;  %v4754_v37 = vshrl.u32 %v4570_v44, 16 }
 0x35c   : > { %v6827_v23 = vcombine.low %v5768_v17, %v5778_v1  ;;  %v4724_v5 = vrot.slane %v4723_v25, 4  ;;  %v4743_v46 = vrot.slane %v4741_v52, 4  ;;  %v4746_v15 = vrot.slane %v4744_v53, 5 }
 0x35d   : > { %v4752_v22 = vrot.slane %v4750_v57, 5  ;;  %v4760_v4 = vshll.u32 %v4571_v62, 16  ;;  %v4734_v32 = vrot.slane %v4733_v26, 4  ;;  %v5780_v28 = vshrl.u32 %v5629_v29, 16  ;;  %v5633_v62 = vld [vmem:[#allocation3 + $0x98] sm:$0xf] }
 0x35e   : > { %7823 = vmatmul.mubr.bf16.gmra.mxu0 %v6827_v23  ;;  %v4729_v2 = vsel %vm9347_vm5, %v4724_v5, %v4728_v19  ;;  %v5783_v40 = vshll.u32 %v5629_v29, 16  ;;  %v4747_v7 = vor.u32 %v4746_v15, %v4743_v46  ;;  %v4756_v61 = vrot.slane %v4754_v37, 4  ;;  %v5634_v15 = vld [vmem:[#allocation3 + $0x9c] sm:$0x1] }
 0x35f   : > { %v4762_v36 = vrot.slane %v4760_v4, 5  ;;  %v5789_v0 = vshll.u32 %v5630_v11, 16  ;;  %v4739_v17 = vsel %vm9347_vm5, %v4734_v32, %v4738_v42  ;;  %v5782_v25 = vrot.slane %v5780_v28, 4 }
 0x360   : > { %v5785_v14 = vrot.slane %v5783_v40, 5  ;;  %v5793_v44 = vshrl.u32 %v5630_v11, 16  ;;  %v6772_v52 = vcombine.low %v4729_v2, %v4739_v17  ;;  %v4748_v1 = vrot.slane %v4747_v7, 4 }
 0x361   : > { %v4757_v53 = vor.u32 %v4756_v61, %v4752_v22  ;;  %v5791_v19 = vrot.slane %v5789_v0, 5  ;;  %v5799_v5 = vshll.u32 %v5631_v43, 16  ;;  %v5804_v29 = vshrl.u32 %v5632_v51, 16 }
 0x362   : > { %v5786_v57 = vor.u32 %v5785_v14, %v5782_v25  ;;  %v5795_v23 = vrot.slane %v5793_v44, 4  ;;  %7730 = vmatprep.mubr.bf16.mxu1 %v6772_v52  ;;  %v4753_v26 = vsel %vm9347_vm5, %v4748_v1, %v4752_v22  ;;  %v5807_v37 = vshll.u32 %v5632_v51, 16 }
 0x363   : > { %v4758_v46 = vrot.slane %v4757_v53, 4  ;;  %v5813_v42 = vshll.u32 %v5633_v62, 16  ;;  %v5801_v11 = vrot.slane %v5799_v5, 5  ;;  %v5806_v28 = vrot.slane %v5804_v29, 4  ;;  %v6840_v53 = vld [vmem:[%s8759_s12 + $0x50] sm:$0xff] }
 0x364   : > { %v5787_v4 = vrot.slane %v5786_v57, 4  ;;  %v5796_v32 = vor.u32 %v5795_v23, %v5791_v19  ;;  %v5809_v40 = vrot.slane %v5807_v37, 5  ;;  %v5817_v43 = vshrl.u32 %v5633_v62, 16  ;;  %v6839_v62 = vld [vmem:[%s8759_s12 + $0x48] sm:$0xff]  ;;  %v6852_v37 = vld [vmem:[%s8759_s12 + $0x110] sm:$0xff] }
 0x365   : > { %v4763_v2 = vsel %vm9347_vm5, %v4758_v46, %v4762_v36  ;;  %v5815_v7 = vrot.slane %v5813_v42, 5  ;;  %v5823_v17 = vshll.u32 %v5634_v15, 16  ;;  %v6076_v5 = vpack.c.bf16 %v6840_v53, %v6839_v62  ;;  %v6850_v46 = vld [vmem:[%s8759_s12 + $0xf0] sm:$0xff]  ;;  %v6851_v15 = vld [vmem:[%s8759_s12 + $0x108] sm:$0xff] }
 0x366   : > { %v6773_v61 = vcombine.low %v4753_v26, %v4763_v2  ;;  %v5792_v22 = vsel %vm9347_vm5, %v5787_v4, %v5791_v19  ;;  %v5797_v0 = vrot.slane %v5796_v32, 4  ;;  %v5810_v51 = vor.u32 %v5809_v40, %v5806_v28  ;;  %v6849_v26 = vld [vmem:[%s8759_s12 + $0xe8] sm:$0xff]  ;;  %v6854_v40 = vld [vmem:[%s8759_s12 + $0x130] sm:$0xff] }
 0x367   : > { %v5819_v25 = vrot.slane %v5817_v43, 4  ;;  %v5825_v1 = vrot.slane %v5823_v17, 5  ;;  %v6077_v16 = vpack.c.bf16 %v6842_v41, %v6841_v58  ;;  %v6081_v4 = vpack.c.bf16 %v6850_v46, %v6849_v26 }
 0x368   : > { %7731 = vmatmul.mubr.bf16.gmra.mxu1 %v6773_v61  ;;  %v5802_v14 = vsel %vm9347_vm5, %v5797_v0, %v5801_v11  ;;  %v5811_v52 = vrot.slane %v5810_v51, 4  ;;  %v6082_v11 = vpack.c.bf16 %v6852_v37, %v6851_v15 }
 0x369   : > { %v6828_v44 = vcombine.low %v5792_v22, %v5802_v14  ;;  %v5820_v36 = vor.u32 %v5819_v25, %v5815_v7  ;;  %7782 = vmatprep.mubr.bf16.mxu1 %v6806_v20 }
 0x36a   : > { %v5816_v19 = vsel %vm9347_vm5, %v5811_v52, %v5815_v7 }
 0x36b   : > { %7826 = vmatprep.mubr.bf16.mxu0 %v6828_v44  ;;  %v5821_v57 = vrot.slane %v5820_v36, 4 }
 0x36d   : > { %v5826_v23 = vsel %vm9347_vm5, %v5821_v57, %v5825_v1 }
 0x36e   : > { %v6829_v29 = vcombine.low %v5816_v19, %v5826_v23 }
 0x370   : > { %7827 = vmatmul.mubr.bf16.gmra.mxu0 %v6829_v29  ;;  %7783 = vmatmul.mubr.bf16.vlgmr.msra.gmra.mxu1 %v6807_v6 }
 0x371   : > { %7870 = vmatpush3.bf16.msra.mxu1 %v9945_v27  ;;  %7846 = vmatprep.mubr.bf16.mxu0 %v6076_v5  ;;  %v6846_v27 = vld [vmem:[%s8759_s12 + $0xb0] sm:$0xff] }
 0x372   : > { %7863 = vmatprep.subr.bf16.mxu1 %v9973_v30  ;;  %7786 = vmatprep.mubr.bf16.mxu1 %v6808_v47  ;;  %v6844_v47 = vld [vmem:[%s8759_s12 + $0x90] sm:$0xff] }
 0x373   : > { %v6078_v59 = vpack.c.bf16 %v6844_v47, %v6843_v3 }
 0x375   : > { %7871 = vmatpush3.bf16.msra.mxu1 %v9973_v30 }
 0x376   : > { %7864 = vmatprep.subr.bf16.mxu1 %v9977_v8 }
 0x378   : > { %7847 = vmatmul.mubr.bf16.vlgmr.msra.gmra.mxu0 %v6077_v16  ;;  %7787 = vmatmul.mubr.bf16.gmra.mxu1 %v6809_v54 }
 0x379   : > { %7872 = vmatpush3.bf16.msra.mxu1 %v9977_v8  ;;  %7790 = vmatprep.mubr.bf16.mxu1 %v6810_v63  ;;  %v6847_v8 = vld [vmem:[%s8759_s12 + $0xc8] sm:$0xff] }
 0x37a   : > { %7865 = vmatprep.subr.bf16.mxu1 %v9987_v45 }
 0x37b   : > { %v10068_v20 = vpop.f32.mrf.mxu1 }
 0x37d   : > { %v10077_v31 = vpop.f32.mrf.mxu1  ;;  %v10082_v48 = vpop.f32.mrf.mxu0  ;;  %7873 = vmatpush3.bf16.msra.mxu1 %v9987_v45  ;;  %v6848_v45 = vld [vmem:[%s8759_s12 + $0xd0] sm:$0xff] }
 0x37e   : > { %7866 = vmatprep.subr.bf16.mxu1 %v9997_v9 }
 0x37f   : > { %v10080_v18 = vpop.f32.mrf.mxu1  ;;  %v10087_v49 = vpop.f32.mrf.mxu0 }
 0x380   : > { %7791 = vmatmul.mubr.bf16.gmra.mxu1 %v6811_v12  ;;  %v6845_v12 = vld [vmem:[%s8759_s12 + $0xa8] sm:$0xff] }
 0x381   : > { %v10085_v6 = vpop.f32.mrf.mxu1  ;;  %v10092_v50 = vpop.f32.mrf.mxu0  ;;  %7874 = vmatpush3.bf16.msra.mxu1 %v9997_v9  ;;  %7794 = vmatprep.mubr.bf16.mxu1 %v6812_v24  ;;  %v6079_v35 = vpack.c.bf16 %v6846_v27, %v6845_v12 }
 0x382   : > { %7867 = vmatprep.subr.bf16.mxu1 %v10002_v55 }
 0x383   : > { %v10090_v60 = vpop.f32.mrf.mxu1  ;;  %v10106_v54 = vpop.f32.mrf.mxu0 }
 0x385   : > { %v10101_v21 = vpop.f32.mrf.mxu1  ;;  %7875 = vmatpush3.bf16.msra.mxu1 %v10002_v55 }
 0x386   : > { %7868 = vmatprep.subr.bf16.mxu1 %v10008_v56 }
 0x387   : > { %v10108_v63 = vpop.f32.mrf.mxu1  ;;  %v10114_v13 = vpop.f32.mrf.mxu0 }
 0x388   : > { %7795 = vmatmul.mubr.bf16.gmra.mxu1 %v6813_v38  ;;  %v6080_v38 = vpack.c.bf16 %v6848_v45, %v6847_v8 }
 0x389   : > { %v10111_v39 = vpop.f32.mrf.mxu1  ;;  %7876 = vmatpush3.bf16.msra.mxu1 %v10008_v56  ;;  %7850 = vmatprep.mubr.bf16.mxu1 %v6078_v59  ;;  %v3848_v24 = vpop.f32.mrf.mxu0 }
 0x38a   : > { %7869 = vmatprep.subr.bf16.mxu1 %v10019_v33 }
 0x38b   : > { %v10116_v10 = vpop.f32.mrf.mxu1  ;;  %v7629_v34 = vpop.f32.mrf.mxu0 }
 0x38d   : > { %v10124_v30 = vpop.f32.mrf.mxu1  ;;  %7877 = vmatpush3.bf16.msra.mxu1 %v10019_v33  ;;  %v3851_v56 = vpop.f32.mrf.mxu0  ;;  %v6853_v33 = vld [vmem:[%s8759_s12 + $0x128] sm:$0xff]  ;;  %s8301_s12 = scalar_lea.vmem %s10333_s8, 2048 }
 0x38e   : > { %v6083_v61 = vpack.c.bf16 %v6854_v40, %v6853_v33  ;;  %p8302_p11 = scmp.ne.s32.totalorder %s10333_s8, %s8301_s12  ;;  %p8309_p4 = scmp.lt.s32.totalorder %s8307_s10, %s8301_s12 }
 0x38f   : > { %v10129_v9 = vpop.f32.mrf.mxu1 }
 0x390   : > { %7851 = vmatmul.mubr.bf16.vlgmr.msra.gmra.mxu1 %v6079_v35  ;;  %p8303_p13 = pnand %p8302_p11, %p10491_p5  ;;  %p8310_p8 = por %p8309_p4, %p8308_p7 }
 0x391   : > { %v10132_v55 = vpop.f32.mrf.mxu1  ;;  %7854 = vmatprep.mubr.bf16.mxu1 %v6080_v38 }
 0x392   : > { %p8304_p0 = pneg %p8303_p13 }
 0x393   : > { %v10138_v42 = vpop.f32.mrf.mxu1 }
 0x394   : > { %v7632_v32 = vpop.f32.mrf.mxu0  ;;  %p8311_p12 = pnand %p8310_p8, %p8304_p0 }
 0x395   : > { %v10140_v2 = vpop.f32.mrf.mxu1 }
 0x396   : > { %v3864_v28 = vpop.f32.mrf.mxu0 }
 0x397   : > { %v10144_v43 = vpop.f32.mrf.mxu1 }
 0x398   : > { %7855 = vmatmul.mubr.bf16.gmra.mxu1 %v6081_v4  ;;  %v7633_v7 = vpop.f32.mrf.mxu0 }
 0x399   : > { %7858 = vmatprep.mubr.bf16.mxu1 %v6082_v11  ;;  %v10146_v0 = vpop.f32.mrf.mxu1 }
 0x39a   : > { %v3867_v22 = vpop.f32.mrf.mxu0 }
 0x3a0   : > { %7859 = vmatmul.mubr.bf16.gmra.mxu1 %v6083_v61 }
 0x3a1   : > { %v7592_v51 = vpop.f32.mrf.mxu1 }
 0x3a2   : > { %v3428_v14 = vadd.f32 %v7592_v51, %v10068_v20 }
 0x3a3   : > { %v7636_v17 = vpop.f32.mrf.mxu0  ;;  %v3419_v44 = vpop.f32.mrf.mxu1 }
 0x3a4   : > { %v3420_v36 = vadd.f32 %v3419_v44, %v10077_v31  ;;  %v3897_v1 = vadd.f32 %v10082_v48, %v3428_v14 }
 0x3a5   : > { %v3880_v25 = vpop.f32.mrf.mxu0  ;;  %v7593_v62 = vpop.f32.mrf.mxu1 }
 0x3a6   : > { %v3431_v19 = vadd.f32 %v7593_v62, %v10080_v18  ;;  %v3895_v57 = vadd.f32 %v10087_v49, %v3420_v36 }
 0x3a7   : > { %v7637_v52 = vpop.f32.mrf.mxu0  ;;  %v3422_v23 = vpop.f32.mrf.mxu1 }
 0x3a8   : > { %v3423_v29 = vadd.f32 %v3422_v23, %v10085_v6  ;;  %v3898_v58 = vadd.f32 %v10092_v50, %v3431_v19 }
 0x3a9   : > { %v3883_v53 = vpop.f32.mrf.mxu0 }
 0x3aa   : > { %v7596_v41 = vpop.f32.mrf.mxu1  ;;  %v3896_v31 = vadd.f32 %v10106_v54, %v3423_v29 }
 0x3ab   : > { %v7688_v5 = vpop.f32.mrf.mxu0  ;;  %v3444_v20 = vadd.f32 %v7596_v41, %v10090_v60 }
 0x3ac   : > { %v3435_v3 = vpop.f32.mrf.mxu1 }
 0x3ad   : > { %v4469_v16 = vpop.f32.mrf.mxu0  ;;  %v3436_v47 = vadd.f32 %v3435_v3, %v10101_v21  ;;  %v3901_v18 = vadd.f32 %v10114_v13, %v3444_v20 }
 0x3ae   : > { %v7597_v59 = vpop.f32.mrf.mxu1 }
 0x3af   : > { %v7689_v48 = vpop.f32.mrf.mxu0  ;;  %v3447_v12 = vadd.f32 %v7597_v59, %v10108_v63  ;;  %v3899_v27 = vadd.f32 %v3848_v24, %v3436_v47 }
 0x3b0   : > { %v3438_v6 = vpop.f32.mrf.mxu1 }
 0x3b1   : > { %v4472_v49 = vpop.f32.mrf.mxu0  ;;  %v3439_v50 = vadd.f32 %v3438_v6, %v10111_v39  ;;  %v3902_v45 = vadd.f32 %v7629_v34, %v3447_v12 }
 0x3b3   : > { %v7692_v8 = vpop.f32.mrf.mxu0  ;;  %v3900_v38 = vadd.f32 %v3851_v56, %v3439_v50 }
 0x3b4   : > { %v7600_v60 = vpop.f32.mrf.mxu1 }
 0x3b5   : > { %v4485_v35 = vpop.f32.mrf.mxu0  ;;  %v3460_v54 = vadd.f32 %v7600_v60, %v10116_v10 }
 0x3b6   : > { %v3451_v46 = vpop.f32.mrf.mxu1 }
 0x3b7   : > { %v7693_v26 = vpop.f32.mrf.mxu0  ;;  %v3452_v21 = vadd.f32 %v3451_v46, %v10124_v30  ;;  %v3905_v13 = vadd.f32 %v7632_v32, %v3460_v54 }
 0x3b8   : > { %v7601_v37 = vpop.f32.mrf.mxu1 }
 0x3b9   : > { %v4488_v15 = vpop.f32.mrf.mxu0  ;;  %v3463_v63 = vadd.f32 %v7601_v37, %v10129_v9  ;;  %v3903_v24 = vadd.f32 %v3864_v28, %v3452_v21 }
 0x3ba   : > { %v3454_v11 = vpop.f32.mrf.mxu1 }
 0x3bb   : > { %v7696_v4 = vpop.f32.mrf.mxu0  ;;  %v3455_v39 = vadd.f32 %v3454_v11, %v10132_v55  ;;  %v3906_v34 = vadd.f32 %v7633_v7, %v3463_v63 }
 0x3bc   : > { %v7604_v40 = vpop.f32.mrf.mxu1 }
 0x3bd   : > { %v4501_v33 = vpop.f32.mrf.mxu0  ;;  %v3476_v56 = vadd.f32 %v7604_v40, %v10138_v42  ;;  %v3904_v10 = vadd.f32 %v3867_v22, %v3455_v39 }
 0x3be   : > { %v3467_v51 = vpop.f32.mrf.mxu1 }
 0x3bf   : > { %v7697_v61 = vpop.f32.mrf.mxu0  ;;  %v3468_v30 = vadd.f32 %v3467_v51, %v10140_v2  ;;  %v3909_v32 = vadd.f32 %v7636_v17, %v3476_v56 }
 0x3c0   : > { %v7605_v44 = vpop.f32.mrf.mxu1 }
 0x3c1   : > { %v4504_v14 = vpop.f32.mrf.mxu0  ;;  %v3479_v9 = vadd.f32 %v7605_v44, %v10144_v43  ;;  %v3907_v28 = vadd.f32 %v3880_v25, %v3468_v30 }
 0x3c2   : > { %v3470_v62 = vpop.f32.mrf.mxu1 }
 0x3c3   : > { %v7700_v36 = vpop.f32.mrf.mxu0  ;;  %v3471_v55 = vadd.f32 %v3470_v62, %v10146_v0  ;;  %v3910_v7 = vadd.f32 %v7637_v52, %v3479_v9 }
 0x3c4   : > { %v7656_v23 = vpop.f32.mrf.mxu1 }
 0x3c5   : > { %v4517_v19 = vpop.f32.mrf.mxu0  ;;  %v4308_v29 = vadd.f32 %v7656_v23, %v3897_v1  ;;  %v3908_v42 = vadd.f32 %v3883_v53, %v3471_v55 }
 0x3c6   : > { %v4243_v41 = vpop.f32.mrf.mxu1 }
 0x3c7   : > { %v7701_v22 = vpop.f32.mrf.mxu0  ;;  %v4306_v20 = vadd.f32 %v4243_v41, %v3895_v57  ;;  %v10169_v3 = vadd.f32 %v7688_v5, %v4308_v29 }
 0x3c8   : > { %v7657_v17 = vpop.f32.mrf.mxu1 }
 0x3c9   : > { %v4520_v2 = vpop.f32.mrf.mxu0  ;;  %v4309_v47 = vadd.f32 %v7657_v17, %v3898_v58  ;;  %v10171_v59 = vadd.f32 %v4469_v16, %v4306_v20 }
 0x3ca   : > { %v4246_v43 = vpop.f32.mrf.mxu1 }
 0x3cb   : > { %v4307_v25 = vadd.f32 %v4246_v43, %v3896_v31  ;;  %v10173_v12 = vadd.f32 %v7689_v48, %v4309_v47  ;;  %v10175_v0 = vpop.f32.mrf.mxu0 }
 0x3cd   : > { %v10177_v52 = vadd.f32 %v4472_v49, %v4307_v25  ;;  %v10179_v1 = vpop.f32.mrf.mxu0  ;;  %v7660_v53 = vpop.f32.mrf.mxu1 }
 0x3ce   : > { %v4312_v6 = vadd.f32 %v7660_v53, %v3901_v18 }
 0x3cf   : > { %v10181_v57 = vpop.f32.mrf.mxu0  ;;  %v4259_v5 = vpop.f32.mrf.mxu1 }
 0x3d0   : > { %v4310_v50 = vadd.f32 %v4259_v5, %v3899_v27  ;;  %v4538_v60 = vadd.f32 %v7692_v8, %v4312_v6 }
 0x3d1   : > { %v10183_v58 = vpop.f32.mrf.mxu0  ;;  %v7661_v16 = vpop.f32.mrf.mxu1 }
 0x3d2   : > { %v4313_v54 = vadd.f32 %v7661_v16, %v3902_v45  ;;  %v4536_v31 = vadd.f32 %v4485_v35, %v4310_v50 }
 0x3d3   : > { %v4262_v48 = vpop.f32.mrf.mxu1 }
 0x3d4   : > { %v4311_v46 = vadd.f32 %v4262_v48, %v3900_v38  ;;  %v4539_v21 = vadd.f32 %v7693_v26, %v4313_v54 }
 0x3d5   : > { %v7756_v37 = vpop.f32.mrf.mxu0 }
 0x3d6   : > { %v7664_v49 = vpop.f32.mrf.mxu1  ;;  %v4537_v63 = vadd.f32 %v4488_v15, %v4311_v46 }
 0x3d7   : > { %v5322_v11 = vpop.f32.mrf.mxu0  ;;  %v4316_v39 = vadd.f32 %v7664_v49, %v3905_v13 }
 0x3d8   : > { %v4275_v40 = vpop.f32.mrf.mxu1 }
 0x3d9   : > { %v7757_v18 = vpop.f32.mrf.mxu0  ;;  %v4314_v56 = vadd.f32 %v4275_v40, %v3903_v24  ;;  %v4542_v51 = vadd.f32 %v7696_v4, %v4316_v39 }
 0x3da   : > { %v7665_v30 = vpop.f32.mrf.mxu1 }
 0x3db   : > { %v4317_v27 = vadd.f32 %v7665_v30, %v3906_v34  ;;  %v4540_v8 = vadd.f32 %v4501_v33, %v4314_v56  ;;  %v5325_v44 = vpop.f32.mrf.mxu0 }
 0x3dc   : > { %v4278_v9 = vpop.f32.mrf.mxu1 }
 0x3dd   : > { %v4315_v62 = vadd.f32 %v4278_v9, %v3904_v10  ;;  %v4543_v45 = vadd.f32 %v7697_v61, %v4317_v27 }
 0x3de   : > { %v7760_v55 = vpop.f32.mrf.mxu0 }
 0x3df   : > { %v4541_v35 = vadd.f32 %v4504_v14, %v4315_v62 }
 0x3e0   : > { %v7668_v38 = vpop.f32.mrf.mxu1  ;;  %v5338_v29 = vpop.f32.mrf.mxu0 }
 0x3e1   : > { %v4320_v26 = vadd.f32 %v7668_v38, %v3909_v32 }
 0x3e2   : > { %v4291_v23 = vpop.f32.mrf.mxu1  ;;  %v7761_v4 = vpop.f32.mrf.mxu0 }
 0x3e3   : > { %v4318_v15 = vadd.f32 %v4291_v23, %v3907_v28  ;;  %v4546_v41 = vadd.f32 %v7700_v36, %v4320_v26 }
 0x3e4   : > { %v7669_v13 = vpop.f32.mrf.mxu1  ;;  %v5341_v43 = vpop.f32.mrf.mxu0 }
 0x3e5   : > { %v4321_v20 = vadd.f32 %v7669_v13, %v3910_v7  ;;  %v4544_v17 = vadd.f32 %v4517_v19, %v4318_v15 }
 0x3e6   : > { %v4294_v24 = vpop.f32.mrf.mxu1 }
 0x3e7   : > { %v4319_v47 = vadd.f32 %v4294_v24, %v3908_v42  ;;  %v4547_v34 = vadd.f32 %v7701_v22, %v4321_v20 }
 0x3e9   : > { %v4545_v33 = vadd.f32 %v4520_v2, %v4319_v47  ;;  %v7764_v25 = vpop.f32.mrf.mxu0 }
 0x3eb   : > { %v5354_v10 = vpop.f32.mrf.mxu0 }
 0x3ed   : > { %v7765_v14 = vpop.f32.mrf.mxu0 }
 0x3ef   : > { %v5357_v6 = vpop.f32.mrf.mxu0 }
 0x3f4   : > { %v7720_v61 = vpop.f32.mrf.mxu1 }
 0x3f6   : > { %v4895_v53 = vpop.f32.mrf.mxu1 }
 0x3f8   : > { %v7721_v32 = vpop.f32.mrf.mxu1 }
 0x3fa   : > { %v4898_v50 = vpop.f32.mrf.mxu1 }
 0x3fb   : > { %v7816_v5 = vpop.f32.mrf.mxu0 }
 0x3fd   : > { %v10185_v28 = vpop.f32.mrf.mxu0 }
 0x3ff   : > { %v10187_v19 = vpop.f32.mrf.mxu0 }
 0x401   : > { %v10193_v46 = vpop.f32.mrf.mxu0 }
 0x406   : > { %v7724_v36 = vpop.f32.mrf.mxu1 }
 0x407   : > { %v4964_v7 = vadd.f32 %v7724_v36, %v4538_v60 }
 0x408   : > { %v4911_v16 = vpop.f32.mrf.mxu1 }
 0x409   : > { %v4962_v42 = vadd.f32 %v4911_v16, %v4536_v31  ;;  %v10189_v22 = vadd.f32 %v7756_v37, %v4964_v7 }
 0x40a   : > { %v7725_v2 = vpop.f32.mrf.mxu1 }
 0x40b   : > { %v4965_v54 = vadd.f32 %v7725_v2, %v4539_v21  ;;  %v10191_v48 = vadd.f32 %v5322_v11, %v4962_v42  ;;  %v4961_v42 = vadd.f32 %v7721_v32, %v10173_v12  ;;  %v10247_v32 = vld [vmem:[%s10408_s4] ss:$0 sm:$0xff] }
 0x40c   : > { %v4914_v49 = vpop.f32.mrf.mxu1 }
 0x40d   : > { %v4963_v39 = vadd.f32 %v4914_v49, %v4537_v63  ;;  %v10195_v40 = vadd.f32 %v7757_v18, %v4965_v54  ;;  %v10199_v30 = vpop.f32.mrf.mxu0 }
 0x40f   : > { %v10197_v56 = vadd.f32 %v5325_v44, %v4963_v39  ;;  %v10201_v60 = vpop.f32.mrf.mxu0 }
 0x411   : > { %v10203_v37 = vpop.f32.mrf.mxu0 }
 0x413   : > { %v10209_v63 = vpop.f32.mrf.mxu0 }
 0x416   : > { %v7728_v27 = vpop.f32.mrf.mxu1 }
 0x417   : > { %v4968_v31 = vadd.f32 %v7728_v27, %v4542_v51 }
 0x418   : > { %v4927_v9 = vpop.f32.mrf.mxu1 }
 0x419   : > { %v4966_v21 = vadd.f32 %v4927_v9, %v4540_v8  ;;  %v10205_v11 = vadd.f32 %v7760_v55, %v4968_v31 }
 0x41a   : > { %v7729_v62 = vpop.f32.mrf.mxu1 }
 0x41b   : > { %v4969_v38 = vadd.f32 %v7729_v62, %v4543_v45  ;;  %v10207_v26 = vadd.f32 %v5338_v29, %v4966_v21  ;;  %v4960_v45 = vadd.f32 %v7720_v61, %v10169_v3 }
 0x41c   : > { %v4930_v18 = vpop.f32.mrf.mxu1 }
 0x41d   : > { %v4967_v44 = vadd.f32 %v4930_v18, %v4541_v35  ;;  %v10211_v23 = vadd.f32 %v7761_v4, %v4969_v38  ;;  %v4958_v4 = vadd.f32 %v4895_v53, %v10171_v59 }
 0x41e   : > { %v10215_v13 = vpop.f32.mrf.mxu0 }
 0x41f   : > { %v10213_v15 = vadd.f32 %v5341_v43, %v4967_v44  ;;  %v5369_v49 = vadd.f32 %v10179_v1, %v4958_v4 }
 0x420   : > { %v10217_v51 = vpop.f32.mrf.mxu0 }
 0x422   : > { %v10219_v8 = vpop.f32.mrf.mxu0 }
 0x424   : > { %v10224_v36 = vpop.f32.mrf.mxu0 }
 0x428   : > { %v7732_v20 = vpop.f32.mrf.mxu1 }
 0x429   : > { %v4972_v55 = vadd.f32 %v7732_v20, %v4546_v41  ;;  %v5371_v41 = vadd.f32 %v10175_v0, %v4960_v45 }
 0x42a   : > { %v4943_v24 = vpop.f32.mrf.mxu1 }
 0x42b   : > { %v4970_v29 = vadd.f32 %v4943_v24, %v4544_v17  ;;  %v10222_v47 = vadd.f32 %v7764_v25, %v4972_v55  ;;  %v4959_v25 = vadd.f32 %v4898_v50, %v10177_v52 }
 0x42c   : > { %v7733_v35 = vpop.f32.mrf.mxu1 }
 0x42d   : > { %v4973_v43 = vadd.f32 %v7733_v35, %v4547_v34  ;;  %v10227_v7 = vadd.f32 %v5354_v10, %v4970_v29 }
 0x42e   : > { %v4946_v16 = vpop.f32.mrf.mxu1 }
 0x42f   : > { %v4971_v2 = vadd.f32 %v4946_v16, %v4545_v33  ;;  %v10231_v54 = vadd.f32 %v7765_v14, %v4973_v43  ;;  %v5372_v33 = vadd.f32 %v10181_v57, %v4961_v42 }
 0x430   : > { %v10233_v3 = vpop.f32.mrf.mxu0  ;;  %v7784_v17 = vpop.f32.mrf.mxu1 }
 0x431   : > { %v5597_v61 = vadd.f32 %v7784_v17, %v5371_v41  ;;  %v10237_v59 = vadd.f32 %v5357_v6, %v4971_v2  ;;  %v5370_v6 = vadd.f32 %v10183_v58, %v4959_v25 }
 0x432   : > { %v10239_v34 = vpop.f32.mrf.mxu0  ;;  %v5532_v10 = vpop.f32.mrf.mxu1 }
 0x433   : > { %v6023_v53 = vadd.f32 %v7816_v5, %v5597_v61  ;;  %v5595_v12 = vadd.f32 %v5532_v10, %v5369_v49  ;;  %v10256_v5 = vld [vmem:[%s10410_s6] ss:$0 sm:$0xff] }
 0x434   : > { %v10242_v0 = vpop.f32.mrf.mxu0  ;;  %v7785_v14 = vpop.f32.mrf.mxu1 }
 0x435   : > { %v6021_v52 = vadd.f32 %v10185_v28, %v5595_v12  ;;  %v5598_v1 = vadd.f32 %v7785_v14, %v5372_v33  ;;  %v6046_v27 = vadd.f32 %v10247_v32, %v6023_v53 }
 0x436   : > { %v10251_v50 = vpop.f32.mrf.mxu0  ;;  %v5535_v57 = vpop.f32.mrf.mxu1 }
 0x437   : > { %v6024_v39 = vadd.f32 %v10187_v19, %v5598_v1  ;;  %v5596_v31 = vadd.f32 %v5535_v57, %v5370_v6  ;;  %v6044_v62 = vadd.f32 %v10247_v32, %v6021_v52 }
 0x438   : > { %v7848_v9 = vpop.f32.mrf.mxu0  ;;  %v7788_v21 = vpop.f32.mrf.mxu1 }
 0x439   : > { %v6198_v28 = vadd.f32 %v7848_v9, %v10256_v5  ;;  %v6022_v58 = vadd.f32 %v10193_v46, %v5596_v31  ;;  %v6047_v19 = vadd.f32 %v10247_v32, %v6024_v39  ;;  %v5601_v33 = vadd.f32 %v7788_v21, %v10189_v22 }
 0x43a   : > { %v6189_v38 = vpop.f32.mrf.mxu0  ;;  %v5548_v18 = vpop.f32.mrf.mxu1 }
 0x43b   : > { %v6254_v44 = vadd.f32 %v6198_v28, %v6046_v27  ;;  %v6190_v20 = vadd.f32 %v10256_v5, %v6189_v38  ;;  %v6045_v46 = vadd.f32 %v10247_v32, %v6022_v58  ;;  %v5599_v52 = vadd.f32 %v5548_v18, %v10191_v48 }
 0x43c   : > { %v7849_v55 = vpop.f32.mrf.mxu0  ;;  %v7789_v24 = vpop.f32.mrf.mxu1  ;;  %v6027_v57 = vadd.f32 %v10199_v30, %v5601_v33 }
 0x43d   : > { %v6270_v45 = vmax.f32 %v6254_v44, 0.0  ;;  %v6252_v29 = vadd.f32 %v6190_v20, %v6044_v62  ;;  %v6201_v35 = vadd.f32 %v7849_v55, %v10256_v5  ;;  %v5602_v1 = vadd.f32 %v7789_v24, %v10195_v40 }
 0x43e   : > { %v6192_v4 = vpop.f32.mrf.mxu0  ;;  %v5551_v43 = vpop.f32.mrf.mxu1  ;;  %v6025_v31 = vadd.f32 %v10201_v60, %v5599_v52  ;;  %v6050_v22 = vadd.f32 %v10247_v32, %v6027_v57 }
 0x43f   : > { %6286 = vst [vmem:[%s8674_s22 + $0x10] sm:$0xff] %v6270_v45  ;;  %v6268_v16 = vmax.f32 %v6252_v29, 0.0  ;;  %v6255_v42 = vadd.f32 %v6201_v35, %v6047_v19  ;;  %v6193_v2 = vadd.f32 %v10256_v5, %v6192_v4  ;;  %v5600_v39 = vadd.f32 %v5551_v43, %v10197_v56 }
 0x440   : > { %v7792_v41 = vpop.f32.mrf.mxu1  ;;  %v6028_v9 = vadd.f32 %v10203_v37, %v5602_v1  ;;  %v6048_v56 = vadd.f32 %v10247_v32, %v6025_v31 }
 0x441   : > { %6284 = vst [vmem:[%s8674_s22] sm:$0xff] %v6268_v16  ;;  %v6271_v17 = vmax.f32 %v6255_v42, 0.0  ;;  %v6253_v25 = vadd.f32 %v6193_v2, %v6045_v46  ;;  %v5605_v58 = vadd.f32 %v7792_v41, %v10205_v11  ;;  %v6026_v48 = vadd.f32 %v10209_v63, %v5600_v39 }
 0x442   : > { %v5564_v61 = vpop.f32.mrf.mxu1  ;;  %v6051_v38 = vadd.f32 %v10247_v32, %v6028_v9 }
 0x443   : > { %6287 = vst [vmem:[%s8674_s22 + $0x18] sm:$0xff] %v6271_v17  ;;  %v6269_v49 = vmax.f32 %v6253_v25, 0.0  ;;  %v5603_v30 = vadd.f32 %v5564_v61, %v10207_v26  ;;  %v6031_v18 = vadd.f32 %v10215_v13, %v5605_v58  ;;  %v6049_v26 = vadd.f32 %v10247_v32, %v6026_v48 }
 0x444   : > { %v7793_v10 = vpop.f32.mrf.mxu1 }
 0x445   : > { %6285 = vst [vmem:[%s8674_s22 + $0x8] sm:$0xff] %v6269_v49  ;;  %v5606_v37 = vadd.f32 %v7793_v10, %v10211_v23  ;;  %v6029_v24 = vadd.f32 %v10217_v51, %v5603_v30  ;;  %v6054_v43 = vadd.f32 %v10247_v32, %v6031_v18 }
 0x446   : > { %v5567_v53 = vpop.f32.mrf.mxu1 }
 0x447   : > { %v5604_v19 = vadd.f32 %v5567_v53, %v10213_v15  ;;  %v6032_v35 = vadd.f32 %v10219_v8, %v5606_v37 }
 0x448   : > { %v7796_v12 = vpop.f32.mrf.mxu1 }
 0x449   : > { %v5609_v13 = vadd.f32 %v7796_v12, %v10222_v47  ;;  %v6030_v51 = vadd.f32 %v10224_v36, %v5604_v19  ;;  %v6052_v47 = vadd.f32 %v10247_v32, %v6029_v24  ;;  %v6055_v61 = vadd.f32 %v10247_v32, %v6032_v35 }
 0x44a   : > { %v5580_v14 = vpop.f32.mrf.mxu1 }
 0x44b   : > { %v5607_v42 = vadd.f32 %v5580_v14, %v10227_v7  ;;  %v6035_v25 = vadd.f32 %v10233_v3, %v5609_v13  ;;  %v6053_v33 = vadd.f32 %v10247_v32, %v6030_v51 }
 0x44c   : > { %v7797_v6 = vpop.f32.mrf.mxu1 }
 0x44d   : > { %v5610_v10 = vadd.f32 %v7797_v6, %v10231_v54  ;;  %v6033_v12 = vadd.f32 %v10239_v34, %v5607_v42  ;;  %v6058_v6 = vadd.f32 %v10247_v32, %v6035_v25 }
 0x44e   : > { %v5583_v27 = vpop.f32.mrf.mxu1 }
 0x44f   : > { %v5608_v3 = vadd.f32 %v5583_v27, %v10237_v59  ;;  %v6036_v39 = vadd.f32 %v10242_v0, %v5610_v10 }
 0x450   : > { %v7852_v28 = vpop.f32.mrf.mxu1 }
 0x451   : > { %v6214_v21 = vadd.f32 %v7852_v28, %v10256_v5  ;;  %v6056_v28 = vadd.f32 %v10247_v32, %v6033_v12  ;;  %v6034_v27 = vadd.f32 %v10251_v50, %v5608_v3  ;;  %v6059_v30 = vadd.f32 %v10247_v32, %v6036_v39 }
 0x452   : > { %v6205_v40 = vpop.f32.mrf.mxu1 }
 0x453   : > { %v6258_v62 = vadd.f32 %v6214_v21, %v6050_v22  ;;  %v6206_v60 = vadd.f32 %v10256_v5, %v6205_v40  ;;  %v6057_v37 = vadd.f32 %v10247_v32, %v6034_v27 }
 0x454   : > { %v7853_v11 = vpop.f32.mrf.mxu1 }
 0x455   : > { %v6274_v44 = vmax.f32 %v6258_v62, 0.0  ;;  %v6256_v20 = vadd.f32 %v6206_v60, %v6048_v56  ;;  %v6217_v63 = vadd.f32 %v7853_v11, %v10256_v5 }
 0x456   : > { %v6208_v55 = vpop.f32.mrf.mxu1 }
 0x457   : > { %6290 = vst [vmem:[%s8674_s22 + $0x30] sm:$0xff] %v6274_v44  ;;  %v6272_v23 = vmax.f32 %v6256_v20, 0.0  ;;  %v6259_v45 = vadd.f32 %v6217_v63, %v6051_v38  ;;  %v6209_v29 = vadd.f32 %v10256_v5, %v6208_v55 }
 0x458   : > { %v7856_v46 = vpop.f32.mrf.mxu1 }
 0x459   : > { %6288 = vst [vmem:[%s8674_s22 + $0x20] sm:$0xff] %v6272_v23  ;;  %v6275_v4 = vmax.f32 %v6259_v45, 0.0  ;;  %v6257_v15 = vadd.f32 %v6209_v29, %v6049_v26  ;;  %v6230_v16 = vadd.f32 %v7856_v46, %v10256_v5 }
 0x45a   : > { %v6221_v2 = vpop.f32.mrf.mxu1 }
 0x45b   : > { %6291 = vst [vmem:[%s8674_s22 + $0x38] sm:$0xff] %v6275_v4  ;;  %v6273_v41 = vmax.f32 %v6257_v15, 0.0  ;;  %v6262_v8 = vadd.f32 %v6230_v16, %v6054_v43  ;;  %v6222_v17 = vadd.f32 %v10256_v5, %v6221_v2 }
 0x45c   : > { %v7857_v49 = vpop.f32.mrf.mxu1 }
 0x45d   : > { %6289 = vst [vmem:[%s8674_s22 + $0x28] sm:$0xff] %v6273_v41  ;;  %v6278_v36 = vmax.f32 %v6262_v8, 0.0  ;;  %v6260_v7 = vadd.f32 %v6222_v17, %v6052_v47  ;;  %v6233_v53 = vadd.f32 %v7857_v49, %v10256_v5 }
 0x45e   : > { %v6224_v14 = vpop.f32.mrf.mxu1 }
 0x45f   : > { %6294 = vst [vmem:[%s8674_s22 + $0x50] sm:$0xff] %v6278_v36  ;;  %v6276_v52 = vmax.f32 %v6260_v7, 0.0  ;;  %v6263_v1 = vadd.f32 %v6233_v53, %v6055_v61  ;;  %v6225_v54 = vadd.f32 %v10256_v5, %v6224_v14 }
 0x460   : > { %v7860_v57 = vpop.f32.mrf.mxu1 }
 0x461   : > { %6292 = vst [vmem:[%s8674_s22 + $0x40] sm:$0xff] %v6276_v52  ;;  %v6279_v34 = vmax.f32 %v6263_v1, 0.0  ;;  %v6261_v31 = vadd.f32 %v6225_v54, %v6053_v33  ;;  %v6246_v9 = vadd.f32 %v7860_v57, %v10256_v5 }
 0x462   : > { %v6237_v59 = vpop.f32.mrf.mxu1 }
 0x463   : > { %6295 = vst [vmem:[%s8674_s22 + $0x58] sm:$0xff] %v6279_v34  ;;  %v6277_v58 = vmax.f32 %v6261_v31, 0.0  ;;  %v6266_v22 = vadd.f32 %v6246_v9, %v6058_v6  ;;  %v6238_v21 = vadd.f32 %v10256_v5, %v6237_v59 }
 0x464   : > { %v7861_v0 = vpop.f32.mrf.mxu1 }
 0x465   : > { %6293 = vst [vmem:[%s8674_s22 + $0x48] sm:$0xff] %v6277_v58  ;;  %v6282_v48 = vmax.f32 %v6266_v22, 0.0  ;;  %v6264_v40 = vadd.f32 %v6238_v21, %v6056_v28  ;;  %v6249_v62 = vadd.f32 %v7861_v0, %v10256_v5 }
 0x466   : > { %v6240_v56 = vpop.f32.mrf.mxu1 }
 0x467   : > { %6298 = vst [vmem:[%s8674_s22 + $0x70] sm:$0xff] %v6282_v48  ;;  %v6280_v50 = vmax.f32 %v6264_v40, 0.0  ;;  %v6267_v60 = vadd.f32 %v6249_v62, %v6059_v30  ;;  %v6241_v38 = vadd.f32 %v10256_v5, %v6240_v56 }
 0x469   : > { %6296 = vst [vmem:[%s8674_s22 + $0x60] sm:$0xff] %v6280_v50  ;;  %v6283_v11 = vmax.f32 %v6267_v60, 0.0  ;;  %v6265_v18 = vadd.f32 %v6241_v38, %v6057_v37 }
 0x46b   : > { %6299 = vst [vmem:[%s8674_s22 + $0x78] sm:$0xff] %v6283_v11  ;;  %v6281_v44 = vmax.f32 %v6265_v18, 0.0 }
 0x46d   : > { %6297 = vst [vmem:[%s8674_s22 + $0x68] sm:$0xff] %v6281_v44 }
 0x46e   : > { %8314 = shalt.err (!%p8311_p12)
}
 0x46f   : > { %s8315_s9 = scalar_lea.hbm %s10339_s17, 2048  ;;  %s8319_s23 = scalar_lea.hbm %s10411_s7, 8192 }
 0x470   : > { %p8316_p9 = scmp.ne.s32.totalorder %s10339_s17, %s8315_s9  ;;  %p8320_p6 = scmp.lt.s32.totalorder %s10339_s17, %s10411_s7 }
 0x471   : > { %p8321_p2 = scmp.lt.s32.totalorder %s8319_s23, %s8315_s9 }
 0x472   : > { %p8317_p1 = pnand %p8316_p9, %p10491_p5 }
 0x473   : > { %p8322_p10 = por %p8321_p2, %p8320_p6 }
 0x474   : > { %p8318_p3 = pneg %p8317_p1 }
 0x476   : > { %p8323_p11 = pnand %p8322_p10, %p8318_p3 }
 0x478   : > { %8326 = shalt.err (!%p8323_p11)
}
 0x479   : > { %s8443_s20 = smov 128   ;;  %s8444_s28 = smov 8  }
 0x47a   : > { %7892 = dma.vmem_to_hbm [thread:$0]  (%p10491_p5), %s10333_s8, 2048, %s10339_s17, %s10344_s18, %s8443_s20, %s8443_s20, %s8444_s28  }
 0x47b PF: > { %s10492_s30 = sld [smem:[#allocation24_spill]]  ;;  %p7917_p13 = scmp.ge.s32.totalorder %s8429_s11, 2 }
 0x47c   : > { %s6332_s29 = sand.u32 1, %s8389_s24  }
 0x47d   : > { %s6333_s14 = scalar_lea.sflag [#allocation6], %s6332_s29 }
 0x481   : > { %p10493_p0 = scmp.ne.s32.totalorder %s10492_s30, 0 }
 0x483   : > { %p7908_p7 = pnand %p7917_p13, %p10493_p0 }
 0x485   : > { %p7909_p4 = pneg %p7908_p7 }
 0x487   : > { %8384 = dma.done.wait (%p7909_p4), %s6333_s14, 2048  }
 0x488   : > { %8386 = vsyncadd (%p7909_p4), %s6333_s14, 4294965248  ;;  %s23_s11 = sadd.s32 1, %s8429_s11   ;;  %s10494_s16 = sld [smem:[#allocation17_spill]] }
 0x489   : > { %p20_p8 = scmp.ge.s32.totalorder %s23_s11, 6   ;;  %s10495_s26 = sld [smem:[#allocation26_spill]] }
 0x48a   : > { %s10496_s27 = sld [smem:[#allocation18_spill]]  ;;  %s10503_s24 = smov %s8393_s25 }
 0x48b   : > { %s10497_s28 = sld [smem:[#allocation19_spill]] }
 0x48c   : > { %s10498_s29 = sld [smem:[#allocation25_spill]]  ;;  %22 = sbr.rel (!%p20_p8) target bundleno = 10 (0xa), region = 133 }
 0x48d   : > { %s10499_s30 = sld [smem:[#allocation20_spill]] }
 0x48e   : > { %s10500_s8 = sld [smem:[#allocation21_spill]]  ;;  %s10504_s25 = smov %s10494_s16 }
 0x48f   : > { %s10501_s9 = sld [smem:[#allocation22_spill]] }
 0x490   : > { %s10502_s10 = sld [smem:[#allocation23_spill]] }
 0x491   :  { %6338 = vsyncpa [#allocation5], 1 }
 0x492   :  { %6340 = vsyncpa [#allocation5 + $0x1], 1 }
 0x493   :  { %6341 = vsyncpa [#allocation8], 1 }
 0x494   :  { %6342 = vsyncpa [#allocation11], 1 }
 0x495   :  { %6343 = vsyncpa [#allocation6], 1 }
 0x496   :  { %6345 = vsyncpa [#allocation6 + $0x1], 1 }

</bundles_post_ra>
